<compile_context>
chip_gen: v5e
topology: v5e:2x2
jax: 0.10.0
libtpu: 0.0.40
codegen_flags: <defaults>
</compile_context>

<pallas_src>
import numpy as np
import jax
import jax.numpy as jnp
from jax.experimental import pallas as pl
from jax.experimental.pallas import tpu as pltpu

NUM_CLASSES = 10
IMG_FLAT = 28 * 28          # 784
EMB_PADDED = 16             # label-embedding features padded 10 -> 16
HIDDEN = 512
OUT_PADDED = 128            # true output dim is 1; keep a full lane group
TM_MAX = 512                # max batch rows per grid step


def _cdiv(a, b):
    return -(-a // b)


def _round_up(x, m):
    return _cdiv(x, m) * m


def _tile_rows(batch):
    """Batch-tile rows: >=2 grid steps when possible (v7x dual-TC), 16-row
    multiples (bf16 sublane packing), capped at TM_MAX."""
    num_steps = max(2, _cdiv(batch, TM_MAX))
    tm = max(16, _round_up(_cdiv(batch, num_steps), 16))
    return min(TM_MAX, tm)


def _disc_kernel(img_ref, emb_ref, w1i_ref, w1e_ref, b1_ref,
                 w2_ref, b2_ref, w3_ref, b3_ref, w4_ref, b4_ref, o_ref):
    # In-kernel bf16 cast (image arrives as f32 straight from HBM -> one read,
    # no wrapper cast round trip).
    x_img = img_ref[...].astype(jnp.bfloat16)           # (TM, 784)
    x_emb = emb_ref[...].astype(jnp.bfloat16)           # (TM, 16)

    # Layer 1: Linear(794 -> 512) as split dot (img part + emb part) + LeakyReLU(0.2)
    h = jnp.dot(x_img, w1i_ref[...], preferred_element_type=jnp.float32)
    h = h + jnp.dot(x_emb, w1e_ref[...], preferred_element_type=jnp.float32)
    h = h + b1_ref[...]
    h = jnp.maximum(h, 0.2 * h)

    # Layer 2: Linear(512 -> 512) + Dropout(0.4)[identity, eval] + LeakyReLU(0.2)
    h = jnp.dot(h.astype(jnp.bfloat16), w2_ref[...],
                preferred_element_type=jnp.float32)
    h = h + b2_ref[...]
    h = jnp.maximum(h, 0.2 * h)

    # Layer 3: Linear(512 -> 512) + Dropout(0.4)[identity, eval] + LeakyReLU(0.2)
    h = jnp.dot(h.astype(jnp.bfloat16), w3_ref[...],
                preferred_element_type=jnp.float32)
    h = h + b3_ref[...]
    h = jnp.maximum(h, 0.2 * h)

    # Layer 4: Linear(512 -> 1) + Sigmoid (output padded to 128 lanes; lane-dense
    # bf16 store; the padded-column MXU work is ~6% and MXU is not binding).
    logits = jnp.dot(h.astype(jnp.bfloat16), w4_ref[...],
                     preferred_element_type=jnp.float32)
    logits = logits + b4_ref[...]
    o_ref[...] = jax.nn.sigmoid(logits).astype(o_ref.dtype)


def prepare_padded_params(params):
    """One-time split / padding / bf16 casting of weights (hoisted out of forward)."""
    w1 = params["w1"]                                            # (794, 512)
    w1_img = w1[:IMG_FLAT].astype(jnp.bfloat16)                  # (784, 512)
    w1_emb = jnp.pad(w1[IMG_FLAT:],                              # (10, 512) -> (16, 512)
                     ((0, EMB_PADDED - NUM_CLASSES), (0, 0))).astype(jnp.bfloat16)
    return {
        # embedding table pre-padded to 16 cols so the wrapper's take() needs no pad op
        "label_emb_pad": jnp.pad(params["label_emb"].astype(jnp.float32),
                                 ((0, 0), (0, EMB_PADDED - NUM_CLASSES))),   # (10, 16)
        "w1_img": w1_img,
        "w1_emb": w1_emb,
        "b1": params["b1"].reshape(1, HIDDEN).astype(jnp.float32),
        "w2": params["w2"].astype(jnp.bfloat16),
        "b2": params["b2"].reshape(1, HIDDEN).astype(jnp.float32),
        "w3": params["w3"].astype(jnp.bfloat16),
        "b3": params["b3"].reshape(1, HIDDEN).astype(jnp.float32),
        "w4": jnp.pad(params["w4"],
                      ((0, 0), (0, OUT_PADDED - 1))).astype(jnp.bfloat16),
        "b4": jnp.pad(params["b4"].reshape(1, 1),
                      ((0, 0), (0, OUT_PADDED - 1))).astype(jnp.float32),
    }


def discriminator_forward(img, labels, pp):
    """img: (B, 1, 28, 28) float32, labels: (B,) int32, pp: prepare_padded_params().
    Eval-mode forward (Dropout = identity). Returns (B, 1) float32."""
    B = img.shape[0]
    TM = _tile_rows(B)
    grid = (_cdiv(B, TM),)          # partial last tile handled by Pallas (OOB writes dropped)

    img_flat = img.reshape(B, IMG_FLAT)                      # free view, stays f32 in HBM
    emb = jnp.take(pp["label_emb_pad"], labels, axis=0)      # (B, 16) f32, ~64 B/row

    out = pl.pallas_call(
        _disc_kernel,
        out_shape=jax.ShapeDtypeStruct((B, OUT_PADDED), jnp.bfloat16),
        grid_spec=pltpu.PrefetchScalarGridSpec(
            num_scalar_prefetch=0,
            grid=grid,
            in_specs=[
                pl.BlockSpec((TM, IMG_FLAT), lambda i: (i, 0)),            # img tile (f32)
                pl.BlockSpec((TM, EMB_PADDED), lambda i: (i, 0)),          # emb tile (f32)
                pl.BlockSpec((IMG_FLAT, HIDDEN), lambda i: (0, 0)),        # w1_img (resident)
                pl.BlockSpec((EMB_PADDED, HIDDEN), lambda i: (0, 0)),      # w1_emb
                pl.BlockSpec((1, HIDDEN), lambda i: (0, 0)),               # b1
                pl.BlockSpec((HIDDEN, HIDDEN), lambda i: (0, 0)),          # w2
                pl.BlockSpec((1, HIDDEN), lambda i: (0, 0)),               # b2
                pl.BlockSpec((HIDDEN, HIDDEN), lambda i: (0, 0)),          # w3
                pl.BlockSpec((1, HIDDEN), lambda i: (0, 0)),               # b3
                pl.BlockSpec((HIDDEN, OUT_PADDED), lambda i: (0, 0)),      # w4
                pl.BlockSpec((1, OUT_PADDED), lambda i: (0, 0)),           # b4
            ],
            out_specs=pl.BlockSpec((TM, OUT_PADDED), lambda i: (i, 0)),
        ),
        compiler_params=pltpu.CompilerParams(
            dimension_semantics=("parallel",),     # batch tiles shard across v7x TCs
            vmem_limit_bytes=32 * 1024 * 1024,     # covers v5e's 16 MiB default scope
        ),
    )(img_flat, emb, pp["w1_img"], pp["w1_emb"], pp["b1"],
      pp["w2"], pp["b2"], pp["w3"], pp["b3"], pp["w4"], pp["b4"])

    return out[:, :1].astype(jnp.float32)                     # (B, 1)


def init_params(key):
    ks = jax.random.split(key, 9)

    def lin(kw, fan_in, fan_out):
        bound = 1.0 / np.sqrt(fan_in)
        return jax.random.uniform(kw, (fan_in, fan_out), jnp.float32, -bound, bound)

    in_features = IMG_FLAT + NUM_CLASSES
    return {
        "label_emb": jax.random.normal(ks[0], (NUM_CLASSES, NUM_CLASSES), jnp.float32),
        "w1": lin(ks[1], in_features, HIDDEN),
        "b1": jax.random.uniform(ks[2], (HIDDEN,), jnp.float32,
                                 -1.0 / np.sqrt(in_features), 1.0 / np.sqrt(in_features)),
        "w2": lin(ks[3], HIDDEN, HIDDEN),
        "b2": jax.random.uniform(ks[4], (HIDDEN,), jnp.float32,
                                 -1.0 / np.sqrt(HIDDEN), 1.0 / np.sqrt(HIDDEN)),
        "w3": lin(ks[5], HIDDEN, HIDDEN),
        "b3": jax.random.uniform(ks[6], (HIDDEN,), jnp.float32,
                                 -1.0 / np.sqrt(HIDDEN), 1.0 / np.sqrt(HIDDEN)),
        "w4": lin(ks[7], HIDDEN, 1),
        "b4": jax.random.uniform(ks[8], (1,), jnp.float32,
                                 -1.0 / np.sqrt(HIDDEN), 1.0 / np.sqrt(HIDDEN)),
    }


if __name__ == "__main__":
    key = jax.random.PRNGKey(0)
    k_img, k_lbl, k_par = jax.random.split(key, 3)

    B = 2
    img = jax.random.normal(k_img, (B, 1, 28, 28), jnp.float32)
    labels = jax.random.randint(k_lbl, (B,), 0, NUM_CLASSES, jnp.int32)
    params = init_params(k_par)
    padded = prepare_padded_params(params)        # one-time weight prep

    fwd = jax.jit(discriminator_forward)
    out = fwd(img, labels, padded)
    out = jax.block_until_ready(out)

    # Pure-JAX f32 reference (same math, no Pallas, no bf16).
    emb = jnp.take(params["label_emb"], labels, axis=0)
    h = jnp.concatenate([img.reshape(B, -1), emb], axis=-1)
    h = h @ params["w1"] + params["b1"]
    h = jnp.where(h > 0, h, 0.2 * h)
    h = h @ params["w2"] + params["b2"]
    h = jnp.where(h > 0, h, 0.2 * h)
    h = h @ params["w3"] + params["b3"]
    h = jnp.where(h > 0, h, 0.2 * h)
    ref = jax.nn.sigmoid(h @ params["w4"] + params["b4"])

    assert out.shape == (B, 1), out.shape
    # bf16 weights/activations (and bf16 output store) with f32 accumulation.
    np.testing.assert_allclose(np.asarray(out), np.asarray(ref), rtol=2e-2, atol=2e-2)
    print("KERNEL_OK")
</pallas_src>

<mosaic_0001>
module attributes {stable_mosaic.version = 11 : i64} {
  func.func @_disc_kernel(%arg0: i32, %arg1: memref<16x784xf32, #tpu.memory_space<vmem>>, %arg2: memref<16x16xf32, #tpu.memory_space<vmem>>, %arg3: memref<784x512xbf16, #tpu.memory_space<vmem>>, %arg4: memref<16x512xbf16, #tpu.memory_space<vmem>>, %arg5: memref<1x512xf32, #tpu.memory_space<vmem>>, %arg6: memref<512x512xbf16, #tpu.memory_space<vmem>>, %arg7: memref<1x512xf32, #tpu.memory_space<vmem>>, %arg8: memref<512x512xbf16, #tpu.memory_space<vmem>>, %arg9: memref<1x512xf32, #tpu.memory_space<vmem>>, %arg10: memref<512x128xbf16, #tpu.memory_space<vmem>>, %arg11: memref<1x128xf32, #tpu.memory_space<vmem>>, %arg12: memref<16x128xbf16, #tpu.memory_space<vmem>>) attributes {dimension_semantics = [#tpu.dimension_semantics<parallel>], iteration_bounds = array<i64: 1>, scalar_prefetch = 0 : i64, scratch_operands = 0 : i64, tpu.core_type = #tpu.core_type<tc>, window_params = [{transform_indices = @transform_0, window_bounds = array<i64: 16, 784>}, {transform_indices = @transform_1, window_bounds = array<i64: 16, 16>}, {pipeline_mode = #tpu.pipeline_mode<synchronous>, transform_indices = @transform_2, window_bounds = array<i64: 784, 512>}, {pipeline_mode = #tpu.pipeline_mode<synchronous>, transform_indices = @transform_3, window_bounds = array<i64: 16, 512>}, {pipeline_mode = #tpu.pipeline_mode<synchronous>, transform_indices = @transform_4, window_bounds = array<i64: 1, 512>}, {pipeline_mode = #tpu.pipeline_mode<synchronous>, transform_indices = @transform_5, window_bounds = array<i64: 512, 512>}, {pipeline_mode = #tpu.pipeline_mode<synchronous>, transform_indices = @transform_6, window_bounds = array<i64: 1, 512>}, {pipeline_mode = #tpu.pipeline_mode<synchronous>, transform_indices = @transform_7, window_bounds = array<i64: 512, 512>}, {pipeline_mode = #tpu.pipeline_mode<synchronous>, transform_indices = @transform_8, window_bounds = array<i64: 1, 512>}, {pipeline_mode = #tpu.pipeline_mode<synchronous>, transform_indices = @transform_9, window_bounds = array<i64: 512, 128>}, {pipeline_mode = #tpu.pipeline_mode<synchronous>, transform_indices = @transform_10, window_bounds = array<i64: 1, 128>}, {transform_indices = @transform_11, window_bounds = array<i64: 16, 128>}]} {
    %c0 = arith.constant 0 : index
    %c0_0 = arith.constant 0 : index
    %0 = vector.load %arg1[%c0, %c0_0] : memref<16x784xf32, #tpu.memory_space<vmem>>, vector<16x784xf32>
    %1 = arith.truncf %0 : vector<16x784xf32> to vector<16x784xbf16>
    %c0_1 = arith.constant 0 : index
    %c0_2 = arith.constant 0 : index
    %2 = vector.load %arg2[%c0_1, %c0_2] : memref<16x16xf32, #tpu.memory_space<vmem>>, vector<16x16xf32>
    %3 = arith.truncf %2 : vector<16x16xf32> to vector<16x16xbf16>
    %c0_3 = arith.constant 0 : index
    %c0_4 = arith.constant 0 : index
    %4 = vector.load %arg3[%c0_3, %c0_4] : memref<784x512xbf16, #tpu.memory_space<vmem>>, vector<784x512xbf16>
    %cst = arith.constant dense<0.000000e+00> : vector<16x512xf32>
    %5 = tpu.matmul %1, %4, %cst {dimension_numbers = #tpu.dot_dimension_numbers<[1], [0], [0], [1], [0, 0, 1, 1], [], []>} : vector<16x784xbf16>, vector<784x512xbf16>, vector<16x512xf32> -> vector<16x512xf32>
    %c0_5 = arith.constant 0 : index
    %c0_6 = arith.constant 0 : index
    %6 = vector.load %arg4[%c0_5, %c0_6] : memref<16x512xbf16, #tpu.memory_space<vmem>>, vector<16x512xbf16>
    %cst_7 = arith.constant dense<0.000000e+00> : vector<16x512xf32>
    %7 = tpu.matmul %3, %6, %cst_7 {dimension_numbers = #tpu.dot_dimension_numbers<[1], [0], [0], [1], [0, 0, 1, 1], [], []>} : vector<16x16xbf16>, vector<16x512xbf16>, vector<16x512xf32> -> vector<16x512xf32>
    %8 = arith.addf %5, %7 : vector<16x512xf32>
    %c0_8 = arith.constant 0 : index
    %c0_9 = arith.constant 0 : index
    %9 = vector.load %arg5[%c0_8, %c0_9] : memref<1x512xf32, #tpu.memory_space<vmem>>, vector<1x512xf32>
    %10 = vector.broadcast %9 : vector<1x512xf32> to vector<16x512xf32>
    %11 = arith.addf %8, %10 : vector<16x512xf32>
    %cst_10 = arith.constant 2.000000e-01 : f32
    %12 = vector.broadcast %cst_10 : f32 to vector<16x512xf32>
    %13 = arith.mulf %12, %11 : vector<16x512xf32>
    %14 = arith.maximumf %11, %13 : vector<16x512xf32>
    %15 = arith.truncf %14 : vector<16x512xf32> to vector<16x512xbf16>
    %c0_11 = arith.constant 0 : index
    %c0_12 = arith.constant 0 : index
    %16 = vector.load %arg6[%c0_11, %c0_12] : memref<512x512xbf16, #tpu.memory_space<vmem>>, vector<512x512xbf16>
    %cst_13 = arith.constant dense<0.000000e+00> : vector<16x512xf32>
    %17 = tpu.matmul %15, %16, %cst_13 {dimension_numbers = #tpu.dot_dimension_numbers<[1], [0], [0], [1], [0, 0, 1, 1], [], []>} : vector<16x512xbf16>, vector<512x512xbf16>, vector<16x512xf32> -> vector<16x512xf32>
    %c0_14 = arith.constant 0 : index
    %c0_15 = arith.constant 0 : index
    %18 = vector.load %arg7[%c0_14, %c0_15] : memref<1x512xf32, #tpu.memory_space<vmem>>, vector<1x512xf32>
    %19 = vector.broadcast %18 : vector<1x512xf32> to vector<16x512xf32>
    %20 = arith.addf %17, %19 : vector<16x512xf32>
    %cst_16 = arith.constant 2.000000e-01 : f32
    %21 = vector.broadcast %cst_16 : f32 to vector<16x512xf32>
    %22 = arith.mulf %21, %20 : vector<16x512xf32>
    %23 = arith.maximumf %20, %22 : vector<16x512xf32>
    %24 = arith.truncf %23 : vector<16x512xf32> to vector<16x512xbf16>
    %c0_17 = arith.constant 0 : index
    %c0_18 = arith.constant 0 : index
    %25 = vector.load %arg8[%c0_17, %c0_18] : memref<512x512xbf16, #tpu.memory_space<vmem>>, vector<512x512xbf16>
    %cst_19 = arith.constant dense<0.000000e+00> : vector<16x512xf32>
    %26 = tpu.matmul %24, %25, %cst_19 {dimension_numbers = #tpu.dot_dimension_numbers<[1], [0], [0], [1], [0, 0, 1, 1], [], []>} : vector<16x512xbf16>, vector<512x512xbf16>, vector<16x512xf32> -> vector<16x512xf32>
    %c0_20 = arith.constant 0 : index
    %c0_21 = arith.constant 0 : index
    %27 = vector.load %arg9[%c0_20, %c0_21] : memref<1x512xf32, #tpu.memory_space<vmem>>, vector<1x512xf32>
    %28 = vector.broadcast %27 : vector<1x512xf32> to vector<16x512xf32>
    %29 = arith.addf %26, %28 : vector<16x512xf32>
    %cst_22 = arith.constant 2.000000e-01 : f32
    %30 = vector.broadcast %cst_22 : f32 to vector<16x512xf32>
    %31 = arith.mulf %30, %29 : vector<16x512xf32>
    %32 = arith.maximumf %29, %31 : vector<16x512xf32>
    %33 = arith.truncf %32 : vector<16x512xf32> to vector<16x512xbf16>
    %c0_23 = arith.constant 0 : index
    %c0_24 = arith.constant 0 : index
    %34 = vector.load %arg10[%c0_23, %c0_24] : memref<512x128xbf16, #tpu.memory_space<vmem>>, vector<512x128xbf16>
    %cst_25 = arith.constant dense<0.000000e+00> : vector<16x128xf32>
    %35 = tpu.matmul %33, %34, %cst_25 {dimension_numbers = #tpu.dot_dimension_numbers<[1], [0], [0], [1], [0, 0, 1, 1], [], []>} : vector<16x512xbf16>, vector<512x128xbf16>, vector<16x128xf32> -> vector<16x128xf32>
    %c0_26 = arith.constant 0 : index
    %c0_27 = arith.constant 0 : index
    %36 = vector.load %arg11[%c0_26, %c0_27] : memref<1x128xf32, #tpu.memory_space<vmem>>, vector<1x128xf32>
    %37 = vector.broadcast %36 : vector<1x128xf32> to vector<16x128xf32>
    %38 = arith.addf %35, %37 : vector<16x128xf32>
    %39 = arith.negf %38 : vector<16x128xf32>
    %40 = math.exp %39 : vector<16x128xf32>
    %cst_28 = arith.constant 1.000000e+00 : f32
    %41 = vector.broadcast %cst_28 : f32 to vector<16x128xf32>
    %42 = arith.addf %41, %40 : vector<16x128xf32>
    %43 = arith.divf %41, %42 : vector<16x128xf32>
    %44 = arith.truncf %43 : vector<16x128xf32> to vector<16x128xbf16>
    %c0_29 = arith.constant 0 : index
    %c0_30 = arith.constant 0 : index
    %45 = vector.load %arg12[%c0_29, %c0_30] : memref<16x128xbf16, #tpu.memory_space<vmem>>, vector<16x128xbf16>
    tpu.vector_store %arg12[%c0_29, %c0_30], %44 {strides = array<i32>} : memref<16x128xbf16, #tpu.memory_space<vmem>>, vector<16x128xbf16>,
    return
  }
  func.func @transform_0(%arg0: i32) -> (i32, i32) {
    %c0_i32 = arith.constant 0 : i32
    %c0_i32_0 = arith.constant 0 : i32
    return %arg0, %c0_i32 : i32, i32
  }
  func.func @transform_1(%arg0: i32) -> (i32, i32) {
    %c0_i32 = arith.constant 0 : i32
    %c0_i32_0 = arith.constant 0 : i32
    return %arg0, %c0_i32 : i32, i32
  }
  func.func @transform_2(%arg0: i32) -> (i32, i32) {
    %c0_i32 = arith.constant 0 : i32
    %c0_i32_0 = arith.constant 0 : i32
    %c0_i32_1 = arith.constant 0 : i32
    return %c0_i32, %c0_i32_0 : i32, i32
  }
  func.func @transform_3(%arg0: i32) -> (i32, i32) {
    %c0_i32 = arith.constant 0 : i32
    %c0_i32_0 = arith.constant 0 : i32
    %c0_i32_1 = arith.constant 0 : i32
    return %c0_i32, %c0_i32_0 : i32, i32
  }
  func.func @transform_4(%arg0: i32) -> (i32, i32) {
    %c0_i32 = arith.constant 0 : i32
    %c0_i32_0 = arith.constant 0 : i32
    %c0_i32_1 = arith.constant 0 : i32
    return %c0_i32, %c0_i32_0 : i32, i32
  }
  func.func @transform_5(%arg0: i32) -> (i32, i32) {
    %c0_i32 = arith.constant 0 : i32
    %c0_i32_0 = arith.constant 0 : i32
    %c0_i32_1 = arith.constant 0 : i32
    return %c0_i32, %c0_i32_0 : i32, i32
  }
  func.func @transform_6(%arg0: i32) -> (i32, i32) {
    %c0_i32 = arith.constant 0 : i32
    %c0_i32_0 = arith.constant 0 : i32
    %c0_i32_1 = arith.constant 0 : i32
    return %c0_i32, %c0_i32_0 : i32, i32
  }
  func.func @transform_7(%arg0: i32) -> (i32, i32) {
    %c0_i32 = arith.constant 0 : i32
    %c0_i32_0 = arith.constant 0 : i32
    %c0_i32_1 = arith.constant 0 : i32
    return %c0_i32, %c0_i32_0 : i32, i32
  }
  func.func @transform_8(%arg0: i32) -> (i32, i32) {
    %c0_i32 = arith.constant 0 : i32
    %c0_i32_0 = arith.constant 0 : i32
    %c0_i32_1 = arith.constant 0 : i32
    return %c0_i32, %c0_i32_0 : i32, i32
  }
  func.func @transform_9(%arg0: i32) -> (i32, i32) {
    %c0_i32 = arith.constant 0 : i32
    %c0_i32_0 = arith.constant 0 : i32
    %c0_i32_1 = arith.constant 0 : i32
    return %c0_i32, %c0_i32_0 : i32, i32
  }
  func.func @transform_10(%arg0: i32) -> (i32, i32) {
    %c0_i32 = arith.constant 0 : i32
    %c0_i32_0 = arith.constant 0 : i32
    %c0_i32_1 = arith.constant 0 : i32
    return %c0_i32, %c0_i32_0 : i32, i32
  }
  func.func @transform_11(%arg0: i32) -> (i32, i32) {
    %c0_i32 = arith.constant 0 : i32
    %c0_i32_0 = arith.constant 0 : i32
    return %arg0, %c0_i32 : i32, i32
  }
}

</mosaic_0001>

<bundles_post_ra>
// kernel: discriminator_forward.1
= control target key start
LH: loop header
LB: loop body
LE: loop exit
PB: predicated region body
PF: predicated region fallthrough
CT: control target
= control target key end

     0   :  { %16 = vsyncpa [#allocation3], 0  ;;  %s7274_s0 = inlined_call_operand.vmem [shape: f32[2,784], index: 0, kind: input, shape index: {}]   ;;  %s7275_s1 = inlined_call_operand.vmem [shape: f32[2,16], index: 1, kind: input, shape index: {}]   ;;  %s7276_s2 = inlined_call_operand.hbm [shape: bf16[784,512], index: 2, kind: input, shape index: {}]   ;;  %s7277_s3 = inlined_call_operand.vmem [shape: bf16[16,512], index: 3, kind: input, shape index: {}]   ;;  %s7278_s4 = inlined_call_operand.vmem [shape: f32[1,512], index: 4, kind: input, shape index: {}]   ;;  %s7279_s5 = inlined_call_operand.hbm [shape: bf16[512,512], index: 5, kind: input, shape index: {}]   ;;  %s7280_s6 = inlined_call_operand.vmem [shape: f32[1,512], index: 6, kind: input, shape index: {}]   ;;  %s7281_s7 = inlined_call_operand.hbm [shape: bf16[512,512], index: 7, kind: input, shape index: {}]   ;;  %s7282_s8 = inlined_call_operand.vmem [shape: f32[1,512], index: 8, kind: input, shape index: {}]   ;;  %s7283_s9 = inlined_call_operand.hbm [shape: bf16[512,128], index: 9, kind: input, shape index: {}]   ;;  %s7284_s10 = inlined_call_operand.vmem [shape: f32[1,128], index: 10, kind: input, shape index: {}]   ;;  %s7285_s11 = inlined_call_operand.vmem [shape: bf16[2,128], index: 11, kind: output, shape index: {}]  }
   0x1   :  { %17 = vsyncpa [#allocation5], 0 }
   0x2   :  { %18 = vsyncpa [#allocation8], 0  ;;  %s44_s19 = sshll.u32 %s7279_s5, 4  ;;  %s6949_s20 = smov [#allocation4]   ;;  %s45_s19 = int_to_ptr.hbm [resolvable:$true] %s44_s19 }
   0x3   :  { %s46_s21 = sshll.u32 %s6949_s20, 4  ;;  %s27_s24 = sshll.u32 %s7276_s2, 4  ;;  %s47_s21 = int_to_ptr.vmem [resolvable:$true] %s46_s21  ;;  %s28_s24 = int_to_ptr.hbm [resolvable:$true] %s27_s24 }
   0x4   :  { %s6950_s25 = smov 256   ;;  %s6951_s26 = smov 16  }
   0x5   :  { %52 = dma.hbm_to_vmem [thread:$0]  %s45_s19, 16384, %s47_s21, [#allocation5], %s6950_s25, %s6950_s25, %s6951_s26  }
   0x6   :  { %s6952_s27 = smov [#allocation2]   ;;  %s59_s12 = sshll.u32 %s7281_s7, 4  ;;  %s60_s12 = int_to_ptr.hbm [resolvable:$true] %s59_s12 }
   0x7   :  { %s29_s28 = sshll.u32 %s6952_s27, 4  ;;  %s74_s14 = sshll.u32 %s7283_s9, 4  ;;  %s30_s28 = int_to_ptr.vmem [resolvable:$true] %s29_s28  ;;  %s75_s14 = int_to_ptr.hbm [resolvable:$true] %s74_s14 }
   0x8   :  { %35 = dma.hbm_to_vmem [thread:$0]  %s28_s24, 25088, %s30_s28, [#allocation3], %s6950_s25, %s6950_s25, %s6951_s26  }
   0x9   :  { %s6953_s15 = smov [#allocation6]   ;;  %s6954_s2 = smov [#allocation7]  }
   0xa   :  { %s61_s16 = sshll.u32 %s6953_s15, 4  ;;  %s76_s17 = sshll.u32 %s6954_s2, 4  ;;  %s62_s16 = int_to_ptr.vmem [resolvable:$true] %s61_s16  ;;  %s77_s17 = int_to_ptr.vmem [resolvable:$true] %s76_s17 }
   0xb   :  { %67 = dma.hbm_to_vmem [thread:$0]  %s60_s12, 16384, %s62_s16, [#allocation5], %s6950_s25, %s6950_s25, %s6951_s26  }
   0xc   :  { %s6955_s18 = smov 64   ;;  %s6956_s19 = smov 4  }
   0xd   :  { %82 = dma.hbm_to_vmem [thread:$0]  %s75_s14, 4096, %s77_s17, [#allocation8], %s6955_s18, %s6955_s18, %s6956_s19  }
   0xe   :  { %6943 = dma.done.wait [#allocation3], 25088  }
   0xf   :  { %6944 = vsyncadd [#allocation3], 4294942208 }
  0x10   :  { %6945 = dma.done.wait [#allocation5], 32768  }
  0x11   :  { %6946 = vsyncadd [#allocation5], 4294934528 }
  0x12   :  { %6947 = dma.done.wait [#allocation8], 4096  }
  0x13   :  { %6948 = vsyncadd [#allocation8], 4294963200  ;;  %v4382_v0 = vld [vmem:[%s7277_s3] sm:$0xf]  ;;  %v6540_v1 = vld [vmem:[%s7277_s3 + $0xc] sm:$0xf0] }
  0x14   :  { %v6538_v2 = vld [vmem:[%s7277_s3 + $0x4] sm:$0xf]  ;;  %v4383_v3 = vor.u32 %v6540_v1, %v4382_v0  ;;  %v4384_v4 = vld [vmem:[%s7277_s3 + $0x10] sm:$0xf0]  ;;  %v4390_v5 = vld [vmem:[%s7277_s3 + $0x8] sm:$0xf] }
  0x15   :  { %v6541_v6 = vld [vmem:[%s7277_s3 + $0x14] sm:$0xf0]  ;;  %v4387_v7 = vor.u32 %v6538_v2, %v4384_v4  ;;  %v6539_v9 = vld [vmem:[%s7277_s3 + $0xc] sm:$0xf]  ;;  %v4392_v10 = vld [vmem:[%s7277_s3 + $0x18] sm:$0xf0] }
  0x16   :  { %v4391_v8 = vor.u32 %v6541_v6, %v4390_v5  ;;  %v4514_v11 = vld [vmem:[#allocation2 + $0xe0] sm:$0xf]  ;;  %426 = vmatpush.bf16.msra.mxu0 %v4383_v3  ;;  %v4395_v12 = vor.u32 %v6539_v9, %v4392_v10  ;;  %v6372_v13 = vld [vmem:[#allocation2 + $0xec] sm:$0xf0]  ;;  %v192_v46 = vld [vmem:[%s7275_s1] sm:$0xff]  ;;  %vm415_vm0 = vcmask 130048  }
  0x17   :  { %v4642_v14 = vld [vmem:[#allocation2 + $0x1e0] sm:$0xf]  ;;  %v6404_v15 = vld [vmem:[#allocation2 + $0x1ec] sm:$0xf0]  ;;  %440 = vmatpush.bf16.msra.mxu1 %v4387_v7  ;;  %v4515_v16 = vor.u32 %v6372_v13, %v4514_v11  ;;  %vm4292_vm5 = vcmask 1040384  }
  0x18   :  { %454 = vmatpush.bf16.msra.mxu2 %v4391_v8  ;;  %v4643_v17 = vor.u32 %v6404_v15, %v4642_v14  ;;  %v4770_v18 = vld [vmem:[#allocation2 + $0x2e0] sm:$0xf]  ;;  %v6436_v19 = vld [vmem:[#allocation2 + $0x2ec] sm:$0xf0]  ;;  %468 = vmatpush.bf16.msra.mxu3 %v4395_v12 }
  0x19   :  { %v4898_v20 = vld [vmem:[#allocation2 + $0x3e0] sm:$0xf]  ;;  %v4771_v21 = vor.u32 %v6436_v19, %v4770_v18  ;;  %v6468_v22 = vld [vmem:[#allocation2 + $0x3ec] sm:$0xf0] }
  0x1a   :  { %v4498_v23 = vld [vmem:[#allocation2 + $0xc0] sm:$0xf]  ;;  %v6368_v24 = vld [vmem:[#allocation2 + $0xcc] sm:$0xf0]  ;;  %1458 = vmatpush.bf16.msrb.mxu0 %v4515_v16  ;;  %v4899_v25 = vor.u32 %v6468_v22, %v4898_v20 }
  0x1b   :  { %1472 = vmatpush.bf16.msrb.mxu1 %v4643_v17  ;;  %v4499_v26 = vor.u32 %v6368_v24, %v4498_v23  ;;  %v4626_v27 = vld [vmem:[#allocation2 + $0x1c0] sm:$0xf]  ;;  %v6400_v28 = vld [vmem:[#allocation2 + $0x1cc] sm:$0xf0] }
  0x1c   :  { %v4754_v29 = vld [vmem:[#allocation2 + $0x2c0] sm:$0xf]  ;;  %1486 = vmatpush.bf16.msrb.mxu2 %v4771_v21  ;;  %v4627_v30 = vor.u32 %v6400_v28, %v4626_v27  ;;  %v6432_v31 = vld [vmem:[#allocation2 + $0x2cc] sm:$0xf0]  ;;  %1500 = vmatpush.bf16.msrb.mxu3 %v4899_v25 }
  0x1d   :  { %v4882_v32 = vld [vmem:[#allocation2 + $0x3c0] sm:$0xf]  ;;  %v6464_v33 = vld [vmem:[#allocation2 + $0x3cc] sm:$0xf0]  ;;  %v4755_v34 = vor.u32 %v6432_v31, %v4754_v29 }
  0x1e   :  { %v4883_v35 = vor.u32 %v6464_v33, %v4882_v32  ;;  %v4482_v36 = vld [vmem:[#allocation2 + $0xa0] sm:$0xf]  ;;  %v6364_v37 = vld [vmem:[#allocation2 + $0xac] sm:$0xf0]  ;;  %1459 = vmatpush.bf16.msrb.mxu0 %v4499_v26 }
  0x1f   :  { %v4610_v38 = vld [vmem:[#allocation2 + $0x1a0] sm:$0xf]  ;;  %v6396_v39 = vld [vmem:[#allocation2 + $0x1ac] sm:$0xf0]  ;;  %1473 = vmatpush.bf16.msrb.mxu1 %v4627_v30  ;;  %v4483_v42 = vor.u32 %v6364_v37, %v4482_v36 }
  0x20   :  { %v4738_v40 = vld [vmem:[#allocation2 + $0x2a0] sm:$0xf]  ;;  %v6428_v41 = vld [vmem:[#allocation2 + $0x2ac] sm:$0xf0]  ;;  %v4611_v43 = vor.u32 %v6396_v39, %v4610_v38  ;;  %1487 = vmatpush.bf16.msrb.mxu2 %v4755_v34  ;;  %1501 = vmatpush.bf16.msrb.mxu3 %v4883_v35 }
  0x21   :  { %v4866_v44 = vld [vmem:[#allocation2 + $0x3a0] sm:$0xf]  ;;  %v6460_v45 = vld [vmem:[#allocation2 + $0x3ac] sm:$0xf0]  ;;  %v4739_v47 = vor.u32 %v6428_v41, %v4738_v40  ;;  %v102_v41 = vld [vmem:[%s7274_s0] sm:$0xff] }
  0x22   :  { %v193_v48 = vld [vmem:[%s7275_s1 + $0x8] sm:$0xff]  ;;  %v6360_v50 = vld [vmem:[#allocation2 + $0x8c] sm:$0xf0]  ;;  %v4867_v51 = vor.u32 %v6460_v45, %v4866_v44  ;;  %1460 = vmatpush.bf16.msrb.mxu0 %v4483_v42  ;;  %134 = vst [vmem:[#allocation1] ss:$4 sm:$0xff] %v102_v41 }
  0x23   :  { %v4466_v49 = vld [vmem:[#allocation2 + $0x80] sm:$0xf]  ;;  %v194_v52 = vpack.c.bf16 %v193_v48, %v192_v46  ;;  %v6392_v54 = vld [vmem:[#allocation2 + $0x18c] sm:$0xf0]  ;;  %1474 = vmatpush.bf16.msrb.mxu1 %v4611_v43  ;;  %v104_v45 = vld [vmem:[%s7274_s0 + $0xe] sm:$0xff] }
  0x24   :  { %v4594_v53 = vld [vmem:[#allocation2 + $0x180] sm:$0xf]  ;;  %v6424_v56 = vld [vmem:[#allocation2 + $0x28c] sm:$0xf0]  ;;  %v4467_v59 = vor.u32 %v6360_v50, %v4466_v49  ;;  %1488 = vmatpush.bf16.msrb.mxu2 %v4739_v47  ;;  %1502 = vmatpush.bf16.msrb.mxu3 %v4867_v51  ;;  %v106_v46 = vld [vmem:[%s7274_s0 + $0x1c] sm:$0xff] }
  0x25   :  { %v4722_v55 = vld [vmem:[#allocation2 + $0x280] sm:$0xf]  ;;  %v6456_v58 = vld [vmem:[#allocation2 + $0x38c] sm:$0xf0]  ;;  %v4595_v60 = vor.u32 %v6392_v54, %v4594_v53  ;;  %4396 = vmatmul.msk.bf16.vlgmr.msra.gmra.mxu0 %vm415_vm0, %v194_v52  ;;  %4398 = vmatmul.msk.bf16.vlgmr.msra.gmra.mxu2 %vm415_vm0, %v194_v52  ;;  %136 = vst [vmem:[#allocation1 + $0x1] ss:$4 sm:$0xff] %v104_v45 }
  0x26   :  { %v4850_v57 = vld [vmem:[#allocation2 + $0x380] sm:$0xf]  ;;  %v4723_v62 = vor.u32 %v6424_v56, %v4722_v55  ;;  %v6356_v63 = vld [vmem:[#allocation2 + $0x6c] sm:$0xf0]  ;;  %4399 = vmatmul.msk.bf16.vlgmr.msra.gmra.mxu3 %vm415_vm0, %v194_v52  ;;  %4397 = vmatmul.msk.bf16.vlgmr.msra.gmra.mxu1 %vm415_vm0, %v194_v52  ;;  %v6370_v51 = vld [vmem:[#allocation2 + $0xe4] sm:$0xf] }
  0x27   :  { %v4450_v61 = vld [vmem:[#allocation2 + $0x60] sm:$0xf]  ;;  %v6388_v1 = vld [vmem:[#allocation2 + $0x16c] sm:$0xf0]  ;;  %v4851_v2 = vor.u32 %v6456_v58, %v4850_v57  ;;  %1461 = vmatpush.bf16.msrb.mxu0 %v4467_v59  ;;  %1475 = vmatpush.bf16.msrb.mxu1 %v4595_v60  ;;  %v4516_v52 = vld [vmem:[#allocation2 + $0xf0] sm:$0xf0] }
  0x28   :  { %v4578_v0 = vld [vmem:[#allocation2 + $0x160] sm:$0xf]  ;;  %v6420_v4 = vld [vmem:[#allocation2 + $0x26c] sm:$0xf0]  ;;  %v4451_v7 = vor.u32 %v6356_v63, %v4450_v61  ;;  %1489 = vmatpush.bf16.msrb.mxu2 %v4723_v62  ;;  %138 = vst [vmem:[#allocation1 + $0x2] ss:$4 sm:$0xff] %v106_v46  ;;  %v4519_v63 = vor.u32 %v6370_v51, %v4516_v52 }
  0x29   :  { %v4706_v3 = vld [vmem:[#allocation2 + $0x260] sm:$0xf]  ;;  %v6452_v6 = vld [vmem:[#allocation2 + $0x36c] sm:$0xf0]  ;;  %v4579_v8 = vor.u32 %v6388_v1, %v4578_v0  ;;  %1503 = vmatpush.bf16.msrb.mxu3 %v4851_v2  ;;  %v6398_v46 = vld [vmem:[#allocation2 + $0x1c4] sm:$0xf] }
  0x2a   :  { %v4834_v5 = vld [vmem:[#allocation2 + $0x360] sm:$0xf]  ;;  %v4707_v10 = vor.u32 %v6420_v4, %v4706_v3  ;;  %v6352_v11 = vld [vmem:[#allocation2 + $0x4c] sm:$0xf0]  ;;  %v6366_v4 = vld [vmem:[#allocation2 + $0xc4] sm:$0xf] }
  0x2b   :  { %v4434_v9 = vld [vmem:[#allocation2 + $0x40] sm:$0xf]  ;;  %v6384_v13 = vld [vmem:[#allocation2 + $0x14c] sm:$0xf0]  ;;  %v4835_v14 = vor.u32 %v6452_v6, %v4834_v5  ;;  %1462 = vmatpush.bf16.msrb.mxu0 %v4451_v7  ;;  %1476 = vmatpush.bf16.msrb.mxu1 %v4579_v8  ;;  %v4500_v5 = vld [vmem:[#allocation2 + $0xd0] sm:$0xf0] }
  0x2c   :  { %v4562_v12 = vld [vmem:[#allocation2 + $0x140] sm:$0xf]  ;;  %v6416_v16 = vld [vmem:[#allocation2 + $0x24c] sm:$0xf0]  ;;  %v4435_v19 = vor.u32 %v6352_v11, %v4434_v9  ;;  %1490 = vmatpush.bf16.msrb.mxu2 %v4707_v10 }
  0x2d   :  { %v4690_v15 = vld [vmem:[#allocation2 + $0x240] sm:$0xf]  ;;  %v6448_v18 = vld [vmem:[#allocation2 + $0x34c] sm:$0xf0]  ;;  %v4563_v20 = vor.u32 %v6384_v13, %v4562_v12  ;;  %1504 = vmatpush.bf16.msrb.mxu3 %v4835_v14  ;;  %v6362_v14 = vld [vmem:[#allocation2 + $0xa4] sm:$0xf] }
  0x2e   :  { %v4818_v17 = vld [vmem:[#allocation2 + $0x340] sm:$0xf]  ;;  %v6348_v22 = vld [vmem:[#allocation2 + $0x2c] sm:$0xf0]  ;;  %v4691_v23 = vor.u32 %v6416_v16, %v4690_v15  ;;  %v4484_v15 = vld [vmem:[#allocation2 + $0xb0] sm:$0xf0] }
  0x2f   :  { %v4418_v21 = vld [vmem:[#allocation2 + $0x20] sm:$0xf]  ;;  %v6380_v25 = vld [vmem:[#allocation2 + $0x12c] sm:$0xf0]  ;;  %v4819_v27 = vor.u32 %v6448_v18, %v4818_v17  ;;  %1463 = vmatpush.bf16.msrb.mxu0 %v4435_v19  ;;  %1477 = vmatpush.bf16.msrb.mxu1 %v4563_v20  ;;  %v4503_v18 = vor.u32 %v6366_v4, %v4500_v5  ;;  %v4436_v4 = vld [vmem:[#allocation2 + $0x50] sm:$0xf0] }
  0x30   :  { %v4546_v24 = vld [vmem:[#allocation2 + $0x120] sm:$0xf]  ;;  %v6412_v28 = vld [vmem:[#allocation2 + $0x22c] sm:$0xf0]  ;;  %v4419_v35 = vor.u32 %v6348_v22, %v4418_v21  ;;  %1491 = vmatpush.bf16.msrb.mxu2 %v4691_v23  ;;  %v4612_v5 = vld [vmem:[#allocation2 + $0x1b0] sm:$0xf0] }
  0x31   :  { %v4674_v26 = vld [vmem:[#allocation2 + $0x220] sm:$0xf]  ;;  %v6444_v30 = vld [vmem:[#allocation2 + $0x32c] sm:$0xf0]  ;;  %v4547_v36 = vor.u32 %v6380_v25, %v4546_v24  ;;  %1505 = vmatpush.bf16.msrb.mxu3 %v4819_v27 }
  0x32   :  { %v4802_v29 = vld [vmem:[#allocation2 + $0x320] sm:$0xf]  ;;  %v6344_v32 = vld [vmem:[#allocation2 + $0xc] sm:$0xf0]  ;;  %v4675_v42 = vor.u32 %v6412_v28, %v4674_v26  ;;  %v4487_v26 = vor.u32 %v6362_v14, %v4484_v15  ;;  %v4596_v14 = vld [vmem:[#allocation2 + $0x190] sm:$0xf0] }
  0x33   :  { %v4402_v31 = vld [vmem:[#allocation2] sm:$0xf]  ;;  %v6376_v34 = vld [vmem:[#allocation2 + $0x10c] sm:$0xf0]  ;;  %v4803_v48 = vor.u32 %v6444_v30, %v4802_v29  ;;  %1464 = vmatpush.bf16.msrb.mxu0 %v4419_v35  ;;  %1478 = vmatpush.bf16.msrb.mxu1 %v4547_v36  ;;  %v6358_v29 = vld [vmem:[#allocation2 + $0x84] sm:$0xf] }
  0x34   :  { %v4530_v33 = vld [vmem:[#allocation2 + $0x100] sm:$0xf]  ;;  %v6408_v38 = vld [vmem:[#allocation2 + $0x20c] sm:$0xf0]  ;;  %v4403_v53 = vor.u32 %v6344_v32, %v4402_v31  ;;  %1492 = vmatpush.bf16.msrb.mxu2 %v4675_v42  ;;  %v4468_v30 = vld [vmem:[#allocation2 + $0x90] sm:$0xf0] }
  0x35   :  { %v4658_v37 = vld [vmem:[#allocation2 + $0x200] sm:$0xf]  ;;  %v6500_v40 = vld [vmem:[#allocation2 + $0x4ec] sm:$0xf0]  ;;  %v4531_v54 = vor.u32 %v6376_v34, %v4530_v33  ;;  %1506 = vmatpush.bf16.msrb.mxu3 %v4803_v48  ;;  %v6402_v36 = vld [vmem:[#allocation2 + $0x1e4] sm:$0xf] }
  0x36   :  { %v5026_v39 = vld [vmem:[#allocation2 + $0x4e0] sm:$0xf]  ;;  %v6440_v44 = vld [vmem:[#allocation2 + $0x30c] sm:$0xf0]  ;;  %v4659_v57 = vor.u32 %v6408_v38, %v4658_v37  ;;  %v4644_v37 = vld [vmem:[#allocation2 + $0x1f0] sm:$0xf0]  ;;  %v4471_v38 = vor.u32 %v6358_v29, %v4468_v30 }
  0x37   :  { %v4786_v43 = vld [vmem:[#allocation2 + $0x300] sm:$0xf]  ;;  %v6532_v50 = vld [vmem:[#allocation2 + $0x5ec] sm:$0xf0]  ;;  %v5027_v58 = vor.u32 %v6500_v40, %v5026_v39  ;;  %1465 = vmatpush.bf16.msrb.mxu0 %v4403_v53  ;;  %1479 = vmatpush.bf16.msrb.mxu1 %v4531_v54  ;;  %v6354_v42 = vld [vmem:[#allocation2 + $0x64] sm:$0xf]  ;;  %v4647_v52 = vor.u32 %v6402_v36, %v4644_v37 }
  0x38   :  { %v108_v47 = vld [vmem:[%s7274_s0 + $0x2a] sm:$0xff]  ;;  %v6536_v56 = vld [vmem:[#allocation2 + $0x60c] sm:$0xf0]  ;;  %v4787_v59 = vor.u32 %v6440_v44, %v4786_v43  ;;  %1493 = vmatpush.bf16.msrb.mxu2 %v4659_v57  ;;  %v116_v21 = vld [vmem:[%s7274_s0 + $0x62] sm:$0xff] }
  0x39   :  { %v5154_v49 = vld [vmem:[#allocation2 + $0x5e0] sm:$0xf]  ;;  %140 = vst [vmem:[#allocation1 + $0x3] ss:$4 sm:$0xff] %v108_v47  ;;  %v6496_v62 = vld [vmem:[#allocation2 + $0x4cc] sm:$0xf0] }
  0x3a   :  { %v5170_v55 = vld [vmem:[#allocation2 + $0x600] sm:$0xf]  ;;  %v5155_v60 = vor.u32 %v6532_v50, %v5154_v49  ;;  %v6528_v2 = vld [vmem:[#allocation2 + $0x5cc] sm:$0xf0]  ;;  %1507 = vmatpush.bf16.msrb.mxu3 %v4787_v59  ;;  %v4452_v44 = vld [vmem:[#allocation2 + $0x70] sm:$0xf0] }
  0x3b   :  { %v5010_v61 = vld [vmem:[#allocation2 + $0x4c0] sm:$0xf]  ;;  %v5171_v0 = vor.u32 %v6536_v56, %v5170_v55  ;;  %v110_v3 = vld [vmem:[%s7274_s0 + $0x38] sm:$0xff]  ;;  %1514 = vmatpush.bf16.msra.mxu0 %v5027_v58  ;;  %v109_v48 = vld [vmem:[%s7274_s0 + $0x32] sm:$0x3f]  ;;  %v4455_v57 = vor.u32 %v6354_v42, %v4452_v44 }
  0x3c   :  { %v5138_v1 = vld [vmem:[#allocation2 + $0x5c0] sm:$0xf]  ;;  %v5011_v7 = vor.u32 %v6496_v62, %v5010_v61  ;;  %v6492_v9 = vld [vmem:[#allocation2 + $0x4ac] sm:$0xf0]  ;;  %1528 = vmatpush.bf16.msra.mxu1 %v5155_v60  ;;  %v4628_v47 = vld [vmem:[#allocation2 + $0x1d0] sm:$0xf0] }
  0x3d   :  { %v112_v6 = vld [vmem:[%s7274_s0 + $0x46] sm:$0xff]  ;;  %v114_v11 = vld [vmem:[%s7274_s0 + $0x54] sm:$0xff]  ;;  %v5139_v12 = vor.u32 %v6528_v2, %v5138_v1  ;;  %1549 = vmatpush.bf16.msra.mxu2 %v5171_v0  ;;  %148 = vst [vmem:[#allocation1 + $0x23] ss:$4 sm:$0xff] %v109_v48  ;;  %v4631_v2 = vor.u32 %v6398_v46, %v4628_v47  ;;  %v4580_v36 = vld [vmem:[#allocation2 + $0x170] sm:$0xf0] }
  0x3e   :  { %v4994_v8 = vld [vmem:[#allocation2 + $0x4a0] sm:$0xf]  ;;  %v6524_v13 = vld [vmem:[#allocation2 + $0x5ac] sm:$0xf0]  ;;  %1556 = vmatpush.bf16.msra.mxu3 %v4519_v63  ;;  %v6350_v1 = vld [vmem:[#allocation2 + $0x44] sm:$0xf] }
  0x3f   :  { %v5122_v10 = vld [vmem:[#allocation2 + $0x5a0] sm:$0xf]  ;;  %1515 = vmatpush.bf16.msra.mxu0 %v5011_v7  ;;  %v4995_v22 = vor.u32 %v6492_v9, %v4994_v8  ;;  %v6488_v25 = vld [vmem:[#allocation2 + $0x48c] sm:$0xf0]  ;;  %v4772_v37 = vld [vmem:[#allocation2 + $0x2f0] sm:$0xf0] }
  0x40   :  { %v149_v16 = vld.sshfl [vmem:[#allocation1] sm:$0xff pattern:$0x73625140]  ;;  %v150_v17 = vld.sshfl [vmem:[#allocation1 + $0x8] sm:$0xff pattern:$0x73625140]  ;;  %1529 = vmatpush.bf16.msra.mxu1 %v5139_v12  ;;  %v5123_v23 = vor.u32 %v6524_v13, %v5122_v10 }
  0x41   :  { %v151_v19 = vld.sshfl [vmem:[#allocation1 + $0x10] sm:$0xff pattern:$0x73625140]  ;;  %v152_v20 = vld.sshfl [vmem:[#allocation1 + $0x18] sm:$0xff pattern:$0x73625140] }
  0x42   :  { %156 = vst [vmem:[#allocation1] ss:$4 sm:$0xff] %v110_v3  ;;  %v4978_v24 = vld [vmem:[#allocation2 + $0x480] sm:$0xf]  ;;  %1557 = vmatpush.bf16.msra.mxu3 %v4503_v18  ;;  %v6520_v28 = vld [vmem:[#allocation2 + $0x58c] sm:$0xf0] }
  0x43   :  { %157 = vst [vmem:[#allocation1 + $0x1] ss:$4 sm:$0xff] %v112_v6  ;;  %v5106_v27 = vld [vmem:[#allocation2 + $0x580] sm:$0xf]  ;;  %1516 = vmatpush.bf16.msra.mxu0 %v4995_v22  ;;  %v4979_v31 = vor.u32 %v6488_v25, %v4978_v24  ;;  %v6484_v34 = vld [vmem:[#allocation2 + $0x46c] sm:$0xf0]  ;;  %v4439_v6 = vor.u32 %v6350_v1, %v4436_v4 }
  0x44   :  { %158 = vst [vmem:[#allocation1 + $0x2] ss:$4 sm:$0xff] %v114_v11  ;;  %1530 = vmatpush.bf16.msra.mxu1 %v5123_v23  ;;  %v5107_v32 = vor.u32 %v6520_v28, %v5106_v27  ;;  %v4962_v33 = vld [vmem:[#allocation2 + $0x460] sm:$0xf]  ;;  %v105_v39 = vld [vmem:[%s7274_s0 + $0x16] sm:$0x3f] }
  0x45   :  { %159 = vst [vmem:[#allocation1 + $0x3] ss:$4 sm:$0xff] %v116_v21  ;;  %v103_v35 = vld [vmem:[%s7274_s0 + $0x8] sm:$0x3f]  ;;  %v6516_v41 = vld [vmem:[#allocation2 + $0x56c] sm:$0xf0]  ;;  %v4963_v43 = vor.u32 %v6484_v34, %v4962_v33 }
  0x46   :  { %1558 = vmatpush.bf16.msra.mxu3 %v4487_v26  ;;  %v5090_v40 = vld [vmem:[#allocation2 + $0x560] sm:$0xf]  ;;  %142 = vst [vmem:[#allocation1 + $0x20] ss:$4 sm:$0xff] %v103_v35  ;;  %v6480_v61 = vld [vmem:[#allocation2 + $0x44c] sm:$0xf0] }
  0x47   :  { %1517 = vmatpush.bf16.msra.mxu0 %v4979_v31  ;;  %v107_v45 = vld [vmem:[%s7274_s0 + $0x24] sm:$0x3f]  ;;  %144 = vst [vmem:[#allocation1 + $0x21] ss:$4 sm:$0xff] %v105_v39  ;;  %v5091_v60 = vor.u32 %v6516_v41, %v5090_v40  ;;  %v6512_v0 = vld [vmem:[#allocation2 + $0x54c] sm:$0xf0] }
  0x48   :  { %1531 = vmatpush.bf16.msra.mxu1 %v5107_v32  ;;  %v4946_v49 = vld [vmem:[#allocation2 + $0x440] sm:$0xf]  ;;  %146 = vst [vmem:[#allocation1 + $0x22] ss:$4 sm:$0xff] %v107_v45  ;;  %v6394_v3 = vld [vmem:[#allocation2 + $0x1a4] sm:$0xf] }
  0x49   :  { %v5074_v62 = vld [vmem:[#allocation2 + $0x540] sm:$0xf]  ;;  %v4947_v63 = vor.u32 %v6480_v61, %v4946_v49  ;;  %v6476_v8 = vld [vmem:[#allocation2 + $0x42c] sm:$0xf0]  ;;  %v6346_v11 = vld [vmem:[#allocation2 + $0x24] sm:$0xf]  ;;  %v4615_v18 = vor.u32 %v6394_v3, %v4612_v5 }
  0x4a   :  { %1559 = vmatpush.bf16.msra.mxu3 %v4471_v38  ;;  %v4930_v7 = vld [vmem:[#allocation2 + $0x420] sm:$0xf]  ;;  %v5075_v9 = vor.u32 %v6512_v0, %v5074_v62  ;;  %v4420_v12 = vld [vmem:[#allocation2 + $0x30] sm:$0xf0]  ;;  %v6390_v13 = vld [vmem:[#allocation2 + $0x184] sm:$0xf] }
  0x4b   :  { %1518 = vmatpush.bf16.msra.mxu0 %v4963_v43  ;;  %v4931_v10 = vor.u32 %v6476_v8, %v4930_v7  ;;  %v5058_v15 = vld [vmem:[#allocation2 + $0x520] sm:$0xf]  ;;  %v6472_v21 = vld [vmem:[#allocation2 + $0x40c] sm:$0xf0]  ;;  %v115_v22 = vld [vmem:[%s7274_s0 + $0x5c] sm:$0x3f]  ;;  %v4423_v23 = vor.u32 %v6346_v11, %v4420_v12  ;;  %v4599_v38 = vor.u32 %v6390_v13, %v4596_v14 }
  0x4c   :  { %v166_v50 = vld.sshfl [vmem:[#allocation1 + $0x10] sm:$0xff pattern:$0x73625140]  ;;  %v164_v51 = vld.sshfl [vmem:[#allocation1] sm:$0xff pattern:$0x73625140]  ;;  %1532 = vmatpush.bf16.msra.mxu1 %v5091_v60 }
  0x4d   :  { %v7099_v53 = vpack.c.bf16 %v166_v50, %v151_v19  ;;  %v7101_v54 = vpack.c.bf16 %v164_v51, %v149_v16  ;;  %v167_v55 = vld.sshfl [vmem:[#allocation1 + $0x18] sm:$0xff pattern:$0x73625140]  ;;  %v165_v56 = vld.sshfl [vmem:[#allocation1 + $0x8] sm:$0xff pattern:$0x73625140] }
  0x4e   :  { %v7103_v58 = vpack.c.bf16 %v167_v55, %v152_v20  ;;  %v7105_v59 = vpack.c.bf16 %v165_v56, %v150_v17  ;;  %1560 = vmatpush.bf16.msra.mxu3 %v4455_v57  ;;  %v6508_v16 = vld [vmem:[#allocation2 + $0x52c] sm:$0xf0]  ;;  %v4914_v17 = vld [vmem:[#allocation2 + $0x400] sm:$0xf]  ;;  %v111_v19 = vld [vmem:[%s7274_s0 + $0x40] sm:$0x3f] }
  0x4f   :  { %1494 = vmatmul.bf16.vlgmr.msrb.gmra.mxu2 %v7099_v53  ;;  %1466 = vmatmul.bf16.vlgmr.msrb.gmra.mxu0 %v7101_v54  ;;  %v113_v20 = vld [vmem:[%s7274_s0 + $0x4e] sm:$0x3f]  ;;  %v5042_v24 = vld [vmem:[#allocation2 + $0x500] sm:$0xf]  ;;  %v6504_v25 = vld [vmem:[#allocation2 + $0x50c] sm:$0xf0]  ;;  %v5059_v32 = vor.u32 %v6508_v16, %v5058_v15  ;;  %v4915_v33 = vor.u32 %v6472_v21, %v4914_v17 }
  0x50   :  { %1570 = vmatpush.bf16.msrb.mxu2 %v4647_v52  ;;  %1508 = vmatmul.bf16.vlgmr.msrb.gmra.mxu3 %v7103_v58  ;;  %v6342_v26 = vld [vmem:[#allocation2 + $0x4] sm:$0xf]  ;;  %v4404_v27 = vld [vmem:[#allocation2 + $0x10] sm:$0xf0]  ;;  %v5043_v45 = vor.u32 %v6504_v25, %v5042_v24 }
  0x51   :  { %1480 = vmatmul.bf16.vlgmr.msrb.gmra.mxu1 %v7105_v59  ;;  %1519 = vmatpush.bf16.msra.mxu0 %v4947_v63  ;;  %v6434_v28 = vld [vmem:[#allocation2 + $0x2e4] sm:$0xf]  ;;  %v7123_v30 = vld.sshfl [vmem:[#allocation1 + $0x20] sm:$0xff pattern:$0x73625140]  ;;  %v4407_v42 = vor.u32 %v6342_v26, %v4404_v27 }
  0x52   :  { %1561 = vmatpush.bf16.msra.mxu3 %v4439_v6  ;;  %v117_v29 = vld [vmem:[%s7274_s0 + $0x6a] sm:$0x3f]  ;;  %1533 = vmatpush.bf16.msra.mxu1 %v5075_v9  ;;  %v155_v34 = vld.sshfl [vmem:[#allocation1 + $0x30] sm:$0xff pattern:$0x73625140]  ;;  %v4775_v39 = vor.u32 %v6434_v28, %v4772_v37 }
  0x53   :  { %v7125_v31 = vld.sshfl [vmem:[#allocation1 + $0x28] sm:$0xff pattern:$0x73625140]  ;;  %v4900_v41 = vld [vmem:[#allocation2 + $0x3f0] sm:$0xf0] }
  0x54   :  { %1571 = vmatpush.bf16.msrb.mxu2 %v4631_v2  ;;  %v6386_v35 = vld [vmem:[#allocation2 + $0x164] sm:$0xf]  ;;  %160 = vst [vmem:[#allocation1 + $0x20] ss:$4 sm:$0xff] %v111_v19  ;;  %v5028_v44 = vld [vmem:[#allocation2 + $0x4f0] sm:$0xf0] }
  0x55   :  { %1520 = vmatpush.bf16.msra.mxu0 %v4931_v10  ;;  %v6466_v40 = vld [vmem:[#allocation2 + $0x3e4] sm:$0xf]  ;;  %161 = vst [vmem:[#allocation1 + $0x21] ss:$4 sm:$0xff] %v113_v20  ;;  %v4564_v48 = vld [vmem:[#allocation2 + $0x150] sm:$0xf0]  ;;  %v4583_v50 = vor.u32 %v6386_v35, %v4580_v36 }
  0x56   :  { %1562 = vmatpush.bf16.msra.mxu3 %v4423_v23  ;;  %v6498_v43 = vld [vmem:[#allocation2 + $0x4e4] sm:$0xf]  ;;  %162 = vst [vmem:[#allocation1 + $0x22] ss:$4 sm:$0xff] %v115_v22  ;;  %1534 = vmatpush.bf16.msra.mxu1 %v5059_v32  ;;  %v4903_v49 = vor.u32 %v6466_v40, %v4900_v41  ;;  %v4756_v52 = vld [vmem:[#allocation2 + $0x2d0] sm:$0xf0] }
  0x57   :  { %v5031_v46 = vor.u32 %v6498_v43, %v5028_v44  ;;  %163 = vst [vmem:[#allocation1 + $0x23] ss:$4 sm:$0xff] %v117_v29  ;;  %v6382_v47 = vld [vmem:[#allocation2 + $0x144] sm:$0xf]  ;;  %v4884_v57 = vld [vmem:[#allocation2 + $0x3d0] sm:$0xf0] }
  0x58   :  { %1572 = vmatpush.bf16.msrb.mxu2 %v4615_v18  ;;  %v6430_v51 = vld [vmem:[#allocation2 + $0x2c4] sm:$0xf]  ;;  %v5012_v61 = vld [vmem:[#allocation2 + $0x4d0] sm:$0xf0]  ;;  %v4567_v4 = vor.u32 %v6382_v47, %v4564_v48 }
  0x59   :  { %1521 = vmatpush.bf16.msra.mxu0 %v4915_v33  ;;  %v6462_v55 = vld [vmem:[#allocation2 + $0x3c4] sm:$0xf]  ;;  %v4759_v56 = vor.u32 %v6430_v51, %v4756_v52  ;;  %v4740_v1 = vld [vmem:[#allocation2 + $0x2b0] sm:$0xf0] }
  0x5a   :  { %1563 = vmatpush.bf16.msra.mxu3 %v4407_v42  ;;  %v6494_v60 = vld [vmem:[#allocation2 + $0x4c4] sm:$0xf]  ;;  %1535 = vmatpush.bf16.msra.mxu1 %v5043_v45  ;;  %v4887_v0 = vor.u32 %v6462_v55, %v4884_v57  ;;  %v4868_v3 = vld [vmem:[#allocation2 + $0x3b0] sm:$0xf0] }
  0x5b   :  { %v5015_v62 = vor.u32 %v6494_v60, %v5012_v61  ;;  %v6426_v63 = vld [vmem:[#allocation2 + $0x2a4] sm:$0xf]  ;;  %v4996_v8 = vld [vmem:[#allocation2 + $0x4b0] sm:$0xf0] }
  0x5c   :  { %1573 = vmatpush.bf16.msrb.mxu2 %v4599_v38  ;;  %v6458_v2 = vld [vmem:[#allocation2 + $0x3a4] sm:$0xf]  ;;  %v4743_v6 = vor.u32 %v6426_v63, %v4740_v1  ;;  %v4548_v9 = vld [vmem:[#allocation2 + $0x130] sm:$0xf0] }
  0x5d   :  { %1584 = vmatpush.bf16.msrb.mxu0 %v4775_v39  ;;  %v6378_v5 = vld [vmem:[#allocation2 + $0x124] sm:$0xf]  ;;  %v4724_v11 = vld [vmem:[#allocation2 + $0x290] sm:$0xf0]  ;;  %v4871_v14 = vor.u32 %v6458_v2, %v4868_v3 }
  0x5e   :  { %1612 = vmatpush.bf16.msrb.mxu3 %v5031_v46  ;;  %1598 = vmatpush.bf16.msrb.mxu1 %v4903_v49  ;;  %v6490_v7 = vld [vmem:[#allocation2 + $0x4a4] sm:$0xf]  ;;  %v170_v12 = vld.sshfl [vmem:[#allocation1 + $0x30] sm:$0xff pattern:$0x73625140]  ;;  %v4551_v21 = vor.u32 %v6378_v5, %v4548_v9 }
  0x5f   :  { %v6422_v10 = vld [vmem:[#allocation2 + $0x284] sm:$0xf]  ;;  %v168_v13 = vld.sshfl [vmem:[#allocation1 + $0x20] sm:$0xff pattern:$0x73625140]  ;;  %v4999_v15 = vor.u32 %v6490_v7, %v4996_v8  ;;  %v7128_v16 = vpack.c.bf16 %v170_v12, %v155_v34 }
  0x60   :  { %1574 = vmatpush.bf16.msrb.mxu2 %v4583_v50  ;;  %1564 = vmatmul.bf16.vlgmr.msra.gmra.mxu3 %v7101_v54  ;;  %v7131_v17 = vpack.c.bf16 %v168_v13, %v7123_v30  ;;  %v169_v18 = vld.sshfl [vmem:[#allocation1 + $0x28] sm:$0xff pattern:$0x73625140]  ;;  %v4727_v19 = vor.u32 %v6422_v10, %v4724_v11  ;;  %v4852_v23 = vld [vmem:[#allocation2 + $0x390] sm:$0xf0] }
  0x61   :  { %1585 = vmatpush.bf16.msrb.mxu0 %v4759_v56  ;;  %v6454_v20 = vld [vmem:[#allocation2 + $0x384] sm:$0xf]  ;;  %v7134_v22 = vpack.c.bf16 %v169_v18, %v7125_v31  ;;  %v4980_v25 = vld [vmem:[#allocation2 + $0x490] sm:$0xf0]  ;;  %5184 = vmatmul.msk.bf16.vlgmr.msra.gmra.mxu2 %vm415_vm0, %v7128_v16  ;;  %v4778_v9 = vld [vmem:[#allocation2 + $0x2e8] sm:$0xf] }
  0x62   :  { %1613 = vmatpush.bf16.msrb.mxu3 %v5015_v62  ;;  %1599 = vmatpush.bf16.msrb.mxu1 %v4887_v0  ;;  %v6486_v24 = vld [vmem:[#allocation2 + $0x484] sm:$0xf]  ;;  %v4532_v27 = vld [vmem:[#allocation2 + $0x110] sm:$0xf0]  ;;  %v4855_v31 = vor.u32 %v6454_v20, %v4852_v23  ;;  %v6437_v10 = vld [vmem:[#allocation2 + $0x2f4] sm:$0xf0] }
  0x63   :  { %1522 = vmatmul.bf16.vlgmr.msra.gmra.mxu0 %v7131_v17  ;;  %v6374_v26 = vld [vmem:[#allocation2 + $0x104] sm:$0xf]  ;;  %v5156_v30 = vld [vmem:[#allocation2 + $0x5f0] sm:$0xf0]  ;;  %1536 = vmatmul.bf16.vlgmr.msra.gmra.mxu1 %v7134_v22  ;;  %v4983_v32 = vor.u32 %v6486_v24, %v4980_v25  ;;  %v4522_v20 = vld [vmem:[#allocation2 + $0xe8] sm:$0xf] }
  0x64   :  { %1575 = vmatpush.bf16.msrb.mxu2 %v4567_v4  ;;  %v6418_v28 = vld [vmem:[#allocation2 + $0x264] sm:$0xf]  ;;  %v4708_v33 = vld [vmem:[#allocation2 + $0x270] sm:$0xf0]  ;;  %v4535_v38 = vor.u32 %v6374_v26, %v4532_v27  ;;  %v6373_v23 = vld [vmem:[#allocation2 + $0xf4] sm:$0xf0] }
  0x65   :  { %1586 = vmatpush.bf16.msrb.mxu0 %v4743_v6  ;;  %v6530_v29 = vld [vmem:[#allocation2 + $0x5e4] sm:$0xf]  ;;  %v4711_v34 = vor.u32 %v6418_v28, %v4708_v33  ;;  %v4964_v37 = vld [vmem:[#allocation2 + $0x470] sm:$0xf0] }
  0x66   :  { %1614 = vmatpush.bf16.msrb.mxu3 %v4999_v15  ;;  %1600 = vmatpush.bf16.msrb.mxu1 %v4871_v14  ;;  %v6450_v35 = vld [vmem:[#allocation2 + $0x364] sm:$0xf]  ;;  %v4836_v39 = vld [vmem:[#allocation2 + $0x370] sm:$0xf0]  ;;  %v5159_v42 = vor.u32 %v6530_v29, %v5156_v30  ;;  %v4762_v29 = vld [vmem:[#allocation2 + $0x2c8] sm:$0xf] }
  0x67   :  { %v6482_v36 = vld [vmem:[#allocation2 + $0x464] sm:$0xf]  ;;  %v4692_v41 = vld [vmem:[#allocation2 + $0x250] sm:$0xf0]  ;;  %v4839_v46 = vor.u32 %v6450_v35, %v4836_v39  ;;  %v6433_v30 = vld [vmem:[#allocation2 + $0x2d4] sm:$0xf0]  ;;  %v4523_v35 = vor.u32 %v6373_v23, %v4522_v20 }
  0x68   :  { %1576 = vmatpush.bf16.msrb.mxu2 %v4551_v21  ;;  %v6414_v40 = vld [vmem:[#allocation2 + $0x244] sm:$0xf]  ;;  %v5140_v44 = vld [vmem:[#allocation2 + $0x5d0] sm:$0xf0]  ;;  %v4967_v45 = vor.u32 %v6482_v36, %v4964_v37  ;;  %v4779_v21 = vor.u32 %v6437_v10, %v4778_v9  ;;  %v4506_v37 = vld [vmem:[#allocation2 + $0xc8] sm:$0xf]  ;;  %v4763_v39 = vor.u32 %v6433_v30, %v4762_v29 }
  0x69   :  { %1587 = vmatpush.bf16.msrb.mxu0 %v4727_v19  ;;  %v6526_v43 = vld [vmem:[#allocation2 + $0x5c4] sm:$0xf]  ;;  %v4695_v47 = vor.u32 %v6414_v40, %v4692_v41  ;;  %v4948_v50 = vld [vmem:[#allocation2 + $0x450] sm:$0xf0]  ;;  %v4602_v10 = vld [vmem:[#allocation2 + $0x188] sm:$0xf] }
  0x6a   :  { %1615 = vmatpush.bf16.msrb.mxu3 %v4983_v32  ;;  %1601 = vmatpush.bf16.msrb.mxu1 %v4855_v31  ;;  %v6446_v48 = vld [vmem:[#allocation2 + $0x344] sm:$0xf]  ;;  %v4820_v51 = vld [vmem:[#allocation2 + $0x350] sm:$0xf0]  ;;  %v5143_v56 = vor.u32 %v6526_v43, %v5140_v44  ;;  %v4650_v31 = vld [vmem:[#allocation2 + $0x1e8] sm:$0xf] }
  0x6b   :  { %v6478_v49 = vld [vmem:[#allocation2 + $0x444] sm:$0xf]  ;;  %v4676_v55 = vld [vmem:[#allocation2 + $0x230] sm:$0xf0]  ;;  %v4823_v62 = vor.u32 %v6446_v48, %v4820_v51  ;;  %v4746_v43 = vld [vmem:[#allocation2 + $0x2a8] sm:$0xf] }
  0x6c   :  { %1577 = vmatpush.bf16.msrb.mxu2 %v4535_v38  ;;  %v6410_v52 = vld [vmem:[#allocation2 + $0x224] sm:$0xf]  ;;  %v5124_v60 = vld [vmem:[#allocation2 + $0x5b0] sm:$0xf0]  ;;  %v4951_v61 = vor.u32 %v6478_v49, %v4948_v50  ;;  %v6369_v38 = vld [vmem:[#allocation2 + $0xd4] sm:$0xf0] }
  0x6d   :  { %1588 = vmatpush.bf16.msrb.mxu0 %v4711_v34  ;;  %v6522_v57 = vld [vmem:[#allocation2 + $0x5a4] sm:$0xf]  ;;  %v4679_v63 = vor.u32 %v6410_v52, %v4676_v55  ;;  %v4932_v2 = vld [vmem:[#allocation2 + $0x430] sm:$0xf0]  ;;  %v6405_v34 = vld [vmem:[#allocation2 + $0x1f4] sm:$0xf0]  ;;  %v4507_v48 = vor.u32 %v6369_v38, %v4506_v37 }
  0x6e   :  { %1616 = vmatpush.bf16.msrb.mxu3 %v4967_v45  ;;  %1602 = vmatpush.bf16.msrb.mxu1 %v4839_v46  ;;  %v6442_v0 = vld [vmem:[#allocation2 + $0x324] sm:$0xf]  ;;  %v4804_v3 = vld [vmem:[#allocation2 + $0x330] sm:$0xf0]  ;;  %v5127_v6 = vor.u32 %v6522_v57, %v5124_v60  ;;  %v6429_v44 = vld [vmem:[#allocation2 + $0x2b4] sm:$0xf0] }
  0x6f   :  { %v6474_v1 = vld [vmem:[#allocation2 + $0x424] sm:$0xf]  ;;  %v4660_v5 = vld [vmem:[#allocation2 + $0x210] sm:$0xf0]  ;;  %v4807_v12 = vor.u32 %v6442_v0, %v4804_v3  ;;  %v4634_v46 = vld [vmem:[#allocation2 + $0x1c8] sm:$0xf]  ;;  %v4747_v51 = vor.u32 %v6429_v44, %v4746_v43 }
  0x70   :  { %1626 = vmatpush.bf16.msra.mxu2 %v5159_v42  ;;  %v6406_v4 = vld [vmem:[#allocation2 + $0x204] sm:$0xf]  ;;  %v4935_v8 = vor.u32 %v6474_v1, %v4932_v2  ;;  %v5108_v11 = vld [vmem:[#allocation2 + $0x590] sm:$0xf0]  ;;  %v4651_v42 = vor.u32 %v6405_v34, %v4650_v31  ;;  %v4490_v49 = vld [vmem:[#allocation2 + $0xa8] sm:$0xf] }
  0x71   :  { %1589 = vmatpush.bf16.msrb.mxu0 %v4695_v47  ;;  %v6518_v7 = vld [vmem:[#allocation2 + $0x584] sm:$0xf]  ;;  %v4663_v13 = vor.u32 %v6406_v4, %v4660_v5  ;;  %v4916_v15 = vld [vmem:[#allocation2 + $0x410] sm:$0xf0]  ;;  %1578 = vmatmul.bf16.vlgmr.msrb.gmra.mxu2 %v7105_v59  ;;  %v6401_v47 = vld [vmem:[#allocation2 + $0x1d4] sm:$0xf0] }
  0x72   :  { %1617 = vmatpush.bf16.msrb.mxu3 %v4951_v61  ;;  %1603 = vmatpush.bf16.msrb.mxu1 %v4823_v62  ;;  %v6470_v14 = vld [vmem:[#allocation2 + $0x404] sm:$0xf]  ;;  %v4788_v19 = vld [vmem:[#allocation2 + $0x310] sm:$0xf0]  ;;  %v5111_v26 = vor.u32 %v6518_v7, %v5108_v11  ;;  %v6365_v50 = vld [vmem:[#allocation2 + $0xb4] sm:$0xf0] }
  0x73   :  { %v6438_v18 = vld [vmem:[#allocation2 + $0x304] sm:$0xf]  ;;  %v5172_v25 = vld [vmem:[#allocation2 + $0x610] sm:$0xf0]  ;;  %v4919_v28 = vor.u32 %v6470_v14, %v4916_v15  ;;  %v4730_v57 = vld [vmem:[#allocation2 + $0x288] sm:$0xf]  ;;  %v4491_v0 = vor.u32 %v6365_v50, %v4490_v49 }
  0x74   :  { %1627 = vmatpush.bf16.msra.mxu2 %v5143_v56  ;;  %v6534_v24 = vld [vmem:[#allocation2 + $0x604] sm:$0xf]  ;;  %v5092_v32 = vld [vmem:[#allocation2 + $0x570] sm:$0xf0]  ;;  %v4791_v33 = vor.u32 %v6438_v18, %v4788_v19  ;;  %v4635_v56 = vor.u32 %v6401_v47, %v4634_v46  ;;  %v6425_v60 = vld [vmem:[#allocation2 + $0x294] sm:$0xf0] }
  0x75   :  { %1590 = vmatpush.bf16.msrb.mxu0 %v4679_v63  ;;  %v6514_v27 = vld [vmem:[#allocation2 + $0x564] sm:$0xf]  ;;  %v5175_v36 = vor.u32 %v6534_v24, %v5172_v25  ;;  %v5076_v45 = vld [vmem:[#allocation2 + $0x550] sm:$0xf0]  ;;  %v4618_v62 = vld [vmem:[#allocation2 + $0x1a8] sm:$0xf]  ;;  %v4731_v3 = vor.u32 %v6425_v60, %v4730_v57 }
  0x76   :  { %1618 = vmatpush.bf16.msrb.mxu3 %v4935_v8  ;;  %1604 = vmatpush.bf16.msrb.mxu1 %v4807_v12  ;;  %v5095_v40 = vor.u32 %v6514_v27, %v5092_v32  ;;  %v6510_v41 = vld [vmem:[#allocation2 + $0x544] sm:$0xf]  ;;  %v5060_v61 = vld [vmem:[#allocation2 + $0x530] sm:$0xf0]  ;;  %v6397_v63 = vld [vmem:[#allocation2 + $0x1b4] sm:$0xf0] }
  0x77   :  { %v5079_v52 = vor.u32 %v6510_v41, %v5076_v45  ;;  %v6506_v55 = vld [vmem:[#allocation2 + $0x524] sm:$0xf]  ;;  %v4474_v1 = vld [vmem:[#allocation2 + $0x88] sm:$0xf]  ;;  %v6361_v2 = vld [vmem:[#allocation2 + $0x94] sm:$0xf0] }
  0x78   :  { %1628 = vmatpush.bf16.msra.mxu2 %v5127_v6  ;;  %v5063_v4 = vor.u32 %v6506_v55, %v5060_v61  ;;  %v6502_v5 = vld [vmem:[#allocation2 + $0x504] sm:$0xf]  ;;  %v4619_v6 = vor.u32 %v6397_v63, %v4618_v62  ;;  %v4714_v7 = vld [vmem:[#allocation2 + $0x268] sm:$0xf]  ;;  %v6421_v8 = vld [vmem:[#allocation2 + $0x274] sm:$0xf0]  ;;  %v4475_v14 = vor.u32 %v6361_v2, %v4474_v1 }
  0x79   :  { %1591 = vmatpush.bf16.msrb.mxu0 %v4663_v13  ;;  %v5044_v9 = vld [vmem:[#allocation2 + $0x510] sm:$0xf0]  ;;  %v6393_v11 = vld [vmem:[#allocation2 + $0x194] sm:$0xf0]  ;;  %v4906_v12 = vld [vmem:[#allocation2 + $0x3e8] sm:$0xf]  ;;  %v4715_v19 = vor.u32 %v6421_v8, %v4714_v7 }
  0x7a   :  { %1619 = vmatpush.bf16.msrb.mxu3 %v4919_v28  ;;  %1605 = vmatpush.bf16.msrb.mxu1 %v4791_v33  ;;  %v6469_v13 = vld [vmem:[#allocation2 + $0x3f4] sm:$0xf0]  ;;  %v4458_v15 = vld [vmem:[#allocation2 + $0x68] sm:$0xf]  ;;  %v5047_v20 = vor.u32 %v6502_v5, %v5044_v9  ;;  %v6403_v7 = vld [vmem:[#allocation2 + $0x1ec] sm:$0xf] }
  0x7b   :  { %v6357_v18 = vld [vmem:[#allocation2 + $0x74] sm:$0xf0]  ;;  %v4586_v23 = vld [vmem:[#allocation2 + $0x168] sm:$0xf]  ;;  %v4907_v24 = vor.u32 %v6469_v13, %v4906_v12  ;;  %v4652_v8 = vld [vmem:[#allocation2 + $0x1f8] sm:$0xf0] }
  0x7c   :  { %1629 = vmatpush.bf16.msra.mxu2 %v5111_v26  ;;  %1592 = vmatmul.bf16.vlgmr.msrb.gmra.mxu0 %v7099_v53  ;;  %v6389_v25 = vld [vmem:[#allocation2 + $0x174] sm:$0xf0]  ;;  %v4698_v26 = vld [vmem:[#allocation2 + $0x248] sm:$0xf]  ;;  %v4459_v30 = vor.u32 %v6357_v18, %v4458_v15 }
  0x7d   :  { %1682 = vmatpush.bf16.msra.mxu0 %v4779_v21  ;;  %1620 = vmatmul.bf16.vlgmr.msrb.gmra.mxu3 %v7131_v17  ;;  %v4603_v21 = vor.u32 %v6393_v11, %v4602_v10  ;;  %v6417_v27 = vld [vmem:[#allocation2 + $0x254] sm:$0xf0]  ;;  %v4890_v28 = vld [vmem:[#allocation2 + $0x3c8] sm:$0xf]  ;;  %v4587_v31 = vor.u32 %v6389_v25, %v4586_v23  ;;  %v6399_v23 = vld [vmem:[#allocation2 + $0x1cc] sm:$0xf] }
  0x7e   :  { %1654 = vmatpush.bf16.msra.mxu1 %v4523_v35  ;;  %1647 = vmatpush.bf16.msra.mxu3 %v5175_v36  ;;  %v6465_v29 = vld [vmem:[#allocation2 + $0x3d4] sm:$0xf0]  ;;  %v4442_v32 = vld [vmem:[#allocation2 + $0x48] sm:$0xf]  ;;  %v4699_v36 = vor.u32 %v6417_v27, %v4698_v26 }
  0x7f   :  { %1606 = vmatmul.bf16.vlgmr.msrb.gmra.mxu1 %v7103_v58  ;;  %v6353_v33 = vld [vmem:[#allocation2 + $0x54] sm:$0xf0]  ;;  %v4570_v34 = vld [vmem:[#allocation2 + $0x148] sm:$0xf]  ;;  %v4891_v37 = vor.u32 %v6465_v29, %v4890_v28 }
  0x80   :  { %1630 = vmatpush.bf16.msra.mxu2 %v5095_v40  ;;  %v6385_v35 = vld [vmem:[#allocation2 + $0x154] sm:$0xf0]  ;;  %v4682_v38 = vld [vmem:[#allocation2 + $0x228] sm:$0xf] }
  0x81   :  { %1683 = vmatpush.bf16.msra.mxu0 %v4763_v39  ;;  %v6413_v39 = vld [vmem:[#allocation2 + $0x234] sm:$0xf0]  ;;  %v4874_v40 = vld [vmem:[#allocation2 + $0x3a8] sm:$0xf]  ;;  %v4571_v46 = vor.u32 %v6385_v35, %v4570_v34  ;;  %v6395_v35 = vld [vmem:[#allocation2 + $0x1ac] sm:$0xf] }
  0x82   :  { %1668 = vmatpush.bf16.msrb.mxu3 %v4651_v42  ;;  %1655 = vmatpush.bf16.msra.mxu1 %v4507_v48  ;;  %v6461_v41 = vld [vmem:[#allocation2 + $0x3b4] sm:$0xf0]  ;;  %v4443_v42 = vor.u32 %v6353_v33, %v4442_v32  ;;  %v4426_v43 = vld [vmem:[#allocation2 + $0x28] sm:$0xf]  ;;  %v4683_v48 = vor.u32 %v6413_v39, %v4682_v38 }
  0x83   :  { %v6349_v44 = vld [vmem:[#allocation2 + $0x34] sm:$0xf0]  ;;  %v4858_v45 = vld [vmem:[#allocation2 + $0x388] sm:$0xf]  ;;  %v4875_v49 = vor.u32 %v6461_v41, %v4874_v40 }
  0x84   :  { %1631 = vmatpush.bf16.msra.mxu2 %v5079_v52  ;;  %v4554_v47 = vld [vmem:[#allocation2 + $0x128] sm:$0xf]  ;;  %v6381_v50 = vld [vmem:[#allocation2 + $0x134] sm:$0xf0] }
  0x85   :  { %1684 = vmatpush.bf16.msra.mxu0 %v4747_v51  ;;  %v4666_v51 = vld [vmem:[#allocation2 + $0x208] sm:$0xf]  ;;  %v6409_v52 = vld [vmem:[#allocation2 + $0x214] sm:$0xf0]  ;;  %v4555_v63 = vor.u32 %v6381_v50, %v4554_v47  ;;  %v6391_v47 = vld [vmem:[#allocation2 + $0x18c] sm:$0xf] }
  0x86   :  { %1669 = vmatpush.bf16.msrb.mxu3 %v4635_v56  ;;  %1656 = vmatpush.bf16.msra.mxu1 %v4491_v0  ;;  %v6457_v55 = vld [vmem:[#allocation2 + $0x394] sm:$0xf0]  ;;  %v4427_v56 = vor.u32 %v6349_v44, %v4426_v43  ;;  %v5178_v57 = vld [vmem:[#allocation2 + $0x608] sm:$0xf] }
  0x87   :  { %v6537_v60 = vld [vmem:[#allocation2 + $0x614] sm:$0xf0]  ;;  %v4410_v61 = vld [vmem:[#allocation2 + $0x8] sm:$0xf] }
  0x88   :  { %1632 = vmatpush.bf16.msra.mxu2 %v5063_v4  ;;  %v6345_v62 = vld [vmem:[#allocation2 + $0x14] sm:$0xf0]  ;;  %v5034_v0 = vld [vmem:[#allocation2 + $0x4e8] sm:$0xf]  ;;  %v4859_v4 = vor.u32 %v6457_v55, %v4858_v45  ;;  %v4524_v55 = vld [vmem:[#allocation2 + $0xf8] sm:$0xf0] }
  0x89   :  { %1685 = vmatpush.bf16.msra.mxu0 %v4731_v3  ;;  %v6501_v1 = vld [vmem:[#allocation2 + $0x4f4] sm:$0xf0]  ;;  %v4538_v2 = vld [vmem:[#allocation2 + $0x108] sm:$0xf]  ;;  %v4667_v3 = vor.u32 %v6409_v52, %v4666_v51  ;;  %v4411_v11 = vor.u32 %v6345_v62, %v4410_v61  ;;  %v6371_v51 = vld [vmem:[#allocation2 + $0xec] sm:$0xf] }
  0x8a   :  { %1670 = vmatpush.bf16.msrb.mxu3 %v4619_v6  ;;  %1657 = vmatpush.bf16.msra.mxu1 %v4475_v14  ;;  %v6377_v5 = vld [vmem:[#allocation2 + $0x114] sm:$0xf0]  ;;  %v5179_v6 = vor.u32 %v6537_v60, %v5178_v57  ;;  %v4842_v9 = vld [vmem:[#allocation2 + $0x368] sm:$0xf]  ;;  %v5035_v12 = vor.u32 %v6501_v1, %v5034_v0  ;;  %v6387_v1 = vld [vmem:[#allocation2 + $0x16c] sm:$0xf] }
  0x8b   :  { %v6453_v10 = vld [vmem:[#allocation2 + $0x374] sm:$0xf0]  ;;  %v5162_v13 = vld [vmem:[#allocation2 + $0x5e8] sm:$0xf]  ;;  %v4539_v15 = vor.u32 %v6377_v5, %v4538_v2  ;;  %v4588_v2 = vld [vmem:[#allocation2 + $0x178] sm:$0xf0] }
  0x8c   :  { %1633 = vmatpush.bf16.msra.mxu2 %v5047_v20  ;;  %v6533_v14 = vld [vmem:[#allocation2 + $0x5f4] sm:$0xf0]  ;;  %v5018_v18 = vld [vmem:[#allocation2 + $0x4c8] sm:$0xf]  ;;  %v4655_v20 = vor.u32 %v6403_v7, %v4652_v8 }
  0x8d   :  { %1686 = vmatpush.bf16.msra.mxu0 %v4715_v19  ;;  %5185 = vmatmul.msk.bf16.vlgmr.msra.gmra.mxu3 %vm415_vm0, %v7128_v16  ;;  %v6497_v19 = vld [vmem:[#allocation2 + $0x4d4] sm:$0xf0]  ;;  %v4826_v25 = vld [vmem:[#allocation2 + $0x348] sm:$0xf]  ;;  %v5163_v27 = vor.u32 %v6533_v14, %v5162_v13  ;;  %v6383_v13 = vld [vmem:[#allocation2 + $0x14c] sm:$0xf] }
  0x8e   :  { %1671 = vmatpush.bf16.msrb.mxu3 %v4603_v21  ;;  %1658 = vmatpush.bf16.msra.mxu1 %v4459_v30  ;;  %v4843_v21 = vor.u32 %v6453_v10, %v4842_v9  ;;  %v6449_v26 = vld [vmem:[#allocation2 + $0x354] sm:$0xf0]  ;;  %v5019_v28 = vor.u32 %v6497_v19, %v5018_v18  ;;  %v5146_v29 = vld [vmem:[#allocation2 + $0x5c8] sm:$0xf]  ;;  %v4572_v14 = vld [vmem:[#allocation2 + $0x158] sm:$0xf0] }
  0x8f   :  { %1634 = vmatmul.bf16.vlgmr.msra.gmra.mxu2 %v7134_v22  ;;  %v6529_v30 = vld [vmem:[#allocation2 + $0x5d4] sm:$0xf0]  ;;  %v5002_v32 = vld [vmem:[#allocation2 + $0x4a8] sm:$0xf]  ;;  %v4827_v34 = vor.u32 %v6449_v26, %v4826_v25  ;;  %v6363_v18 = vld [vmem:[#allocation2 + $0xac] sm:$0xf] }
  0x90   :  { %1696 = vmatpush.bf16.msrb.mxu2 %v4907_v24  ;;  %v4636_v24 = vld [vmem:[#allocation2 + $0x1d8] sm:$0xf0]  ;;  %v6493_v33 = vld [vmem:[#allocation2 + $0x4b4] sm:$0xf0]  ;;  %v5147_v39 = vor.u32 %v6529_v30, %v5146_v29  ;;  %v5130_v41 = vld [vmem:[#allocation2 + $0x5a8] sm:$0xf] }
  0x91   :  { %1687 = vmatpush.bf16.msra.mxu0 %v4699_v36  ;;  %v4620_v36 = vld [vmem:[#allocation2 + $0x1b8] sm:$0xf0]  ;;  %v6445_v38 = vld [vmem:[#allocation2 + $0x334] sm:$0xf0]  ;;  %v5003_v40 = vor.u32 %v6493_v33, %v5002_v32  ;;  %v4986_v43 = vld [vmem:[#allocation2 + $0x488] sm:$0xf] }
  0x92   :  { %1672 = vmatpush.bf16.msrb.mxu3 %v4587_v31  ;;  %1659 = vmatpush.bf16.msra.mxu1 %v4443_v42  ;;  %v4639_v31 = vor.u32 %v6399_v23, %v4636_v24  ;;  %v6525_v42 = vld [vmem:[#allocation2 + $0x5b4] sm:$0xf0]  ;;  %v4623_v45 = vor.u32 %v6395_v35, %v4620_v36  ;;  %v5114_v57 = vld [vmem:[#allocation2 + $0x588] sm:$0xf]  ;;  %v4556_v29 = vld [vmem:[#allocation2 + $0x138] sm:$0xf0] }
  0x93   :  { %v6489_v44 = vld [vmem:[#allocation2 + $0x494] sm:$0xf0]  ;;  %v5131_v52 = vor.u32 %v6525_v42, %v5130_v41  ;;  %v4970_v61 = vld [vmem:[#allocation2 + $0x468] sm:$0xf]  ;;  %v6359_v32 = vld [vmem:[#allocation2 + $0x8c] sm:$0xf] }
  0x94   :  { %1697 = vmatpush.bf16.msrb.mxu2 %v4891_v37  ;;  %v4810_v37 = vld [vmem:[#allocation2 + $0x328] sm:$0xf]  ;;  %v6441_v50 = vld [vmem:[#allocation2 + $0x314] sm:$0xf0]  ;;  %v4780_v41 = vld [vmem:[#allocation2 + $0x2f8] sm:$0xf0] }
  0x95   :  { %1688 = vmatpush.bf16.msra.mxu0 %v4683_v48  ;;  %v4604_v48 = vld [vmem:[#allocation2 + $0x198] sm:$0xf0]  ;;  %v6521_v60 = vld [vmem:[#allocation2 + $0x594] sm:$0xf0]  ;;  %v5098_v8 = vld [vmem:[#allocation2 + $0x568] sm:$0xf] }
  0x96   :  { %1673 = vmatpush.bf16.msrb.mxu3 %v4571_v46  ;;  %1660 = vmatpush.bf16.msra.mxu1 %v4427_v56  ;;  %v4811_v46 = vor.u32 %v6445_v38, %v4810_v37  ;;  %v4987_v56 = vor.u32 %v6489_v44, %v4986_v43  ;;  %v6485_v62 = vld [vmem:[#allocation2 + $0x474] sm:$0xf0]  ;;  %v5115_v5 = vor.u32 %v6521_v60, %v5114_v57  ;;  %v4954_v10 = vld [vmem:[#allocation2 + $0x448] sm:$0xf]  ;;  %v6375_v42 = vld [vmem:[#allocation2 + $0x10c] sm:$0xf] }
  0x97   :  { %v4971_v7 = vor.u32 %v6485_v62, %v4970_v61  ;;  %v6517_v9 = vld [vmem:[#allocation2 + $0x574] sm:$0xf0]  ;;  %v5082_v23 = vld [vmem:[#allocation2 + $0x548] sm:$0xf]  ;;  %v4540_v43 = vld [vmem:[#allocation2 + $0x118] sm:$0xf0] }
  0x98   :  { %1698 = vmatpush.bf16.msrb.mxu2 %v4875_v49  ;;  %v4794_v49 = vld [vmem:[#allocation2 + $0x308] sm:$0xf]  ;;  %v5099_v19 = vor.u32 %v6517_v9, %v5098_v8  ;;  %v6513_v24 = vld [vmem:[#allocation2 + $0x554] sm:$0xf0]  ;;  %v4543_v57 = vor.u32 %v6375_v42, %v4540_v43  ;;  %v4908_v60 = vld [vmem:[#allocation2 + $0x3f8] sm:$0xf0] }
  0x99   :  { %1689 = vmatpush.bf16.msra.mxu0 %v4667_v3  ;;  %v4795_v0 = vor.u32 %v6441_v50, %v4794_v49  ;;  %v4527_v3 = vor.u32 %v6371_v51, %v4524_v55  ;;  %v4938_v25 = vld [vmem:[#allocation2 + $0x428] sm:$0xf]  ;;  %v6477_v26 = vld [vmem:[#allocation2 + $0x434] sm:$0xf0]  ;;  %v5083_v33 = vor.u32 %v6513_v24, %v5082_v23  ;;  %v4460_v49 = vld [vmem:[#allocation2 + $0x78] sm:$0xf0] }
  0x9a   :  { %1674 = vmatpush.bf16.msrb.mxu3 %v4555_v63  ;;  %1661 = vmatpush.bf16.msra.mxu1 %v4411_v11  ;;  %v4607_v63 = vor.u32 %v6391_v47, %v4604_v48  ;;  %v6481_v11 = vld [vmem:[#allocation2 + $0x454] sm:$0xf0]  ;;  %v5066_v35 = vld [vmem:[#allocation2 + $0x528] sm:$0xf]  ;;  %v5164_v47 = vld [vmem:[#allocation2 + $0x5f8] sm:$0xf0] }
  0x9b   :  { %v6509_v36 = vld [vmem:[#allocation2 + $0x534] sm:$0xf0]  ;;  %v4922_v37 = vld [vmem:[#allocation2 + $0x408] sm:$0xf]  ;;  %v6355_v48 = vld [vmem:[#allocation2 + $0x6c] sm:$0xf] }
  0x9c   :  { %1699 = vmatpush.bf16.msrb.mxu2 %v4859_v4  ;;  %1690 = vmatmul.bf16.vlgmr.msra.gmra.mxu0 %v7099_v53  ;;  %v6367_v4 = vld [vmem:[#allocation2 + $0xcc] sm:$0xf]  ;;  %v6473_v38 = vld [vmem:[#allocation2 + $0x414] sm:$0xf0]  ;;  %v4764_v62 = vld [vmem:[#allocation2 + $0x2d8] sm:$0xf0] }
  0x9d   :  { %1745 = vmatpush.bf16.msrb.mxu0 %v5179_v6  ;;  %1662 = vmatmul.bf16.vlgmr.msra.gmra.mxu1 %v7101_v54  ;;  %v4508_v6 = vld [vmem:[#allocation2 + $0xd8] sm:$0xf0]  ;;  %v4923_v50 = vor.u32 %v6473_v38, %v4922_v37  ;;  %v6505_v55 = vld [vmem:[#allocation2 + $0x514] sm:$0xf0]  ;;  %v6431_v61 = vld [vmem:[#allocation2 + $0x2cc] sm:$0xf] }
  0x9e   :  { %1710 = vmatpush.bf16.msrb.mxu1 %v5035_v12  ;;  %1675 = vmatpush.bf16.msrb.mxu3 %v4539_v15  ;;  %v4591_v12 = vor.u32 %v6387_v1, %v4588_v2  ;;  %v4511_v15 = vor.u32 %v6367_v4, %v4508_v6  ;;  %v6527_v1 = vld [vmem:[#allocation2 + $0x5cc] sm:$0xf]  ;;  %v5148_v2 = vld [vmem:[#allocation2 + $0x5d8] sm:$0xf0] }
  0x9f   :  { %v4444_v4 = vld [vmem:[#allocation2 + $0x58] sm:$0xf0]  ;;  %v6463_v8 = vld [vmem:[#allocation2 + $0x3cc] sm:$0xf] }
  0xa0   :  { %1700 = vmatpush.bf16.msrb.mxu2 %v4843_v21  ;;  %v4955_v21 = vor.u32 %v6481_v11, %v4954_v10  ;;  %v4892_v9 = vld [vmem:[#allocation2 + $0x3d8] sm:$0xf0]  ;;  %v6427_v10 = vld [vmem:[#allocation2 + $0x2ac] sm:$0xf] }
  0xa1   :  { %1766 = vmatpush.bf16.msra.mxu0 %v4655_v20  ;;  %1676 = vmatmul.bf16.vlgmr.msrb.gmra.mxu3 %v7105_v59  ;;  %v4492_v20 = vld [vmem:[#allocation2 + $0xb8] sm:$0xf0]  ;;  %v6459_v23 = vld [vmem:[#allocation2 + $0x3ac] sm:$0xf] }
  0xa2   :  { %1724 = vmatpush.bf16.msra.mxu3 %v5163_v27  ;;  %1711 = vmatpush.bf16.msrb.mxu1 %v5019_v28  ;;  %v4575_v27 = vor.u32 %v6383_v13, %v4572_v14  ;;  %v6379_v28 = vld [vmem:[#allocation2 + $0x12c] sm:$0xf]  ;;  %v4495_v30 = vor.u32 %v6363_v18, %v4492_v20  ;;  %v4748_v11 = vld [vmem:[#allocation2 + $0x2b8] sm:$0xf0]  ;;  %v4895_v20 = vor.u32 %v6463_v8, %v4892_v9 }
  0xa3   :  { %v6523_v14 = vld [vmem:[#allocation2 + $0x5ac] sm:$0xf]  ;;  %v4876_v24 = vld [vmem:[#allocation2 + $0x3b8] sm:$0xf0] }
  0xa4   :  { %1701 = vmatpush.bf16.msrb.mxu2 %v4827_v34  ;;  %v4939_v34 = vor.u32 %v6477_v26, %v4938_v25  ;;  %v6347_v18 = vld [vmem:[#allocation2 + $0x2c] sm:$0xf]  ;;  %v4732_v26 = vld [vmem:[#allocation2 + $0x298] sm:$0xf0] }
  0xa5   :  { %1767 = vmatpush.bf16.msra.mxu0 %v4639_v31  ;;  %v4476_v31 = vld [vmem:[#allocation2 + $0x98] sm:$0xf0]  ;;  %v6423_v25 = vld [vmem:[#allocation2 + $0x28c] sm:$0xf] }
  0xa6   :  { %1725 = vmatpush.bf16.msra.mxu3 %v5147_v39  ;;  %1712 = vmatpush.bf16.msrb.mxu1 %v5003_v40  ;;  %v6435_v39 = vld [vmem:[#allocation2 + $0x2ec] sm:$0xf]  ;;  %v4559_v40 = vor.u32 %v6379_v28, %v4556_v29  ;;  %v4479_v44 = vor.u32 %v6359_v32, %v4476_v31  ;;  %v7155_v28 = vpop.f32.mrf.mxu0  ;;  %v5116_v32 = vld [vmem:[#allocation2 + $0x598] sm:$0xf0]  ;;  %v4735_v37 = vor.u32 %v6423_v25, %v4732_v26 }
  0xa7   :  { %v4783_v51 = vor.u32 %v6435_v39, %v4780_v41  ;;  %v4412_v31 = vld [vmem:[#allocation2 + $0x18] sm:$0xf0]  ;;  %v6455_v38 = vld [vmem:[#allocation2 + $0x38c] sm:$0xf] }
  0xa8   :  { %1702 = vmatpush.bf16.msrb.mxu2 %v4811_v46  ;;  %v6531_v46 = vld [vmem:[#allocation2 + $0x5ec] sm:$0xf]  ;;  %v4860_v39 = vld [vmem:[#allocation2 + $0x398] sm:$0xf0] }
  0xa9   :  { %1768 = vmatpush.bf16.msra.mxu0 %v4623_v45  ;;  %v5067_v45 = vor.u32 %v6509_v36, %v5066_v35  ;;  %v5036_v35 = vld [vmem:[#allocation2 + $0x4f8] sm:$0xf0]  ;;  %v4879_v36 = vor.u32 %v6459_v23, %v4876_v24  ;;  %v6411_v8 = vld [vmem:[#allocation2 + $0x22c] sm:$0xf] }
  0xaa   :  { %1726 = vmatpush.bf16.msra.mxu3 %v5131_v52  ;;  %1713 = vmatpush.bf16.msrb.mxu1 %v4987_v56  ;;  %v5050_v52 = vld [vmem:[#allocation2 + $0x508] sm:$0xf]  ;;  %v6467_v56 = vld [vmem:[#allocation2 + $0x3ec] sm:$0xf]  ;;  %v4716_v41 = vld [vmem:[#allocation2 + $0x278] sm:$0xf0] }
  0xab   :  { %v4911_v6 = vor.u32 %v6467_v56, %v4908_v60  ;;  %v6415_v56 = vld [vmem:[#allocation2 + $0x24c] sm:$0xf]  ;;  %v4684_v9 = vld [vmem:[#allocation2 + $0x238] sm:$0xf0] }
  0xac   :  { %1703 = vmatpush.bf16.msrb.mxu2 %v4795_v0  ;;  %5186 = vmatmul.msk.bf16.vlgmr.msrb.gmra.mxu0 %vm415_vm0, %v7128_v16  ;;  %v4463_v0 = vor.u32 %v6355_v48, %v4460_v49  ;;  %v6495_v48 = vld [vmem:[#allocation2 + $0x4cc] sm:$0xf]  ;;  %v5020_v49 = vld [vmem:[#allocation2 + $0x4d8] sm:$0xf0] }
  0xad   :  { %1769 = vmatpush.bf16.msra.mxu0 %v4607_v63  ;;  %v5167_v63 = vor.u32 %v6531_v46, %v5164_v47  ;;  %v7160_v47 = vpop.f32.mrf.mxu2  ;;  %v6407_v23 = vld [vmem:[#allocation2 + $0x20c] sm:$0xf]  ;;  %v4668_v24 = vld [vmem:[#allocation2 + $0x218] sm:$0xf0] }
  0xae   :  { %1727 = vmatpush.bf16.msra.mxu3 %v5115_v5  ;;  %1714 = vmatpush.bf16.msrb.mxu1 %v4971_v7  ;;  %v5051_v5 = vor.u32 %v6505_v55, %v5050_v52  ;;  %v4767_v7 = vor.u32 %v6431_v61, %v4764_v62  ;;  %v6451_v52 = vld [vmem:[#allocation2 + $0x36c] sm:$0xf]  ;;  %v4844_v55 = vld [vmem:[#allocation2 + $0x378] sm:$0xf0] }
  0xaf   :  { %1704 = vmatmul.bf16.vlgmr.msrb.gmra.mxu2 %v7103_v58  ;;  %v6511_v61 = vld [vmem:[#allocation2 + $0x54c] sm:$0xf]  ;;  %v5084_v62 = vld [vmem:[#allocation2 + $0x558] sm:$0xf0] }
  0xb0   :  { %1752 = vmatpush.bf16.msra.mxu2 %v4527_v3  ;;  %v6351_v3 = vld [vmem:[#allocation2 + $0x4c] sm:$0xf] }
  0xb1   :  { %1770 = vmatpush.bf16.msra.mxu0 %v4591_v12  ;;  %v5151_v12 = vor.u32 %v6527_v1, %v5148_v2  ;;  %v4447_v13 = vor.u32 %v6351_v3, %v4444_v4  ;;  %v6491_v1 = vld [vmem:[#allocation2 + $0x4ac] sm:$0xf]  ;;  %v5004_v2 = vld [vmem:[#allocation2 + $0x4b8] sm:$0xf0]  ;;  %v4847_v3 = vor.u32 %v6451_v52, %v4844_v55  ;;  %v5286_v55 = vld [vmem:[#allocation4 + $0xc0] sm:$0xf] }
  0xb2   :  { %1728 = vmatpush.bf16.msra.mxu3 %v5099_v19  ;;  %1715 = vmatpush.bf16.msrb.mxu1 %v4955_v21  ;;  %v4428_v19 = vld [vmem:[#allocation2 + $0x38] sm:$0xf0]  ;;  %v4751_v21 = vor.u32 %v6427_v10, %v4748_v11  ;;  %v5087_v10 = vor.u32 %v6511_v61, %v5084_v62  ;;  %v7167_v11 = vpop.f32.mrf.mxu3  ;;  %v6475_v61 = vld [vmem:[#allocation2 + $0x42c] sm:$0xf] }
  0xb3   :  { %v4431_v29 = vor.u32 %v6347_v18, %v4428_v19  ;;  %v4988_v18 = vld [vmem:[#allocation2 + $0x498] sm:$0xf0] }
  0xb4   :  { %1753 = vmatpush.bf16.msra.mxu2 %v4511_v15  ;;  %v5132_v15 = vld [vmem:[#allocation2 + $0x5b8] sm:$0xf0] }
  0xb5   :  { %1771 = vmatpush.bf16.msra.mxu0 %v4575_v27  ;;  %v5135_v27 = vor.u32 %v6523_v14, %v5132_v15  ;;  %v5007_v14 = vor.u32 %v6491_v1, %v5004_v2  ;;  %v6487_v15 = vld [vmem:[#allocation2 + $0x48c] sm:$0xf]  ;;  %v7169_v26 = vpop.f32.mrf.mxu2  ;;  %v4940_v62 = vld [vmem:[#allocation2 + $0x438] sm:$0xf0]  ;;  %v5270_v1 = vld [vmem:[#allocation4 + $0xa0] sm:$0xf] }
  0xb6   :  { %1729 = vmatpush.bf16.msra.mxu3 %v5083_v33  ;;  %1716 = vmatpush.bf16.msrb.mxu1 %v4939_v34  ;;  %v7158_v33 = vpop.f32.mrf.mxu1  ;;  %v6499_v34 = vld [vmem:[#allocation2 + $0x4ec] sm:$0xf]  ;;  %v6564_v2 = vld [vmem:[#allocation4 + $0xac] sm:$0xf0] }
  0xb7   :  { %v5039_v46 = vor.u32 %v6499_v34, %v5036_v35  ;;  %v4671_v34 = vor.u32 %v6407_v23, %v4668_v24  ;;  %v6439_v35 = vld [vmem:[#allocation2 + $0x30c] sm:$0xf]  ;;  %v5238_v24 = vld [vmem:[#allocation4 + $0x60] sm:$0xf] }
  0xb8   :  { %1754 = vmatpush.bf16.msra.mxu2 %v4495_v30  ;;  %v6519_v30 = vld [vmem:[#allocation2 + $0x58c] sm:$0xf] }
  0xb9   :  { %1772 = vmatpush.bf16.msra.mxu0 %v4559_v40  ;;  %v6419_v40 = vld [vmem:[#allocation2 + $0x26c] sm:$0xf]  ;;  %v5119_v42 = vor.u32 %v6519_v30, %v5116_v32  ;;  %v4991_v30 = vor.u32 %v6487_v15, %v4988_v18  ;;  %v5254_v15 = vld [vmem:[#allocation4 + $0x80] sm:$0xf]  ;;  %v6560_v18 = vld [vmem:[#allocation4 + $0x8c] sm:$0xf0] }
  0xba   :  { %1730 = vmatpush.bf16.msra.mxu3 %v5067_v45  ;;  %1717 = vmatpush.bf16.msrb.mxu1 %v4923_v50  ;;  %v5100_v45 = vld [vmem:[#allocation2 + $0x578] sm:$0xf0]  ;;  %v4863_v50 = vor.u32 %v6455_v38, %v4860_v39  ;;  %v6483_v32 = vld [vmem:[#allocation2 + $0x46c] sm:$0xf]  ;;  %v5255_v23 = vor.u32 %v6560_v18, %v5254_v15 }
  0xbc   :  { %1755 = vmatpush.bf16.msra.mxu2 %v4479_v44  ;;  %v6515_v44 = vld [vmem:[#allocation2 + $0x56c] sm:$0xf] }
  0xbd   :  { %1773 = vmatpush.bf16.msra.mxu0 %v4543_v57  ;;  %1718 = vmatmul.bf16.vlgmr.msrb.gmra.mxu1 %v7131_v17  ;;  %v4700_v57 = vld [vmem:[#allocation2 + $0x258] sm:$0xf0]  ;;  %v5103_v60 = vor.u32 %v6515_v44, %v5100_v45 }
  0xbe   :  { %1780 = vmatpush.bf16.msra.mxu1 %v4783_v51  ;;  %1731 = vmatpush.bf16.msra.mxu3 %v5051_v5  ;;  %v4719_v51 = vor.u32 %v6419_v40, %v4716_v41  ;;  %v4703_v4 = vor.u32 %v6415_v56, %v4700_v57  ;;  %v6447_v5 = vld [vmem:[#allocation2 + $0x34c] sm:$0xf]  ;;  %v6572_v40 = vld [vmem:[#allocation4 + $0xec] sm:$0xf0] }
  0xbf   :  { %v6535_v41 = vld [vmem:[#allocation2 + $0x60c] sm:$0xf]  ;;  %v6568_v56 = vld [vmem:[#allocation4 + $0xcc] sm:$0xf0] }
  0xc0   :  { %1756 = vmatpush.bf16.msra.mxu2 %v4463_v0  ;;  %1774 = vmatmul.bf16.vlgmr.msra.gmra.mxu0 %v7105_v59  ;;  %v6343_v59 = vld [vmem:[#allocation2 + $0xc] sm:$0xf]  ;;  %v7162_v0 = vpop.f32.mrf.mxu0 }
  0xc1   :  { %1822 = vmatpush.bf16.msrb.mxu0 %v5167_v63  ;;  %1732 = vmatmul.bf16.vlgmr.msra.gmra.mxu3 %v7134_v22  ;;  %v4415_v43 = vor.u32 %v6343_v59, %v4412_v31  ;;  %v5023_v63 = vor.u32 %v6495_v48, %v5020_v49  ;;  %v4972_v59 = vld [vmem:[#allocation2 + $0x478] sm:$0xf0]  ;;  %v6479_v48 = vld [vmem:[#allocation2 + $0x44c] sm:$0xf] }
  0xc2   :  { %1794 = vmatpush.bf16.msrb.mxu3 %v4911_v6  ;;  %1781 = vmatpush.bf16.msra.mxu1 %v4767_v7  ;;  %v7165_v6 = vpop.f32.mrf.mxu1  ;;  %v4828_v7 = vld [vmem:[#allocation2 + $0x358] sm:$0xf0]  ;;  %v4975_v44 = vor.u32 %v6483_v32, %v4972_v59  ;;  %v6596_v32 = vld [vmem:[#allocation4 + $0x1ac] sm:$0xf0] }
  0xc3   :  { %v4831_v19 = vor.u32 %v6447_v5, %v4828_v7  ;;  %v4956_v49 = vld [vmem:[#allocation2 + $0x458] sm:$0xf0]  ;;  %v4943_v5 = vor.u32 %v6475_v61, %v4940_v62  ;;  %v6471_v7 = vld [vmem:[#allocation2 + $0x40c] sm:$0xf] }
  0xc4   :  { %1757 = vmatpush.bf16.msra.mxu2 %v4447_v13  ;;  %v5068_v13 = vld [vmem:[#allocation2 + $0x538] sm:$0xf0] }
  0xc5   :  { %1823 = vmatpush.bf16.msrb.mxu0 %v5151_v12  ;;  %v6507_v12 = vld [vmem:[#allocation2 + $0x52c] sm:$0xf] }
  0xc6   :  { %1795 = vmatpush.bf16.msrb.mxu3 %v4895_v20  ;;  %1782 = vmatpush.bf16.msra.mxu1 %v4751_v21  ;;  %v4687_v20 = vor.u32 %v6411_v8, %v4684_v9  ;;  %v4812_v21 = vld [vmem:[#allocation2 + $0x338] sm:$0xf0]  ;;  %v5071_v25 = vor.u32 %v6507_v12, %v5068_v13  ;;  %v6600_v12 = vld [vmem:[#allocation4 + $0x1cc] sm:$0xf0] }
  0xc7   :  { %v4924_v9 = vld [vmem:[#allocation2 + $0x418] sm:$0xf0] }
  0xc8   :  { %1758 = vmatpush.bf16.msra.mxu2 %v4431_v29  ;;  %v5052_v29 = vld [vmem:[#allocation2 + $0x518] sm:$0xf0] }
  0xc9   :  { %1824 = vmatpush.bf16.msrb.mxu0 %v5135_v27  ;;  %v6503_v27 = vld [vmem:[#allocation2 + $0x50c] sm:$0xf] }
  0xca   :  { %1796 = vmatpush.bf16.msrb.mxu3 %v4879_v36  ;;  %1783 = vmatpush.bf16.msra.mxu1 %v4735_v37  ;;  %v4796_v36 = vld [vmem:[#allocation2 + $0x318] sm:$0xf0]  ;;  %v5302_v37 = vld [vmem:[#allocation4 + $0xe0] sm:$0xf]  ;;  %v5055_v38 = vor.u32 %v6503_v27, %v5052_v29 }
  0xcb   :  { %v5398_v27 = vld [vmem:[#allocation4 + $0x1a0] sm:$0xf] }
  0xcc   :  { %1759 = vmatpush.bf16.msra.mxu2 %v4415_v43  ;;  %v1467_v39 = vpop.f32.mrf.mxu0 }
  0xcd   :  { %1825 = vmatpush.bf16.msrb.mxu0 %v5119_v42  ;;  %v5180_v42 = vld [vmem:[#allocation2 + $0x618] sm:$0xf0]  ;;  %v1468_v57 = vadd.f32 %v1467_v39, %v7155_v28  ;;  %v6604_v28 = vld [vmem:[#allocation4 + $0x1ec] sm:$0xf0] }
  0xce   :  { %1797 = vmatpush.bf16.msrb.mxu3 %v4863_v50  ;;  %1784 = vmatpush.bf16.msra.mxu1 %v4719_v51  ;;  %v1481_v43 = vpop.f32.mrf.mxu1  ;;  %v5183_v45 = vor.u32 %v6535_v41, %v5180_v42  ;;  %v4799_v50 = vor.u32 %v6439_v35, %v4796_v36  ;;  %v5303_v51 = vor.u32 %v6572_v40, %v5302_v37  ;;  %v6592_v35 = vld [vmem:[#allocation4 + $0x18c] sm:$0xf0]  ;;  %v5366_v42 = vld [vmem:[#allocation4 + $0x160] sm:$0xf] }
  0xcf   :  { %1760 = vmatmul.bf16.vlgmr.msra.gmra.mxu2 %v7101_v54  ;;  %v6443_v54 = vld [vmem:[#allocation2 + $0x32c] sm:$0xf]  ;;  %v6552_v39 = vld [vmem:[#allocation4 + $0x4c] sm:$0xf0] }
  0xd0   :  { %1808 = vmatpush.bf16.msrb.mxu2 %v5039_v46  ;;  %v4815_v31 = vor.u32 %v6443_v54, %v4812_v21  ;;  %v7171_v46 = vpop.f32.mrf.mxu3  ;;  %v4927_v21 = vor.u32 %v6471_v7, %v4924_v9  ;;  %v6580_v9 = vld [vmem:[#allocation4 + $0x12c] sm:$0xf0] }
  0xd1   :  { %1826 = vmatpush.bf16.msrb.mxu0 %v5103_v60  ;;  %v4959_v60 = vor.u32 %v6479_v48, %v4956_v49 }
  0xd2   :  { %1798 = vmatpush.bf16.msrb.mxu3 %v4847_v3  ;;  %1785 = vmatpush.bf16.msra.mxu1 %v4703_v4  ;;  %v1495_v52 = vpop.f32.mrf.mxu2  ;;  %v5430_v3 = vld [vmem:[#allocation4 + $0x1e0] sm:$0xf]  ;;  %v1482_v4 = vadd.f32 %v1481_v43, %v1468_v57  ;;  %v6588_v43 = vld [vmem:[#allocation4 + $0x16c] sm:$0xf0] }
  0xd3   :  { %v6584_v57 = vld [vmem:[#allocation4 + $0x14c] sm:$0xf0] }
  0xd4   :  { %1809 = vmatpush.bf16.msrb.mxu2 %v5023_v63  ;;  %v5287_v63 = vor.u32 %v6568_v56, %v5286_v55  ;;  %v1469_v8 = vpop.f32.mrf.mxu0  ;;  %v5350_v56 = vld [vmem:[#allocation4 + $0x140] sm:$0xf] }
  0xd5   :  { %1827 = vmatpush.bf16.msrb.mxu0 %v5087_v10  ;;  %v5414_v10 = vld [vmem:[#allocation4 + $0x1c0] sm:$0xf]  ;;  %v1470_v54 = vadd.f32 %v1469_v8, %v7162_v0 }
  0xd6   :  { %1799 = vmatpush.bf16.msrb.mxu3 %v4831_v19  ;;  %1786 = vmatpush.bf16.msra.mxu1 %v4687_v20  ;;  %v1483_v13 = vpop.f32.mrf.mxu1  ;;  %v5415_v19 = vor.u32 %v6600_v12, %v5414_v10  ;;  %v1496_v20 = vadd.f32 %v1495_v52, %v1482_v4  ;;  %v5367_v52 = vor.u32 %v6588_v43, %v5366_v42  ;;  %v6570_v4 = vld [vmem:[#allocation4 + $0xe4] sm:$0xf]  ;;  %v5334_v8 = vld [vmem:[#allocation4 + $0x120] sm:$0xf]  ;;  %v5400_v43 = vld [vmem:[#allocation4 + $0x1b0] sm:$0xf0] }
  0xd7   :  { %v5335_v15 = vor.u32 %v6580_v9, %v5334_v8  ;;  %v6594_v42 = vld [vmem:[#allocation4 + $0x1a4] sm:$0xf] }
  0xd8   :  { %1810 = vmatpush.bf16.msrb.mxu2 %v5007_v14  ;;  %v1509_v14 = vpop.f32.mrf.mxu3  ;;  %v6546_v8 = vld [vmem:[#allocation4 + $0x24] sm:$0xf] }
  0xd9   :  { %1828 = vmatpush.bf16.msrb.mxu0 %v5071_v25  ;;  %v6556_v25 = vld [vmem:[#allocation4 + $0x6c] sm:$0xf0]  ;;  %v1510_v29 = vadd.f32 %v1509_v14, %v1496_v20  ;;  %v6566_v14 = vld [vmem:[#allocation4 + $0xc4] sm:$0xf]  ;;  %v5318_v20 = vld [vmem:[#allocation4 + $0x100] sm:$0xf] }
  0xda   :  { %1800 = vmatpush.bf16.msrb.mxu3 %v4815_v31  ;;  %1787 = vmatpush.bf16.msra.mxu1 %v4671_v34  ;;  %v5399_v31 = vor.u32 %v6596_v32, %v5398_v27  ;;  %v5382_v34 = vld [vmem:[#allocation4 + $0x180] sm:$0xf]  ;;  %v5239_v0 = vor.u32 %v6556_v25, %v5238_v24  ;;  %v5272_v32 = vld [vmem:[#allocation4 + $0xb0] sm:$0xf0] }
  0xdb   :  { %v5383_v40 = vor.u32 %v6592_v35, %v5382_v34  ;;  %v5416_v34 = vld [vmem:[#allocation4 + $0x1d0] sm:$0xf0] }
  0xdc   :  { %1811 = vmatpush.bf16.msrb.mxu2 %v4991_v30  ;;  %v1484_v30 = vadd.f32 %v1483_v13, %v1470_v54  ;;  %v6576_v54 = vld [vmem:[#allocation4 + $0x10c] sm:$0xf0] }
  0xdd   :  { %1829 = vmatpush.bf16.msrb.mxu0 %v5055_v38  ;;  %1788 = vmatmul.bf16.vlgmr.msra.gmra.mxu1 %v7099_v53  ;;  %v5431_v53 = vor.u32 %v6604_v28, %v5430_v3  ;;  %v5222_v38 = vld [vmem:[#allocation4 + $0x40] sm:$0xf]  ;;  %v6544_v3 = vld [vmem:[#allocation4 + $0xc] sm:$0xf0]  ;;  %v5304_v28 = vld [vmem:[#allocation4 + $0xf0] sm:$0xf0]  ;;  %v5319_v27 = vor.u32 %v6576_v54, %v5318_v20 }
  0xde   :  { %1843 = vmatpush.bf16.msrb.mxu1 %v5183_v45  ;;  %1801 = vmatpush.bf16.msrb.mxu3 %v4799_v50  ;;  %v5223_v48 = vor.u32 %v6552_v39, %v5222_v38  ;;  %v7184_v50 = vld [vmem:[%s7278_s4] sm:$0xf]  ;;  %v6558_v39 = vld [vmem:[#allocation4 + $0x84] sm:$0xf] }
  0xdf   :  { %v1852_v61 = vperm.slane %v7184_v50, 0 }
  0xe0   :  { %1812 = vmatpush.bf16.msrb.mxu2 %v4975_v44  ;;  %1830 = vmatmul.bf16.vlgmr.msrb.gmra.mxu0 %v7134_v22  ;;  %v5271_v22 = vor.u32 %v6564_v2, %v5270_v1  ;;  %v1523_v59 = vpop.f32.mrf.mxu0  ;;  %v1537_v37 = vpop.f32.mrf.mxu1  ;;  %v5190_v2 = vld [vmem:[#allocation4] sm:$0xf] }
  0xe1   :  { %1802 = vmatmul.bf16.vlgmr.msrb.gmra.mxu3 %v7103_v58  ;;  %v1497_v58 = vpop.f32.mrf.mxu2  ;;  %v1524_v36 = vadd.f32 %v1523_v59, %v1510_v29  ;;  %v1511_v44 = vpop.f32.mrf.mxu3  ;;  %v5191_v12 = vor.u32 %v6544_v3, %v5190_v2  ;;  %v5368_v2 = vld [vmem:[#allocation4 + $0x170] sm:$0xf0] }
  0xe2   :  { %2666 = vmatpush.bf16.msra.mxu3 %v5303_v51  ;;  %2680 = vmatpush.bf16.msra.mxu1 %v5431_v53  ;;  %v1498_v41 = vadd.f32 %v1497_v58, %v1484_v30  ;;  %v6548_v51 = vld [vmem:[#allocation4 + $0x2c] sm:$0xf0]  ;;  %v5432_v58 = vld [vmem:[#allocation4 + $0x1f0] sm:$0xf0]  ;;  %v6562_v30 = vld [vmem:[#allocation4 + $0xa4] sm:$0xf] }
  0xe3   :  { %v1538_v45 = vadd.f32 %v1537_v37, %v1524_v36 }
  0xe4   :  { %1813 = vmatpush.bf16.msrb.mxu2 %v4959_v60  ;;  %v1512_v55 = vadd.f32 %v1511_v44, %v1498_v41 }
  0xe6   :  { %2667 = vmatpush.bf16.msra.mxu3 %v5287_v63  ;;  %2681 = vmatpush.bf16.msra.mxu1 %v5415_v19  ;;  %v5288_v19 = vld [vmem:[#allocation4 + $0xd0] sm:$0xf0] }
  0xe7   :  { %v5291_v25 = vor.u32 %v6566_v14, %v5288_v19  ;;  %v6628_v14 = vld [vmem:[#allocation4 + $0x2ac] sm:$0xf0] }
  0xe8   :  { %1814 = vmatpush.bf16.msrb.mxu2 %v4943_v5  ;;  %v1539_v63 = vpop.f32.mrf.mxu1  ;;  %v5351_v5 = vor.u32 %v6584_v57, %v5350_v56  ;;  %v6550_v57 = vld [vmem:[#allocation4 + $0x44] sm:$0xf] }
  0xe9   :  { %v1551_v49 = vpop.f32.mrf.mxu2  ;;  %v7187_v53 = vpop.f32.mrf.mxu3 }
  0xea   :  { %2668 = vmatpush.bf16.msra.mxu3 %v5271_v22  ;;  %2682 = vmatpush.bf16.msra.mxu1 %v5399_v31  ;;  %v1552_v60 = vadd.f32 %v1551_v49, %v1538_v45  ;;  %v5307_v22 = vor.u32 %v6570_v4, %v5304_v28  ;;  %v6598_v31 = vld [vmem:[#allocation4 + $0x1c4] sm:$0xf]  ;;  %v5403_v49 = vor.u32 %v6594_v42, %v5400_v43  ;;  %v6624_v42 = vld [vmem:[#allocation4 + $0x28c] sm:$0xf0] }
  0xeb   :  { %v5419_v41 = vor.u32 %v6598_v31, %v5416_v34  ;;  %v6554_v45 = vld [vmem:[#allocation4 + $0x64] sm:$0xf]  ;;  %v1566_v4 = vadd.f32 %v7187_v53, %v7158_v33 }
  0xec   :  { %1815 = vmatpush.bf16.msrb.mxu2 %v4927_v21  ;;  %v1860_v10 = vadd.f32 %v1852_v61, %v1552_v60  ;;  %v6602_v21 = vld [vmem:[#allocation4 + $0x1e4] sm:$0xf] }
  0xed   :  { %5187 = vmatmul.msk.bf16.vlgmr.msrb.gmra.mxu1 %vm415_vm0, %v7128_v16  ;;  %v1525_v16 = vpop.f32.mrf.mxu0  ;;  %v5435_v59 = vor.u32 %v6602_v21, %v5432_v58 }
  0xee   :  { %2669 = vmatpush.bf16.msra.mxu3 %v5255_v23  ;;  %2683 = vmatpush.bf16.msra.mxu1 %v5383_v40  ;;  %v1526_v62 = vadd.f32 %v1525_v16, %v1512_v55  ;;  %v1868_v23 = vmul.f32 0.2, %v1860_v10  ;;  %v5256_v40 = vld [vmem:[#allocation4 + $0x90] sm:$0xf0] }
  0xef   :  { %1816 = vmatmul.bf16.vlgmr.msrb.gmra.mxu2 %v7131_v17  ;;  %v5206_v17 = vld [vmem:[#allocation4 + $0x20] sm:$0xf]  ;;  %v5259_v44 = vor.u32 %v6558_v39, %v5256_v40  ;;  %v5224_v16 = vld [vmem:[#allocation4 + $0x50] sm:$0xf0]  ;;  %v6569_v39 = vld [vmem:[#allocation4 + $0xd4] sm:$0xf0] }
  0xf0   :  { %v5207_v1 = vor.u32 %v6548_v51, %v5206_v17  ;;  %v1540_v7 = vadd.f32 %v1539_v63, %v1526_v62  ;;  %v1876_v35 = vmax.f32 %v1860_v10, %v1868_v23  ;;  %v6590_v51 = vld [vmem:[#allocation4 + $0x184] sm:$0xf]  ;;  %v6636_v62 = vld [vmem:[#allocation4 + $0x2ec] sm:$0xf0]  ;;  %v5227_v28 = vor.u32 %v6550_v57, %v5224_v16  ;;  %v5320_v40 = vld [vmem:[#allocation4 + $0x110] sm:$0xf0] }
  0xf1   :  { %v1553_v13 = vpop.f32.mrf.mxu2  ;;  %v1567_v37 = vpop.f32.mrf.mxu3  ;;  %v6542_v23 = vld [vmem:[#allocation4 + $0x4] sm:$0xf]  ;;  %v5278_v16 = vld [vmem:[#allocation4 + $0xa8] sm:$0xf] }
  0xf2   :  { %2670 = vmatpush.bf16.msra.mxu3 %v5239_v0  ;;  %2684 = vmatpush.bf16.msra.mxu1 %v5367_v52  ;;  %v1554_v18 = vadd.f32 %v1553_v13, %v1540_v7  ;;  %v5275_v0 = vor.u32 %v6562_v30, %v5272_v32  ;;  %v5384_v52 = vld [vmem:[#allocation4 + $0x190] sm:$0xf0]  ;;  %v6632_v7 = vld [vmem:[#allocation4 + $0x2cc] sm:$0xf0]  ;;  %v1568_v21 = vadd.f32 %v1567_v37, %v7165_v6  ;;  %v6578_v30 = vld [vmem:[#allocation4 + $0x124] sm:$0xf] }
  0xf3   :  { %v5387_v60 = vor.u32 %v6590_v51, %v5384_v52  ;;  %v5336_v32 = vld [vmem:[#allocation4 + $0x130] sm:$0xf0]  ;;  %v6574_v37 = vld [vmem:[#allocation4 + $0x104] sm:$0xf]  ;;  %v5494_v51 = vld [vmem:[#allocation4 + $0x260] sm:$0xf] }
  0xf4   :  { %v1864_v24 = vadd.f32 %v1852_v61, %v1554_v18  ;;  %v5558_v61 = vld [vmem:[#allocation4 + $0x2e0] sm:$0xf]  ;;  %v5352_v18 = vld [vmem:[#allocation4 + $0x150] sm:$0xf0]  ;;  %v5339_v6 = vor.u32 %v6578_v30, %v5336_v32  ;;  %v6620_v52 = vld [vmem:[#allocation4 + $0x26c] sm:$0xf0]  ;;  %v5323_v57 = vor.u32 %v6574_v37, %v5320_v40 }
  0xf5   :  { %v5559_v3 = vor.u32 %v6636_v62, %v5558_v61  ;;  %v5495_v61 = vor.u32 %v6620_v52, %v5494_v51  ;;  %v5686_v32 = vld [vmem:[#allocation4 + $0x3e0] sm:$0xf] }
  0xf6   :  { %2671 = vmatpush.bf16.msra.mxu3 %v5223_v48  ;;  %2685 = vmatpush.bf16.msra.mxu1 %v5351_v5  ;;  %v1872_v29 = vmul.f32 0.2, %v1864_v24  ;;  %v5240_v48 = vld [vmem:[#allocation4 + $0x70] sm:$0xf0]  ;;  %v5542_v5 = vld [vmem:[#allocation4 + $0x2c0] sm:$0xf] }
  0xf7   :  { %v5243_v56 = vor.u32 %v6554_v45, %v5240_v48  ;;  %2694 = vmatpush.bf16.msra.mxu2 %v5559_v3  ;;  %v5543_v9 = vor.u32 %v6632_v7, %v5542_v5  ;;  %v6561_v5 = vld [vmem:[#allocation4 + $0x94] sm:$0xf0]  ;;  %v5478_v7 = vld [vmem:[#allocation4 + $0x240] sm:$0xf] }
  0xf8   :  { %v1880_v36 = vmax.f32 %v1864_v24, %v1872_v29  ;;  %v5192_v24 = vld [vmem:[#allocation4 + $0x10] sm:$0xf0]  ;;  %v6573_v29 = vld [vmem:[#allocation4 + $0xf4] sm:$0xf0] }
  0xf9   :  { %v1579_v17 = vpop.f32.mrf.mxu2  ;;  %v1593_v63 = vpop.f32.mrf.mxu0  ;;  %v5195_v31 = vor.u32 %v6542_v23, %v5192_v24 }
  0xfa   :  { %2672 = vmatpush.bf16.msra.mxu3 %v5207_v1  ;;  %2686 = vmatpush.bf16.msra.mxu1 %v5335_v15  ;;  %v7189_v38 = vpack.c.bf16 %v1880_v36, %v1876_v35  ;;  %v6586_v1 = vld [vmem:[#allocation4 + $0x164] sm:$0xf]  ;;  %v1580_v19 = vadd.f32 %v1579_v17, %v1566_v4  ;;  %v5262_v4 = vld [vmem:[#allocation4 + $0x88] sm:$0xf] }
  0xfb   :  { %v5371_v13 = vor.u32 %v6586_v1, %v5368_v2  ;;  %v6582_v15 = vld [vmem:[#allocation4 + $0x144] sm:$0xf]  ;;  %2695 = vmatpush.bf16.msra.mxu2 %v5543_v9  ;;  %v1853_v2 = vperm.slane %v7184_v50, 1 }
  0xfc   :  { %v1607_v10 = vpop.f32.mrf.mxu1  ;;  %v1594_v58 = vadd.f32 %v1593_v63, %v1580_v19  ;;  %v6557_v19 = vld [vmem:[#allocation4 + $0x74] sm:$0xf0] }
  0xfe   :  { %2673 = vmatpush.bf16.msra.mxu3 %v5191_v12  ;;  %2687 = vmatpush.bf16.msra.mxu1 %v5319_v27  ;;  %v5208_v12 = vld [vmem:[#allocation4 + $0x30] sm:$0xf0]  ;;  %v5355_v27 = vor.u32 %v6582_v15, %v5352_v18  ;;  %v1608_v35 = vadd.f32 %v1607_v10, %v1594_v58  ;;  %v5462_v10 = vld [vmem:[#allocation4 + $0x220] sm:$0xf]  ;;  %v5263_v15 = vor.u32 %v6561_v5, %v5262_v4  ;;  %v5246_v18 = vld [vmem:[#allocation4 + $0x68] sm:$0xf] }
  0xff   :  { %v5211_v33 = vor.u32 %v6546_v8, %v5208_v12  ;;  %v6612_v12 = vld [vmem:[#allocation4 + $0x22c] sm:$0xf0]  ;;  %v5560_v58 = vld [vmem:[#allocation4 + $0x2f0] sm:$0xf0]  ;;  %v6593_v4 = vld [vmem:[#allocation4 + $0x194] sm:$0xf0] }
 0x100   :  { %v1621_v55 = vpop.f32.mrf.mxu3  ;;  %v6567_v5 = vld [vmem:[#allocation4 + $0xcc] sm:$0xf] }
 0x101   :  { %2674 = vmatmul.bf16.vlgmr.msra.gmra.mxu3 %v7189_v38  ;;  %v1581_v20 = vpop.f32.mrf.mxu2  ;;  %v1622_v43 = vadd.f32 %v1621_v55, %v1608_v35  ;;  %v6605_v35 = vld [vmem:[#allocation4 + $0x1f4] sm:$0xf0] }
 0x102   :  { %2722 = vmatpush.bf16.msrb.mxu3 %v5307_v22  ;;  %2736 = vmatpush.bf16.msrb.mxu1 %v5435_v59  ;;  %v5526_v22 = vld [vmem:[#allocation4 + $0x2a0] sm:$0xf]  ;;  %v1595_v59 = vpop.f32.mrf.mxu0  ;;  %v1582_v34 = vadd.f32 %v1581_v20, %v1568_v21  ;;  %v5463_v20 = vor.u32 %v6612_v12, %v5462_v10  ;;  %v6634_v21 = vld [vmem:[#allocation4 + $0x2e4] sm:$0xf] }
 0x103   :  { %v5527_v53 = vor.u32 %v6628_v14, %v5526_v22 }
 0x104   :  { %v1609_v45 = vpop.f32.mrf.mxu1 }
 0x105   :  { %2696 = vmatpush.bf16.msra.mxu2 %v5527_v53  ;;  %v6608_v53 = vld [vmem:[#allocation4 + $0x20c] sm:$0xf0] }
 0x106   :  { %2723 = vmatpush.bf16.msrb.mxu3 %v5291_v25  ;;  %2737 = vmatpush.bf16.msrb.mxu1 %v5419_v41  ;;  %v5310_v25 = vld [vmem:[#allocation4 + $0xe8] sm:$0xf]  ;;  %v5510_v41 = vld [vmem:[#allocation4 + $0x280] sm:$0xf] }
 0x107   :  { %v5311_v36 = vor.u32 %v6573_v29, %v5310_v25  ;;  %v5511_v48 = vor.u32 %v6624_v42, %v5510_v41  ;;  %v5247_v25 = vor.u32 %v6557_v19, %v5246_v18  ;;  %v6553_v29 = vld [vmem:[#allocation4 + $0x54] sm:$0xf0] }
 0x108   :  { %v1623_v54 = vpop.f32.mrf.mxu3 }
 0x109   :  { %2697 = vmatpush.bf16.msra.mxu2 %v5511_v48  ;;  %v5422_v48 = vld [vmem:[#allocation4 + $0x1c8] sm:$0xf] }
 0x10a   :  { %2724 = vmatpush.bf16.msrb.mxu3 %v5275_v0  ;;  %2738 = vmatpush.bf16.msrb.mxu1 %v5403_v49  ;;  %v5294_v0 = vld [vmem:[#allocation4 + $0xc8] sm:$0xf] }
 0x10d   :  { %2698 = vmatpush.bf16.msra.mxu2 %v5495_v61  ;;  %v6597_v61 = vld [vmem:[#allocation4 + $0x1b4] sm:$0xf0] }
 0x10e   :  { %2725 = vmatpush.bf16.msrb.mxu3 %v5259_v44  ;;  %2739 = vmatpush.bf16.msrb.mxu1 %v5387_v60  ;;  %v1596_v44 = vadd.f32 %v1595_v59, %v1582_v34  ;;  %v6565_v60 = vld [vmem:[#allocation4 + $0xb4] sm:$0xf0]  ;;  %v6668_v59 = vld [vmem:[#allocation4 + $0x3ec] sm:$0xf0]  ;;  %v5438_v34 = vld [vmem:[#allocation4 + $0x1e8] sm:$0xf] }
 0x10f   :  { %v5279_v3 = vor.u32 %v6565_v60, %v5278_v16  ;;  %v5439_v42 = vor.u32 %v6605_v35, %v5438_v34  ;;  %v5406_v16 = vld [vmem:[#allocation4 + $0x1a8] sm:$0xf]  ;;  %v6559_v34 = vld [vmem:[#allocation4 + $0x8c] sm:$0xf]  ;;  %v5264_v35 = vld [vmem:[#allocation4 + $0x98] sm:$0xf0] }
 0x110   :  { %v1649_v17 = vpop.f32.mrf.mxu3  ;;  %v1610_v63 = vadd.f32 %v1609_v45, %v1596_v44  ;;  %v6549_v44 = vld [vmem:[#allocation4 + $0x34] sm:$0xf0] }
 0x112   :  { %2726 = vmatpush.bf16.msrb.mxu3 %v5243_v56  ;;  %2740 = vmatpush.bf16.msrb.mxu1 %v5371_v13  ;;  %v1635_v49 = vpop.f32.mrf.mxu2  ;;  %v5295_v56 = vor.u32 %v6569_v39, %v5294_v0  ;;  %v1624_v55 = vadd.f32 %v1623_v54, %v1610_v63  ;;  %v5687_v0 = vor.u32 %v6668_v59, %v5686_v32  ;;  %v6630_v39 = vld [vmem:[#allocation4 + $0x2c4] sm:$0xf]  ;;  %v5312_v63 = vld [vmem:[#allocation4 + $0xf8] sm:$0xf0] }
 0x113   :  { %v1636_v62 = vadd.f32 %v1635_v49, %v1622_v43  ;;  %v5214_v43 = vld [vmem:[#allocation4 + $0x28] sm:$0xf]  ;;  %v6601_v49 = vld [vmem:[#allocation4 + $0x1d4] sm:$0xf0] }
 0x114   :  { %2708 = vmatpush.bf16.msra.mxu0 %v5687_v0  ;;  %v5215_v51 = vor.u32 %v6549_v44, %v5214_v43  ;;  %v5423_v52 = vor.u32 %v6601_v49, %v5422_v48  ;;  %v5496_v0 = vld [vmem:[#allocation4 + $0x270] sm:$0xf0]  ;;  %v5267_v48 = vor.u32 %v6559_v34, %v5264_v35  ;;  %v6555_v49 = vld [vmem:[#allocation4 + $0x6c] sm:$0xf]  ;;  %v5424_v34 = vld [vmem:[#allocation4 + $0x1d8] sm:$0xf0] }
 0x115   :  { %v1650_v1 = vadd.f32 %v1649_v17, %v1636_v62  ;;  %v6571_v62 = vld [vmem:[#allocation4 + $0xec] sm:$0xf] }
 0x116   :  { %2727 = vmatpush.bf16.msrb.mxu3 %v5227_v28  ;;  %2741 = vmatpush.bf16.msrb.mxu1 %v5355_v27  ;;  %v6616_v28 = vld [vmem:[#allocation4 + $0x24c] sm:$0xf0]  ;;  %v5230_v27 = vld [vmem:[#allocation4 + $0x48] sm:$0xf] }
 0x117   :  { %v5479_v8 = vor.u32 %v6616_v28, %v5478_v7  ;;  %v1861_v22 = vadd.f32 %v1853_v2, %v1650_v1  ;;  %v5231_v41 = vor.u32 %v6553_v29, %v5230_v27  ;;  %v5390_v1 = vld [vmem:[#allocation4 + $0x188] sm:$0xf]  ;;  %v5296_v7 = vld [vmem:[#allocation4 + $0xd8] sm:$0xf0]  ;;  %v6626_v28 = vld [vmem:[#allocation4 + $0x2a4] sm:$0xf] }
 0x118   :  { %v1651_v14 = vpop.f32.mrf.mxu3  ;;  %v5391_v18 = vor.u32 %v6593_v4, %v5390_v1  ;;  %v5299_v19 = vor.u32 %v6567_v5, %v5296_v7  ;;  %v5358_v27 = vld [vmem:[#allocation4 + $0x148] sm:$0xf]  ;;  %v5464_v1 = vld [vmem:[#allocation4 + $0x230] sm:$0xf0]  ;;  %v6648_v4 = vld [vmem:[#allocation4 + $0x34c] sm:$0xf0] }
 0x119   :  { %2699 = vmatpush.bf16.msra.mxu2 %v5479_v8  ;;  %v1869_v23 = vmul.f32 0.2, %v1861_v22  ;;  %v5528_v8 = vld [vmem:[#allocation4 + $0x2b0] sm:$0xf0]  ;;  %v1691_v10 = vpop.f32.mrf.mxu0 }
 0x11a   :  { %2728 = vmatpush.bf16.msrb.mxu3 %v5211_v33  ;;  %2742 = vmatpush.bf16.msrb.mxu1 %v5339_v6  ;;  %v1637_v9 = vpop.f32.mrf.mxu2  ;;  %v5446_v33 = vld [vmem:[#allocation4 + $0x200] sm:$0xf]  ;;  %v5544_v6 = vld [vmem:[#allocation4 + $0x2d0] sm:$0xf0]  ;;  %v1663_v60 = vpop.f32.mrf.mxu1  ;;  %v5531_v12 = vor.u32 %v6626_v28, %v5528_v8  ;;  %v5326_v8 = vld [vmem:[#allocation4 + $0x108] sm:$0xf] }
 0x11b   :  { %v1638_v13 = vadd.f32 %v1637_v9, %v1624_v55  ;;  %v5447_v30 = vor.u32 %v6608_v53, %v5446_v33  ;;  %v1877_v37 = vmax.f32 %v1861_v22, %v1869_v23  ;;  %v5547_v17 = vor.u32 %v6630_v39, %v5544_v6  ;;  %v5670_v9 = vld [vmem:[#allocation4 + $0x3c0] sm:$0xf]  ;;  %v5280_v33 = vld [vmem:[#allocation4 + $0xb8] sm:$0xf0]  ;;  %v6622_v53 = vld [vmem:[#allocation4 + $0x284] sm:$0xf] }
 0x11c   :  { %v5638_v39 = vld [vmem:[#allocation4 + $0x380] sm:$0xf] }
 0x11d   :  { %v1652_v54 = vadd.f32 %v1651_v14, %v1638_v13  ;;  %2700 = vmatpush.bf16.msra.mxu2 %v5463_v20  ;;  %v6664_v13 = vld [vmem:[#allocation4 + $0x3cc] sm:$0xf0]  ;;  %v5374_v14 = vld [vmem:[#allocation4 + $0x168] sm:$0xf]  ;;  %v6589_v20 = vld [vmem:[#allocation4 + $0x174] sm:$0xf0] }
 0x11e   :  { %2729 = vmatpush.bf16.msrb.mxu3 %v5195_v31  ;;  %2743 = vmatpush.bf16.msrb.mxu1 %v5323_v57  ;;  %v6545_v57 = vld [vmem:[#allocation4 + $0x14] sm:$0xf0]  ;;  %v5375_v32 = vor.u32 %v6589_v20, %v5374_v14  ;;  %v6606_v20 = vld [vmem:[#allocation4 + $0x204] sm:$0xf] }
 0x11f   :  { %v1865_v24 = vadd.f32 %v1853_v2, %v1652_v54  ;;  %v5407_v2 = vor.u32 %v6597_v61, %v5406_v16  ;;  %v6563_v54 = vld [vmem:[#allocation4 + $0xac] sm:$0xf]  ;;  %v6652_v61 = vld [vmem:[#allocation4 + $0x36c] sm:$0xf0] }
 0x120   :  { %v5283_v59 = vor.u32 %v6563_v54, %v5280_v33  ;;  %v5448_v54 = vld [vmem:[#allocation4 + $0x210] sm:$0xf0]  ;;  %v5590_v33 = vld [vmem:[#allocation4 + $0x320] sm:$0xf] }
 0x121   :  { %2730 = vmatmul.bf16.vlgmr.msrb.gmra.mxu3 %v7189_v38  ;;  %v1873_v31 = vmul.f32 0.2, %v1865_v24  ;;  %2701 = vmatpush.bf16.msra.mxu2 %v5447_v30  ;;  %v1664_v30 = vadd.f32 %v1663_v60, %v7160_v47  ;;  %v1693_v43 = vpop.f32.mrf.mxu0  ;;  %v5622_v60 = vld [vmem:[#allocation4 + $0x360] sm:$0xf] }
 0x122   :  { %2778 = vmatpush.bf16.msra.mxu3 %v5311_v36  ;;  %v5563_v36 = vor.u32 %v6634_v21, %v5560_v58  ;;  %v5512_v21 = vld [vmem:[#allocation4 + $0x290] sm:$0xf0]  ;;  %v5654_v58 = vld [vmem:[#allocation4 + $0x3a0] sm:$0xf] }
 0x123   :  { %v1881_v40 = vmax.f32 %v1865_v24, %v1873_v31  ;;  %v5515_v23 = vor.u32 %v6622_v53, %v5512_v21  ;;  %v6660_v24 = vld [vmem:[#allocation4 + $0x3ac] sm:$0xf0]  ;;  %v6585_v31 = vld [vmem:[#allocation4 + $0x154] sm:$0xf0] }
 0x124   :  { %v1677_v22 = vpop.f32.mrf.mxu3  ;;  %v5655_v29 = vor.u32 %v6660_v24, %v5654_v58  ;;  %v5359_v44 = vor.u32 %v6585_v31, %v5358_v27  ;;  %v6547_v27 = vld [vmem:[#allocation4 + $0x2c] sm:$0xf] }
 0x125   :  { %v7197_v45 = vpack.c.bf16 %v1881_v40, %v1877_v37  ;;  %2750 = vmatpush.bf16.msrb.mxu2 %v5563_v36  ;;  %v6618_v36 = vld [vmem:[#allocation4 + $0x264] sm:$0xf]  ;;  %v1678_v6 = vadd.f32 %v1677_v22, %v1664_v30  ;;  %v6656_v40 = vld [vmem:[#allocation4 + $0x38c] sm:$0xf0]  ;;  %v6603_v22 = vld [vmem:[#allocation4 + $0x1ec] sm:$0xf]  ;;  %v5451_v30 = vor.u32 %v6606_v20, %v5448_v54 }
 0x126   :  { %2779 = vmatpush.bf16.msra.mxu3 %v5295_v56  ;;  %v5198_v56 = vld [vmem:[#allocation4 + $0x8] sm:$0xf]  ;;  %v5499_v37 = vor.u32 %v6618_v36, %v5496_v0  ;;  %v5639_v47 = vor.u32 %v6656_v40, %v5638_v39  ;;  %v6599_v31 = vld [vmem:[#allocation4 + $0x1cc] sm:$0xf]  ;;  %v5574_v0 = vld [vmem:[#allocation4 + $0x300] sm:$0xf] }
 0x127   :  { %2688 = vmatmul.bf16.vlgmr.msra.gmra.mxu1 %v7197_v45  ;;  %v5199_v55 = vor.u32 %v6545_v57, %v5198_v56  ;;  %v5248_v57 = vld [vmem:[#allocation4 + $0x78] sm:$0xf0]  ;;  %v6640_v39 = vld [vmem:[#allocation4 + $0x30c] sm:$0xf0]  ;;  %v5688_v40 = vld [vmem:[#allocation4 + $0x3f0] sm:$0xf0] }
 0x128   :  { %2792 = vmatpush.bf16.msra.mxu1 %v5439_v42  ;;  %v6581_v42 = vld [vmem:[#allocation4 + $0x134] sm:$0xf0]  ;;  %v5251_v28 = vor.u32 %v6555_v49, %v5248_v57  ;;  %v1854_v49 = vperm.slane %v7184_v50, 2 }
 0x129   :  { %2751 = vmatpush.bf16.msrb.mxu2 %v5547_v17  ;;  %v6614_v17 = vld [vmem:[#allocation4 + $0x244] sm:$0xf] }
 0x12a   :  { %2780 = vmatpush.bf16.msra.mxu3 %v5279_v3  ;;  %v5315_v3 = vor.u32 %v6571_v62, %v5312_v63  ;;  %v1692_v62 = vadd.f32 %v1691_v10, %v1678_v6  ;;  %v5623_v63 = vor.u32 %v6652_v61, %v5622_v60 }
 0x12c   :  { %2793 = vmatpush.bf16.msra.mxu1 %v5423_v52  ;;  %v1679_v56 = vpop.f32.mrf.mxu3 }
 0x12d   :  { %2752 = vmatpush.bf16.msrb.mxu2 %v5531_v12  ;;  %v6551_v12 = vld [vmem:[#allocation4 + $0x4c] sm:$0xf] }
 0x12e   :  { %2781 = vmatpush.bf16.msra.mxu3 %v5263_v15  ;;  %v5671_v15 = vor.u32 %v6664_v13, %v5670_v9  ;;  %v6577_v9 = vld [vmem:[#allocation4 + $0x114] sm:$0xf0]  ;;  %v5232_v13 = vld [vmem:[#allocation4 + $0x58] sm:$0xf0] }
 0x12f   :  { %v5327_v21 = vor.u32 %v6577_v9, %v5326_v8  ;;  %v5235_v58 = vor.u32 %v6551_v12, %v5232_v13  ;;  %v5656_v9 = vld [vmem:[#allocation4 + $0x3b0] sm:$0xf0] }
 0x130   :  { %2794 = vmatpush.bf16.msra.mxu1 %v5407_v2  ;;  %2709 = vmatpush.bf16.msra.mxu0 %v5671_v15 }
 0x131   :  { %2753 = vmatpush.bf16.msrb.mxu2 %v5515_v23  ;;  %v1747_v23 = vpop.f32.mrf.mxu0 }
 0x132   :  { %2782 = vmatpush.bf16.msra.mxu3 %v5247_v25  ;;  %v1665_v25 = vpop.f32.mrf.mxu1  ;;  %v1705_v52 = vpop.f32.mrf.mxu2 }
 0x133   :  { %v1666_v5 = vadd.f32 %v1665_v25, %v7169_v26  ;;  %v1706_v15 = vadd.f32 %v1705_v52, %v1692_v62  ;;  %v6644_v26 = vld [vmem:[#allocation4 + $0x32c] sm:$0xf0]  ;;  %v5575_v52 = vor.u32 %v6640_v39, %v5574_v0 }
 0x134   :  { %2795 = vmatpush.bf16.msra.mxu1 %v5391_v18  ;;  %2710 = vmatpush.bf16.msra.mxu0 %v5655_v29  ;;  %v5216_v29 = vld [vmem:[#allocation4 + $0x38] sm:$0xf0]  ;;  %v5591_v35 = vor.u32 %v6644_v26, %v5590_v33  ;;  %v6583_v26 = vld [vmem:[#allocation4 + $0x14c] sm:$0xf] }
 0x135   :  { %2754 = vmatpush.bf16.msrb.mxu2 %v5499_v37  ;;  %v1680_v18 = vadd.f32 %v1679_v56, %v1666_v5  ;;  %v5219_v6 = vor.u32 %v6547_v27, %v5216_v29  ;;  %v6666_v37 = vld [vmem:[#allocation4 + $0x3e4] sm:$0xf]  ;;  %v5640_v27 = vld [vmem:[#allocation4 + $0x390] sm:$0xf0] }
 0x136   :  { %2783 = vmatpush.bf16.msra.mxu3 %v5231_v41  ;;  %v5342_v41 = vld [vmem:[#allocation4 + $0x128] sm:$0xf]  ;;  %v5691_v56 = vor.u32 %v6666_v37, %v5688_v40  ;;  %v6629_v37 = vld [vmem:[#allocation4 + $0x2b4] sm:$0xf0] }
 0x137   :  { %2744 = vmatmul.bf16.vlgmr.msrb.gmra.mxu1 %v7197_v45  ;;  %v5343_v7 = vor.u32 %v6581_v42, %v5342_v41  ;;  %v5427_v42 = vor.u32 %v6599_v31, %v5424_v34  ;;  %v6579_v34 = vld [vmem:[#allocation4 + $0x12c] sm:$0xf] }
 0x138   :  { %2796 = vmatpush.bf16.msra.mxu1 %v5375_v32  ;;  %2711 = vmatpush.bf16.msra.mxu0 %v5639_v47  ;;  %v1694_v32 = vadd.f32 %v1693_v43, %v1680_v18  ;;  %v6543_v47 = vld [vmem:[#allocation4 + $0xc] sm:$0xf]  ;;  %v5566_v18 = vld [vmem:[#allocation4 + $0x2e8] sm:$0xf] }
 0x13a   :  { %2784 = vmatpush.bf16.msra.mxu3 %v5215_v51  ;;  %v5480_v51 = vld [vmem:[#allocation4 + $0x250] sm:$0xf0]  ;;  %v1719_v2 = vpop.f32.mrf.mxu1  ;;  %v1707_v36 = vpop.f32.mrf.mxu2 }
 0x13b   :  { %v5483_v16 = vor.u32 %v6614_v17, %v5480_v51  ;;  %v1720_v53 = vadd.f32 %v1719_v2, %v1706_v15  ;;  %v6595_v17 = vld [vmem:[#allocation4 + $0x1ac] sm:$0xf]  ;;  %v5408_v51 = vld [vmem:[#allocation4 + $0x1b8] sm:$0xf0]  ;;  %v6662_v2 = vld [vmem:[#allocation4 + $0x3c4] sm:$0xf] }
 0x13c   :  { %2797 = vmatpush.bf16.msra.mxu1 %v5359_v44  ;;  %2712 = vmatpush.bf16.msra.mxu0 %v5623_v63  ;;  %v5200_v44 = vld [vmem:[#allocation4 + $0x18] sm:$0xf0]  ;;  %v5411_v61 = vor.u32 %v6595_v17, %v5408_v51 }
 0x13d   :  { %2755 = vmatpush.bf16.msrb.mxu2 %v5483_v16  ;;  %v5203_v16 = vor.u32 %v6543_v47, %v5200_v44  ;;  %v5518_v44 = vld [vmem:[#allocation4 + $0x288] sm:$0xf] }
 0x13e   :  { %2785 = vmatpush.bf16.msra.mxu3 %v5199_v55  ;;  %v6610_v55 = vld [vmem:[#allocation4 + $0x224] sm:$0xf] }
 0x13f   :  { %v5467_v10 = vor.u32 %v6610_v55, %v5464_v1  ;;  %v6591_v55 = vld [vmem:[#allocation4 + $0x18c] sm:$0xf]  ;;  %v5392_v1 = vld [vmem:[#allocation4 + $0x198] sm:$0xf0] }
 0x140   :  { %2798 = vmatpush.bf16.msra.mxu1 %v5343_v7  ;;  %v5395_v8 = vor.u32 %v6591_v55, %v5392_v1  ;;  %v6638_v1 = vld [vmem:[#allocation4 + $0x304] sm:$0xf] }
 0x141   :  { %2786 = vmatmul.bf16.vlgmr.msra.gmra.mxu3 %v7189_v38  ;;  %2756 = vmatpush.bf16.msrb.mxu2 %v5467_v10  ;;  %v5376_v10 = vld [vmem:[#allocation4 + $0x178] sm:$0xf0] }
 0x142   :  { %2834 = vmatpush.bf16.msrb.mxu3 %v5315_v3  ;;  %v5606_v3 = vld [vmem:[#allocation4 + $0x340] sm:$0xf]  ;;  %v1721_v41 = vpop.f32.mrf.mxu1 }
 0x143   :  { %v5607_v14 = vor.u32 %v6648_v4, %v5606_v3  ;;  %v1749_v3 = vpop.f32.mrf.mxu0  ;;  %v5672_v4 = vld [vmem:[#allocation4 + $0x3d0] sm:$0xf0] }
 0x144   :  { %v1733_v24 = vpop.f32.mrf.mxu3  ;;  %2799 = vmatpush.bf16.msra.mxu1 %v5327_v21  ;;  %v5675_v7 = vor.u32 %v6662_v2, %v5672_v4  ;;  %v5576_v2 = vld [vmem:[#allocation4 + $0x310] sm:$0xf0] }
 0x145   :  { %2713 = vmatpush.bf16.msra.mxu0 %v5607_v14  ;;  %2757 = vmatpush.bf16.msrb.mxu2 %v5451_v30 }
 0x146   :  { %2835 = vmatpush.bf16.msrb.mxu3 %v5299_v19  ;;  %v5440_v19 = vld [vmem:[#allocation4 + $0x1f8] sm:$0xf0] }
 0x147   :  { %v5443_v25 = vor.u32 %v6603_v22, %v5440_v19  ;;  %2800 = vmatmul.bf16.vlgmr.msra.gmra.mxu1 %v7197_v45  ;;  %v6587_v22 = vld [vmem:[#allocation4 + $0x16c] sm:$0xf]  ;;  %v6637_v19 = vld [vmem:[#allocation4 + $0x2f4] sm:$0xf0] }
 0x148   :  { %v5379_v20 = vor.u32 %v6587_v22, %v5376_v10  ;;  %v5567_v21 = vor.u32 %v6637_v19, %v5566_v18 }
 0x149   :  { %2848 = vmatpush.bf16.msrb.mxu1 %v5443_v25  ;;  %2714 = vmatpush.bf16.msra.mxu0 %v5591_v35  ;;  %v6654_v25 = vld [vmem:[#allocation4 + $0x384] sm:$0xf]  ;;  %v5344_v35 = vld [vmem:[#allocation4 + $0x138] sm:$0xf0] }
 0x14a   :  { %2836 = vmatpush.bf16.msrb.mxu3 %v5283_v59  ;;  %v1734_v59 = vadd.f32 %v1733_v24, %v1720_v53  ;;  %v5360_v53 = vld [vmem:[#allocation4 + $0x158] sm:$0xf0]  ;;  %v6633_v24 = vld [vmem:[#allocation4 + $0x2d4] sm:$0xf0]  ;;  %v5643_v30 = vor.u32 %v6654_v25, %v5640_v27  ;;  %v5347_v40 = vor.u32 %v6579_v34, %v5344_v35 }
 0x14b   :  { %v5363_v29 = vor.u32 %v6583_v26, %v5360_v53  ;;  %v1775_v31 = vpop.f32.mrf.mxu0 }
 0x14c   :  { %v1748_v43 = vadd.f32 %v1747_v23, %v1734_v59  ;;  %v1735_v60 = vpop.f32.mrf.mxu3  ;;  %v5624_v59 = vld [vmem:[#allocation4 + $0x370] sm:$0xf0] }
 0x14d   :  { %2849 = vmatpush.bf16.msrb.mxu1 %v5427_v42  ;;  %2715 = vmatpush.bf16.msra.mxu0 %v5575_v52  ;;  %v5328_v42 = vld [vmem:[#allocation4 + $0x118] sm:$0xf0] }
 0x14e   :  { %2837 = vmatpush.bf16.msrb.mxu3 %v5267_v48  ;;  %v1708_v48 = vadd.f32 %v1707_v36, %v1694_v32  ;;  %v1862_v62 = vadd.f32 %v1854_v49, %v1748_v43  ;;  %v6650_v32 = vld [vmem:[#allocation4 + $0x364] sm:$0xf] }
 0x14f   :  { %v5627_v39 = vor.u32 %v6650_v32, %v5624_v59  ;;  %v6646_v43 = vld [vmem:[#allocation4 + $0x344] sm:$0xf]  ;;  %v6631_v59 = vld [vmem:[#allocation4 + $0x2cc] sm:$0xf] }
 0x150   :  { %v1722_v57 = vadd.f32 %v1721_v41, %v1708_v48  ;;  %v1870_v12 = vmul.f32 0.2, %v1862_v62  ;;  %v6575_v41 = vld [vmem:[#allocation4 + $0x10c] sm:$0xf]  ;;  %v6625_v48 = vld [vmem:[#allocation4 + $0x294] sm:$0xf0] }
 0x151   :  { %2764 = vmatpush.bf16.msrb.mxu0 %v5691_v56  ;;  %2850 = vmatpush.bf16.msrb.mxu1 %v5411_v61  ;;  %v5331_v17 = vor.u32 %v6575_v41, %v5328_v42  ;;  %v6642_v56 = vld [vmem:[#allocation4 + $0x324] sm:$0xf]  ;;  %v5592_v61 = vld [vmem:[#allocation4 + $0x330] sm:$0xf0] }
 0x152   :  { %2838 = vmatpush.bf16.msrb.mxu3 %v5251_v28  ;;  %v1736_v63 = vadd.f32 %v1735_v60, %v1722_v57  ;;  %v6658_v28 = vld [vmem:[#allocation4 + $0x3a4] sm:$0xf]  ;;  %v1878_v54 = vmax.f32 %v1862_v62, %v1870_v12  ;;  %v1761_v36 = vpop.f32.mrf.mxu2  ;;  %v5502_v60 = vld [vmem:[#allocation4 + $0x268] sm:$0xf]  ;;  %v5595_v55 = vor.u32 %v6642_v56, %v5592_v61 }
 0x153   :  { %v5659_v14 = vor.u32 %v6658_v28, %v5656_v9  ;;  %v1762_v52 = vadd.f32 %v1761_v36, %v7167_v11  ;;  %v1777_v62 = vpop.f32.mrf.mxu0  ;;  %v5579_v11 = vor.u32 %v6638_v1, %v5576_v2  ;;  %v6617_v9 = vld [vmem:[#allocation4 + $0x254] sm:$0xf0]  ;;  %v6615_v2 = vld [vmem:[#allocation4 + $0x24c] sm:$0xf] }
 0x154   :  { %v1750_v5 = vadd.f32 %v1749_v3, %v1736_v63  ;;  %v6621_v63 = vld [vmem:[#allocation4 + $0x274] sm:$0xf0] }
 0x155   :  { %2765 = vmatpush.bf16.msrb.mxu0 %v5675_v7  ;;  %2851 = vmatpush.bf16.msrb.mxu1 %v5395_v8  ;;  %v5503_v7 = vor.u32 %v6621_v63, %v5502_v60  ;;  %v5486_v8 = vld [vmem:[#allocation4 + $0x248] sm:$0xf]  ;;  %v5504_v60 = vld [vmem:[#allocation4 + $0x278] sm:$0xf0]  ;;  %v6665_v63 = vld [vmem:[#allocation4 + $0x3d4] sm:$0xf0] }
 0x156   :  { %2839 = vmatpush.bf16.msrb.mxu3 %v5235_v58  ;;  %v1866_v13 = vadd.f32 %v1854_v49, %v1750_v5  ;;  %v5550_v58 = vld [vmem:[#allocation4 + $0x2c8] sm:$0xf]  ;;  %v5608_v49 = vld [vmem:[#allocation4 + $0x350] sm:$0xf0]  ;;  %v1776_v5 = vadd.f32 %v1775_v31, %v1762_v52  ;;  %v5487_v22 = vor.u32 %v6617_v9, %v5486_v8  ;;  %v5552_v31 = vld [vmem:[#allocation4 + $0x2d8] sm:$0xf0] }
 0x157   :  { %v5551_v0 = vor.u32 %v6633_v24, %v5550_v58  ;;  %v5611_v51 = vor.u32 %v6646_v43, %v5608_v49  ;;  %v6635_v58 = vld [vmem:[#allocation4 + $0x2ec] sm:$0xf]  ;;  %v5568_v24 = vld [vmem:[#allocation4 + $0x2f8] sm:$0xf0]  ;;  %v5694_v49 = vld [vmem:[#allocation4 + $0x3e8] sm:$0xf] }
 0x158   :  { %v1874_v15 = vmul.f32 0.2, %v1866_v13  ;;  %v5472_v8 = vld [vmem:[#allocation4 + $0x238] sm:$0xf0]  ;;  %v5646_v9 = vld [vmem:[#allocation4 + $0x388] sm:$0xf] }
 0x159   :  { %2766 = vmatpush.bf16.msrb.mxu0 %v5659_v14  ;;  %2852 = vmatpush.bf16.msrb.mxu1 %v5379_v20  ;;  %v5470_v14 = vld [vmem:[#allocation4 + $0x228] sm:$0xf] }
 0x15a   :  { %2840 = vmatpush.bf16.msrb.mxu3 %v5219_v6  ;;  %v1882_v33 = vmax.f32 %v1866_v13, %v1874_v15  ;;  %v5534_v6 = vld [vmem:[#allocation4 + $0x2a8] sm:$0xf]  ;;  %v1763_v3 = vpop.f32.mrf.mxu2  ;;  %v6613_v15 = vld [vmem:[#allocation4 + $0x234] sm:$0xf0] }
 0x15b   :  { %v5535_v47 = vor.u32 %v6629_v37, %v5534_v6  ;;  %v1764_v12 = vadd.f32 %v1763_v3, %v7171_v46  ;;  %v6609_v46 = vld [vmem:[#allocation4 + $0x214] sm:$0xf0]  ;;  %v5555_v6 = vor.u32 %v6631_v59, %v5552_v31  ;;  %v6627_v37 = vld [vmem:[#allocation4 + $0x2ac] sm:$0xf]  ;;  %v5488_v3 = vld [vmem:[#allocation4 + $0x258] sm:$0xf0] }
 0x15c   :  { %v7207_v23 = vpack.c.bf16 %v1882_v33, %v1878_v54  ;;  %v6659_v59 = vld [vmem:[#allocation4 + $0x3ac] sm:$0xf]  ;;  %v5664_v31 = vld [vmem:[#allocation4 + $0x3b8] sm:$0xf0] }
 0x15d   :  { %2767 = vmatpush.bf16.msrb.mxu0 %v5643_v30  ;;  %2853 = vmatpush.bf16.msrb.mxu1 %v5363_v29  ;;  %v1831_v10 = vpop.f32.mrf.mxu0  ;;  %v1778_v20 = vadd.f32 %v1777_v62, %v1764_v12  ;;  %v1855_v29 = vperm.slane %v7184_v50, 3  ;;  %v5571_v30 = vor.u32 %v6635_v58, %v5568_v24  ;;  %v5678_v62 = vld [vmem:[#allocation4 + $0x3c8] sm:$0xf]  ;;  %v6657_v12 = vld [vmem:[#allocation4 + $0x394] sm:$0xf0] }
 0x15e   :  { %2841 = vmatpush.bf16.msrb.mxu3 %v5203_v16  ;;  %2702 = vmatmul.bf16.vlgmr.msra.gmra.mxu2 %v7207_v23  ;;  %v5519_v16 = vor.u32 %v6625_v48, %v5518_v44  ;;  %v6623_v44 = vld [vmem:[#allocation4 + $0x28c] sm:$0xf]  ;;  %v5520_v48 = vld [vmem:[#allocation4 + $0x298] sm:$0xf0]  ;;  %v5679_v1 = vor.u32 %v6665_v63, %v5678_v62  ;;  %v6641_v58 = vld [vmem:[#allocation4 + $0x314] sm:$0xf0] }
 0x15f   :  { %2806 = vmatpush.bf16.msra.mxu2 %v5567_v21  ;;  %v5454_v21 = vld [vmem:[#allocation4 + $0x208] sm:$0xf]  ;;  %v5523_v56 = vor.u32 %v6623_v44, %v5520_v48  ;;  %v6667_v24 = vld [vmem:[#allocation4 + $0x3ec] sm:$0xf]  ;;  %v6696_v48 = vld [vmem:[#allocation6 + $0xcc] sm:$0xf0] }
 0x160   :  { %v5455_v27 = vor.u32 %v6609_v46, %v5454_v21  ;;  %v5582_v46 = vld [vmem:[#allocation4 + $0x308] sm:$0xf]  ;;  %v5766_v62 = vld [vmem:[#allocation6 + $0x80] sm:$0xf]  ;;  %v6688_v63 = vld [vmem:[#allocation6 + $0x8c] sm:$0xf0] }
 0x161   :  { %2842 = vmatmul.bf16.vlgmr.msrb.gmra.mxu3 %v7189_v38  ;;  %v1789_v38 = vpop.f32.mrf.mxu1  ;;  %2768 = vmatpush.bf16.msrb.mxu0 %v5627_v39 }
 0x162   :  { %2854 = vmatpush.bf16.msrb.mxu1 %v5347_v40  ;;  %v1790_v28 = vadd.f32 %v1789_v38, %v1776_v5  ;;  %v5536_v40 = vld [vmem:[#allocation4 + $0x2b8] sm:$0xf0]  ;;  %v6661_v5 = vld [vmem:[#allocation4 + $0x3b4] sm:$0xf0] }
 0x163   :  { %2807 = vmatpush.bf16.msra.mxu2 %v5551_v0  ;;  %v5539_v50 = vor.u32 %v6627_v37, %v5536_v40  ;;  %v6647_v37 = vld [vmem:[#allocation4 + $0x34c] sm:$0xf]  ;;  %v5616_v40 = vld [vmem:[#allocation4 + $0x358] sm:$0xf0] }
 0x164   :  { %v1803_v4 = vpop.f32.mrf.mxu3 }
 0x165   :  { %2769 = vmatpush.bf16.msrb.mxu0 %v5611_v51  ;;  %v1804_v13 = vadd.f32 %v1803_v4, %v1790_v28  ;;  %v1833_v35 = vpop.f32.mrf.mxu0  ;;  %v5662_v4 = vld [vmem:[#allocation4 + $0x3a8] sm:$0xf]  ;;  %v6611_v28 = vld [vmem:[#allocation4 + $0x22c] sm:$0xf] }
 0x166   :  { %2855 = vmatpush.bf16.msrb.mxu1 %v5331_v17  ;;  %v6669_v17 = vld [vmem:[#allocation4 + $0x3f4] sm:$0xf0] }
 0x167   :  { %2808 = vmatpush.bf16.msra.mxu2 %v5535_v47 }
 0x169   :  { %v1791_v57 = vpop.f32.mrf.mxu1  ;;  %2770 = vmatpush.bf16.msrb.mxu0 %v5595_v55  ;;  %2856 = vmatmul.bf16.vlgmr.msrb.gmra.mxu1 %v7197_v45  ;;  %v5471_v45 = vor.u32 %v6613_v15, %v5470_v14  ;;  %v5456_v14 = vld [vmem:[#allocation4 + $0x218] sm:$0xf0]  ;;  %v5630_v15 = vld [vmem:[#allocation4 + $0x368] sm:$0xf] }
 0x16a   :  { %v1792_v26 = vadd.f32 %v1791_v57, %v1778_v20  ;;  %v5695_v57 = vor.u32 %v6669_v17, %v5694_v49  ;;  %v5600_v49 = vld [vmem:[#allocation4 + $0x338] sm:$0xf0] }
 0x16b   :  { %2809 = vmatpush.bf16.msra.mxu2 %v5519_v16  ;;  %v6619_v16 = vld [vmem:[#allocation4 + $0x26c] sm:$0xf] }
 0x16c   :  { %v1805_v33 = vpop.f32.mrf.mxu3  ;;  %v5507_v55 = vor.u32 %v6619_v16, %v5504_v60  ;;  %v6692_v16 = vld [vmem:[#allocation6 + $0xac] sm:$0xf0] }
 0x16d   :  { %2771 = vmatpush.bf16.msrb.mxu0 %v5579_v11  ;;  %v1806_v25 = vadd.f32 %v1805_v33, %v1792_v26  ;;  %v5663_v11 = vor.u32 %v6661_v5, %v5662_v4  ;;  %v6649_v33 = vld [vmem:[#allocation4 + $0x354] sm:$0xf0]  ;;  %v5598_v26 = vld [vmem:[#allocation4 + $0x328] sm:$0xf]  ;;  %v5942_v4 = vld [vmem:[#allocation6 + $0x1e0] sm:$0xf] }
 0x16e   :  { %2758 = vmatmul.bf16.vlgmr.msrb.gmra.mxu2 %v7207_v23 }
 0x16f   :  { %2810 = vmatpush.bf16.msra.mxu2 %v5503_v7  ;;  %v5491_v7 = vor.u32 %v6615_v2, %v5488_v3  ;;  %v5750_v2 = vld [vmem:[#allocation6 + $0x60] sm:$0xf]  ;;  %v6684_v3 = vld [vmem:[#allocation6 + $0x6c] sm:$0xf0] }
 0x170   :  { %v5751_v5 = vor.u32 %v6684_v3, %v5750_v2  ;;  %v5944_v2 = vld [vmem:[#allocation6 + $0x1f0] sm:$0xf0]  ;;  %v6006_v3 = vld [vmem:[#allocation6 + $0x260] sm:$0xf] }
 0x171   :  { %v1845_v19 = vpop.f32.mrf.mxu1 }
 0x172   :  { %v1817_v18 = vpop.f32.mrf.mxu2 }
 0x173   :  { %v1818_v54 = vadd.f32 %v1817_v18, %v1804_v13  ;;  %2811 = vmatpush.bf16.msra.mxu2 %v5487_v22  ;;  %v5475_v13 = vor.u32 %v6611_v28, %v5472_v8  ;;  %v5647_v22 = vor.u32 %v6657_v12, %v5646_v9  ;;  %v6653_v18 = vld [vmem:[#allocation4 + $0x374] sm:$0xf0]  ;;  %v5734_v28 = vld [vmem:[#allocation6 + $0x40] sm:$0xf]  ;;  %v6680_v8 = vld [vmem:[#allocation6 + $0x4c] sm:$0xf0] }
 0x174   :  { %v5631_v20 = vor.u32 %v6653_v18, %v5630_v15  ;;  %v5926_v9 = vld [vmem:[#allocation6 + $0x1c0] sm:$0xf]  ;;  %v5735_v12 = vor.u32 %v6680_v8, %v5734_v28  ;;  %v6724_v18 = vld [vmem:[#allocation6 + $0x1ac] sm:$0xf0]  ;;  %v5736_v28 = vld [vmem:[#allocation6 + $0x50] sm:$0xf0] }
 0x175   :  { %v1832_v53 = vadd.f32 %v1831_v10, %v1818_v54  ;;  %v6607_v10 = vld [vmem:[#allocation4 + $0x20c] sm:$0xf]  ;;  %v5614_v54 = vld [vmem:[#allocation4 + $0x348] sm:$0xf]  ;;  %v5910_v15 = vld [vmem:[#allocation6 + $0x1a0] sm:$0xf] }
 0x176   :  { %v6726_v8 = vld [vmem:[#allocation6 + $0x1c4] sm:$0xf] }
 0x177   :  { %2812 = vmatpush.bf16.msra.mxu2 %v5471_v45  ;;  %v1846_v38 = vadd.f32 %v1845_v19, %v1832_v53  ;;  %v5459_v19 = vor.u32 %v6607_v10, %v5456_v14  ;;  %v5615_v45 = vor.u32 %v6649_v33, %v5614_v54  ;;  %v6645_v53 = vld [vmem:[#allocation4 + $0x334] sm:$0xf0]  ;;  %v6676_v10 = vld [vmem:[#allocation6 + $0x2c] sm:$0xf0]  ;;  %v5894_v33 = vld [vmem:[#allocation6 + $0x180] sm:$0xf] }
 0x178   :  { %v5599_v21 = vor.u32 %v6645_v53, %v5598_v26  ;;  %v6672_v54 = vld [vmem:[#allocation6 + $0xc] sm:$0xf0]  ;;  %v6698_v53 = vld [vmem:[#allocation6 + $0xe4] sm:$0xf] }
 0x179   :  { %v1847_v36 = vpop.f32.mrf.mxu1  ;;  %v1863_v0 = vadd.f32 %v1855_v29, %v1846_v38  ;;  %v6720_v26 = vld [vmem:[#allocation6 + $0x18c] sm:$0xf0] }
 0x17a   :  { %v1819_v32 = vpop.f32.mrf.mxu2 }
 0x17b   :  { %v1820_v34 = vadd.f32 %v1819_v32, %v1806_v25  ;;  %2813 = vmatpush.bf16.msra.mxu2 %v5455_v27  ;;  %v1871_v42 = vmul.f32 0.2, %v1863_v0  ;;  %v5696_v25 = vld [vmem:[#allocation4 + $0x3f8] sm:$0xf0]  ;;  %v5583_v27 = vor.u32 %v6641_v58, %v5582_v46  ;;  %v5895_v46 = vor.u32 %v6720_v26, %v5894_v33  ;;  %v6740_v26 = vld [vmem:[#allocation6 + $0x22c] sm:$0xf0] }
 0x17c   :  { %v5699_v38 = vor.u32 %v6667_v24, %v5696_v25  ;;  %v5878_v24 = vld [vmem:[#allocation6 + $0x160] sm:$0xf]  ;;  %v6716_v25 = vld [vmem:[#allocation6 + $0x16c] sm:$0xf0] }
 0x17d   :  { %v1834_v39 = vadd.f32 %v1833_v35, %v1820_v34  ;;  %v1879_v51 = vmax.f32 %v1863_v0, %v1871_v42  ;;  %v6655_v34 = vld [vmem:[#allocation4 + $0x38c] sm:$0xf]  ;;  %v5648_v35 = vld [vmem:[#allocation4 + $0x398] sm:$0xf0]  ;;  %v6700_v42 = vld [vmem:[#allocation6 + $0xec] sm:$0xf0] }
 0x17e   :  { %2814 = vmatmul.bf16.vlgmr.msra.gmra.mxu2 %v7207_v23  ;;  %v6651_v0 = vld [vmem:[#allocation4 + $0x36c] sm:$0xf] }
 0x17f   :  { %2862 = vmatpush.bf16.msrb.mxu2 %v5571_v30  ;;  %v1848_v41 = vadd.f32 %v1847_v36, %v1834_v39  ;;  %v5680_v30 = vld [vmem:[#allocation4 + $0x3d8] sm:$0xf0]  ;;  %v5651_v36 = vor.u32 %v6655_v34, %v5648_v35  ;;  %v5862_v34 = vld [vmem:[#allocation6 + $0x140] sm:$0xf]  ;;  %v6712_v35 = vld [vmem:[#allocation6 + $0x14c] sm:$0xf0] }
 0x180   :  { %v5632_v39 = vld [vmem:[#allocation4 + $0x378] sm:$0xf0] }
 0x181   :  { %v1867_v47 = vadd.f32 %v1855_v29, %v1848_v41  ;;  %v6663_v29 = vld [vmem:[#allocation4 + $0x3cc] sm:$0xf]  ;;  %v5814_v41 = vld [vmem:[#allocation6 + $0xe0] sm:$0xf] }
 0x182   :  { %v5683_v32 = vor.u32 %v6663_v29, %v5680_v30  ;;  %v5815_v44 = vor.u32 %v6700_v42, %v5814_v41  ;;  %v6694_v29 = vld [vmem:[#allocation6 + $0xc4] sm:$0xf]  ;;  %v5800_v30 = vld [vmem:[#allocation6 + $0xd0] sm:$0xf0]  ;;  %v6708_v42 = vld [vmem:[#allocation6 + $0x12c] sm:$0xf0] }
 0x183   :  { %2863 = vmatpush.bf16.msrb.mxu2 %v5555_v6  ;;  %v1875_v43 = vmul.f32 0.2, %v1867_v47  ;;  %v5635_v6 = vor.u32 %v6651_v0, %v5632_v39  ;;  %v5863_v39 = vor.u32 %v6712_v35, %v5862_v34  ;;  %v6796_v34 = vld [vmem:[#allocation6 + $0x3ec] sm:$0xf0]  ;;  %v6714_v35 = vld [vmem:[#allocation6 + $0x164] sm:$0xf] }
 0x184   :  { %3688 = vmatpush.bf16.msra.mxu3 %v5815_v44 }
 0x185   :  { %v1883_v52 = vmax.f32 %v1867_v47, %v1875_v43  ;;  %v5798_v47 = vld [vmem:[#allocation6 + $0xc0] sm:$0xf]  ;;  %v6643_v43 = vld [vmem:[#allocation4 + $0x32c] sm:$0xf] }
 0x186   :  { %v5799_v17 = vor.u32 %v6696_v48, %v5798_v47  ;;  %v6038_v47 = vld [vmem:[#allocation6 + $0x2a0] sm:$0xf] }
 0x187   :  { %2864 = vmatpush.bf16.msrb.mxu2 %v5539_v50  ;;  %v7216_v61 = vpack.c.bf16 %v1883_v52, %v1879_v51  ;;  %v5619_v50 = vor.u32 %v6647_v37, %v5616_v40  ;;  %v5603_v51 = vor.u32 %v6643_v43, %v5600_v49  ;;  %v6639_v52 = vld [vmem:[#allocation4 + $0x30c] sm:$0xf]  ;;  %v5784_v37 = vld [vmem:[#allocation6 + $0xb0] sm:$0xf0]  ;;  %v5846_v40 = vld [vmem:[#allocation6 + $0x120] sm:$0xf] }
 0x188   :  { %3689 = vmatpush.bf16.msra.mxu3 %v5799_v17  ;;  %v5847_v48 = vor.u32 %v6708_v42, %v5846_v40  ;;  %v6686_v43 = vld [vmem:[#allocation6 + $0x84] sm:$0xf]  ;;  %v5768_v49 = vld [vmem:[#allocation6 + $0x90] sm:$0xf0]  ;;  %v5830_v17 = vld [vmem:[#allocation6 + $0x100] sm:$0xf] }
 0x189   :  { %2716 = vmatmul.bf16.vlgmr.msra.gmra.mxu0 %v7216_v61  ;;  %v6182_v42 = vld [vmem:[#allocation6 + $0x3c0] sm:$0xf] }
 0x18a   :  { %2820 = vmatpush.bf16.msra.mxu0 %v5695_v57  ;;  %v5782_v57 = vld [vmem:[#allocation6 + $0xa0] sm:$0xf] }
 0x18b   :  { %2865 = vmatpush.bf16.msrb.mxu2 %v5523_v56  ;;  %v5584_v56 = vld [vmem:[#allocation4 + $0x318] sm:$0xf0]  ;;  %v5783_v60 = vor.u32 %v6692_v16, %v5782_v57  ;;  %v6752_v57 = vld [vmem:[#allocation6 + $0x28c] sm:$0xf0] }
 0x18d   :  { %3690 = vmatpush.bf16.msra.mxu3 %v5783_v60 }
 0x18e   :  { %2821 = vmatpush.bf16.msra.mxu0 %v5679_v1  ;;  %v5767_v1 = vor.u32 %v6688_v63, %v5766_v62  ;;  %v6682_v62 = vld [vmem:[#allocation6 + $0x64] sm:$0xf]  ;;  %v5752_v63 = vld [vmem:[#allocation6 + $0x70] sm:$0xf0] }
 0x18f   :  { %2866 = vmatpush.bf16.msrb.mxu2 %v5507_v55  ;;  %v5587_v55 = vor.u32 %v6639_v52, %v5584_v56  ;;  %v6704_v52 = vld [vmem:[#allocation6 + $0x10c] sm:$0xf0]  ;;  %v6022_v56 = vld [vmem:[#allocation6 + $0x280] sm:$0xf] }
 0x190   :  { %v5831_v16 = vor.u32 %v6704_v52, %v5830_v17  ;;  %v6023_v60 = vor.u32 %v6752_v57, %v6022_v56  ;;  %v5864_v17 = vld [vmem:[#allocation6 + $0x150] sm:$0xf0] }
 0x191   :  { %3691 = vmatpush.bf16.msra.mxu3 %v5767_v1  ;;  %v5755_v1 = vor.u32 %v6682_v62, %v5752_v63  ;;  %v6056_v56 = vld [vmem:[#allocation6 + $0x2d0] sm:$0xf0]  ;;  %v6788_v62 = vld [vmem:[#allocation6 + $0x3ac] sm:$0xf0]  ;;  %v6706_v63 = vld [vmem:[#allocation6 + $0x124] sm:$0xf] }
 0x192   :  { %2822 = vmatpush.bf16.msra.mxu0 %v5663_v11 }
 0x193   :  { %2867 = vmatpush.bf16.msrb.mxu2 %v5491_v7  ;;  %v6732_v7 = vld [vmem:[#allocation6 + $0x1ec] sm:$0xf0] }
 0x194   :  { %v5943_v11 = vor.u32 %v6732_v7, %v5942_v4  ;;  %v6748_v4 = vld [vmem:[#allocation6 + $0x26c] sm:$0xf0] }
 0x195   :  { %3692 = vmatpush.bf16.msra.mxu3 %v5751_v5  ;;  %v6007_v7 = vor.u32 %v6748_v4, %v6006_v3  ;;  %v6754_v3 = vld [vmem:[#allocation6 + $0x2a4] sm:$0xf]  ;;  %v6040_v4 = vld [vmem:[#allocation6 + $0x2b0] sm:$0xf0] }
 0x196   :  { %2823 = vmatpush.bf16.msra.mxu0 %v5647_v22  ;;  %3702 = vmatpush.bf16.msra.mxu1 %v5943_v11  ;;  %v5718_v22 = vld [vmem:[#allocation6 + $0x20] sm:$0xf]  ;;  %v6678_v11 = vld [vmem:[#allocation6 + $0x44] sm:$0xf] }
 0x197   :  { %2868 = vmatpush.bf16.msrb.mxu2 %v5475_v13  ;;  %v6728_v13 = vld [vmem:[#allocation6 + $0x1cc] sm:$0xf0] }
 0x198   :  { %v5927_v14 = vor.u32 %v6728_v13, %v5926_v9  ;;  %v5739_v9 = vor.u32 %v6678_v11, %v5736_v28  ;;  %v6043_v11 = vor.u32 %v6754_v3, %v6040_v4  ;;  %v6150_v28 = vld [vmem:[#allocation6 + $0x380] sm:$0xf]  ;;  %v6693_v4 = vld [vmem:[#allocation6 + $0xb4] sm:$0xf0] }
 0x199   :  { %2772 = vmatmul.bf16.vlgmr.msrb.gmra.mxu0 %v7216_v61  ;;  %3693 = vmatpush.bf16.msra.mxu3 %v5735_v12  ;;  %v5928_v12 = vld [vmem:[#allocation6 + $0x1d0] sm:$0xf0] }
 0x19a   :  { %2824 = vmatpush.bf16.msra.mxu0 %v5631_v20  ;;  %3703 = vmatpush.bf16.msra.mxu1 %v5927_v14  ;;  %v5911_v20 = vor.u32 %v6724_v18, %v5910_v15  ;;  %v5931_v13 = vor.u32 %v6726_v8, %v5928_v12  ;;  %v6674_v14 = vld [vmem:[#allocation6 + $0x24] sm:$0xf]  ;;  %v6784_v8 = vld [vmem:[#allocation6 + $0x38c] sm:$0xf0] }
 0x19b   :  { %2869 = vmatpush.bf16.msrb.mxu2 %v5459_v19  ;;  %v5719_v19 = vor.u32 %v6676_v10, %v5718_v22  ;;  %v5990_v22 = vld [vmem:[#allocation6 + $0x240] sm:$0xf]  ;;  %v6744_v10 = vld [vmem:[#allocation6 + $0x24c] sm:$0xf0] }
 0x19c   :  { %v5991_v18 = vor.u32 %v6744_v10, %v5990_v22 }
 0x19d   :  { %3694 = vmatpush.bf16.msra.mxu3 %v5719_v19  ;;  %v5720_v19 = vld [vmem:[#allocation6 + $0x30] sm:$0xf0] }
 0x19e   :  { %2870 = vmatmul.bf16.vlgmr.msrb.gmra.mxu2 %v7207_v23  ;;  %2825 = vmatpush.bf16.msra.mxu0 %v5615_v45  ;;  %v5667_v23 = vor.u32 %v6659_v59, %v5664_v31  ;;  %v5803_v31 = vor.u32 %v6694_v29, %v5800_v30  ;;  %v5896_v29 = vld [vmem:[#allocation6 + $0x190] sm:$0xf0] }
 0x19f   :  { %3704 = vmatpush.bf16.msra.mxu1 %v5911_v20  ;;  %v6722_v20 = vld [vmem:[#allocation6 + $0x1a4] sm:$0xf] }
 0x1a2   :  { %2826 = vmatpush.bf16.msra.mxu0 %v5599_v21  ;;  %v5816_v21 = vld [vmem:[#allocation6 + $0xf0] sm:$0xf0] }
 0x1a3   :  { %v5819_v58 = vor.u32 %v6698_v53, %v5816_v21  ;;  %3705 = vmatpush.bf16.msra.mxu1 %v5895_v46  ;;  %v2675_v53 = vpop.f32.mrf.mxu3 }
 0x1a4   :  { %v7223_v15 = vpop.f32.mrf.mxu1 }
 0x1a6   :  { %2827 = vmatpush.bf16.msra.mxu0 %v5583_v27  ;;  %v6070_v27 = vld [vmem:[#allocation6 + $0x2e0] sm:$0xf] }
 0x1a9   :  { %2828 = vmatmul.bf16.vlgmr.msra.gmra.mxu0 %v7216_v61 }
 0x1aa   :  { %2876 = vmatpush.bf16.msrb.mxu0 %v5699_v38  ;;  %v6764_v38 = vld [vmem:[#allocation6 + $0x2ec] sm:$0xf0] }
 0x1ab   :  { %v6071_v59 = vor.u32 %v6764_v38, %v6070_v27  ;;  %v7228_v27 = vld [vmem:[%s7280_s6] sm:$0xf] }
 0x1ac   :  { %v2691_v40 = vpop.f32.mrf.mxu1 }
 0x1ad   :  { %3716 = vmatpush.bf16.msra.mxu2 %v6071_v59  ;;  %v6736_v59 = vld [vmem:[#allocation6 + $0x20c] sm:$0xf0] }
 0x1ae   :  { %2877 = vmatpush.bf16.msrb.mxu0 %v5683_v32  ;;  %v5879_v32 = vor.u32 %v6716_v25, %v5878_v24  ;;  %v5704_v24 = vld [vmem:[#allocation6 + $0x10] sm:$0xf0]  ;;  %v6718_v25 = vld [vmem:[#allocation6 + $0x184] sm:$0xf] }
 0x1af   :  { %v5899_v30 = vor.u32 %v6718_v25, %v5896_v29 }
 0x1b0   :  { %3706 = vmatpush.bf16.msra.mxu1 %v5879_v32  ;;  %v5958_v32 = vld [vmem:[#allocation6 + $0x200] sm:$0xf] }
 0x1b2   :  { %2878 = vmatpush.bf16.msrb.mxu0 %v5667_v23  ;;  %v6054_v23 = vld [vmem:[#allocation6 + $0x2c0] sm:$0xf] }
 0x1b4   :  { %3707 = vmatpush.bf16.msra.mxu1 %v5863_v39  ;;  %v2745_v10 = vpop.f32.mrf.mxu1 }
 0x1b6   :  { %2879 = vmatpush.bf16.msrb.mxu0 %v5651_v36  ;;  %v6760_v36 = vld [vmem:[#allocation6 + $0x2cc] sm:$0xf0] }
 0x1b7   :  { %v6055_v0 = vor.u32 %v6760_v36, %v6054_v23  ;;  %v5959_v23 = vor.u32 %v6736_v59, %v5958_v32  ;;  %v5880_v36 = vld [vmem:[#allocation6 + $0x170] sm:$0xf0]  ;;  %v2019_v32 = vperm.slane %v7228_v27, 1  ;;  %v6118_v59 = vld [vmem:[#allocation6 + $0x340] sm:$0xf] }
 0x1b8   :  { %3708 = vmatpush.bf16.msra.mxu1 %v5847_v48  ;;  %v5883_v39 = vor.u32 %v6714_v35, %v5880_v36  ;;  %v2677_v48 = vpop.f32.mrf.mxu3  ;;  %v6701_v35 = vld [vmem:[#allocation6 + $0xf4] sm:$0xf0] }
 0x1b9   :  { %3717 = vmatpush.bf16.msra.mxu2 %v6055_v0 }
 0x1ba   :  { %2880 = vmatpush.bf16.msrb.mxu0 %v5635_v6  ;;  %v6690_v6 = vld [vmem:[#allocation6 + $0xa4] sm:$0xf] }
 0x1bb   :  { %v5787_v41 = vor.u32 %v6690_v6, %v5784_v37  ;;  %v6762_v6 = vld [vmem:[#allocation6 + $0x2e4] sm:$0xf]  ;;  %v6072_v37 = vld [vmem:[#allocation6 + $0x2f0] sm:$0xf0] }
 0x1bc   :  { %3709 = vmatpush.bf16.msra.mxu1 %v5831_v16 }
 0x1be   :  { %2881 = vmatpush.bf16.msrb.mxu0 %v5619_v50  ;;  %v6756_v50 = vld [vmem:[#allocation6 + $0x2ac] sm:$0xf0] }
 0x1bf   :  { %v6039_v44 = vor.u32 %v6756_v50, %v6038_v47  ;;  %v6792_v47 = vld [vmem:[#allocation6 + $0x3cc] sm:$0xf0]  ;;  %v2018_v50 = vperm.slane %v7228_v27, 0 }
 0x1c0   :  { %v2731_v22 = vpop.f32.mrf.mxu3 }
 0x1c1   :  { %3718 = vmatpush.bf16.msra.mxu2 %v6039_v44  ;;  %v6183_v44 = vor.u32 %v6792_v47, %v6182_v42  ;;  %v2676_v57 = vadd.f32 %v2675_v53, %v2018_v50  ;;  %v6134_v53 = vld [vmem:[#allocation6 + $0x360] sm:$0xf]  ;;  %v5806_v47 = vld [vmem:[#allocation6 + $0xc8] sm:$0xf] }
 0x1c2   :  { %2882 = vmatpush.bf16.msrb.mxu0 %v5603_v51  ;;  %v5771_v51 = vor.u32 %v6686_v43, %v5768_v49  ;;  %v6710_v49 = vld [vmem:[#allocation6 + $0x144] sm:$0xf] }
 0x1c3   :  { %v5867_v52 = vor.u32 %v6710_v49, %v5864_v17  ;;  %v6102_v49 = vld [vmem:[#allocation6 + $0x320] sm:$0xf]  ;;  %v6772_v17 = vld [vmem:[#allocation6 + $0x32c] sm:$0xf0] }
 0x1c5   :  { %3719 = vmatpush.bf16.msra.mxu2 %v6023_v60  ;;  %v6166_v60 = vld [vmem:[#allocation6 + $0x3a0] sm:$0xf] }
 0x1c6   :  { %2883 = vmatpush.bf16.msrb.mxu0 %v5587_v55  ;;  %v6730_v55 = vld [vmem:[#allocation6 + $0x1e4] sm:$0xf] }
 0x1c7   :  { %v5947_v5 = vor.u32 %v6730_v55, %v5944_v2  ;;  %v5848_v2 = vld [vmem:[#allocation6 + $0x130] sm:$0xf0] }
 0x1c9   :  { %2884 = vmatmul.bf16.vlgmr.msrb.gmra.mxu0 %v7216_v61  ;;  %v5702_v61 = vld [vmem:[#allocation6] sm:$0xf]  ;;  %3758 = vmatpush.bf16.msrb.mxu1 %v5947_v5  ;;  %v2690_v5 = vadd.f32 %v7223_v15, %v2676_v57  ;;  %v6738_v57 = vld [vmem:[#allocation6 + $0x224] sm:$0xf] }
 0x1ca   :  { %v5703_v45 = vor.u32 %v6672_v54, %v5702_v61  ;;  %3720 = vmatpush.bf16.msra.mxu2 %v6007_v7  ;;  %v5912_v61 = vld [vmem:[#allocation6 + $0x1b0] sm:$0xf0]  ;;  %v5723_v54 = vor.u32 %v6674_v14, %v5720_v19  ;;  %v5851_v7 = vor.u32 %v6706_v63, %v5848_v2  ;;  %v6702_v19 = vld [vmem:[#allocation6 + $0x104] sm:$0xf] }
 0x1cb   :  { %v5915_v33 = vor.u32 %v6722_v20, %v5912_v61  ;;  %v5832_v20 = vld [vmem:[#allocation6 + $0x110] sm:$0xf0]  ;;  %v6750_v61 = vld [vmem:[#allocation6 + $0x284] sm:$0xf] }
 0x1cc   :  { %3695 = vmatpush.bf16.msra.mxu3 %v5703_v45  ;;  %v5974_v45 = vld [vmem:[#allocation6 + $0x220] sm:$0xf] }
 0x1cd   :  { %3759 = vmatpush.bf16.msrb.mxu1 %v5931_v13  ;;  %v5975_v46 = vor.u32 %v6740_v26, %v5974_v45  ;;  %v6151_v13 = vor.u32 %v6784_v8, %v6150_v28  ;;  %v5960_v28 = vld [vmem:[#allocation6 + $0x210] sm:$0xf0]  ;;  %v6794_v8 = vld [vmem:[#allocation6 + $0x3e4] sm:$0xf] }
 0x1ce   :  { %3721 = vmatpush.bf16.msra.mxu2 %v5991_v18 }
 0x1d0   :  { %3744 = vmatpush.bf16.msrb.mxu3 %v5819_v58  ;;  %v6670_v58 = vld [vmem:[#allocation6 + $0x4] sm:$0xf] }
 0x1d1   :  { %3760 = vmatpush.bf16.msrb.mxu1 %v5915_v33  ;;  %v5707_v38 = vor.u32 %v6670_v58, %v5704_v24  ;;  %v6024_v33 = vld [vmem:[#allocation6 + $0x290] sm:$0xf0]  ;;  %v6746_v58 = vld [vmem:[#allocation6 + $0x264] sm:$0xf] }
 0x1d2   :  { %3722 = vmatpush.bf16.msra.mxu2 %v5975_v46  ;;  %v6027_v26 = vor.u32 %v6750_v61, %v6024_v33  ;;  %v6008_v24 = vld [vmem:[#allocation6 + $0x270] sm:$0xf0]  ;;  %v6689_v61 = vld [vmem:[#allocation6 + $0x94] sm:$0xf0] }
 0x1d4   :  { %3745 = vmatpush.bf16.msrb.mxu3 %v5803_v31  ;;  %v6198_v31 = vld [vmem:[#allocation6 + $0x3e0] sm:$0xf] }
 0x1d5   :  { %3761 = vmatpush.bf16.msrb.mxu1 %v5899_v30  ;;  %v6199_v0 = vor.u32 %v6796_v34, %v6198_v31  ;;  %v6011_v30 = vor.u32 %v6746_v58, %v6008_v24  ;;  %v6776_v31 = vld [vmem:[#allocation6 + $0x34c] sm:$0xf0]  ;;  %v5822_v34 = vld [vmem:[#allocation6 + $0xe8] sm:$0xf]  ;;  %v6786_v58 = vld [vmem:[#allocation6 + $0x3a4] sm:$0xf] }
 0x1d6   :  { %3723 = vmatpush.bf16.msra.mxu2 %v5959_v23  ;;  %v6119_v36 = vor.u32 %v6776_v31, %v6118_v59  ;;  %v5823_v42 = vor.u32 %v6701_v35, %v5822_v34  ;;  %v5950_v59 = vld [vmem:[#allocation6 + $0x1e8] sm:$0xf]  ;;  %v6733_v31 = vld [vmem:[#allocation6 + $0x1f4] sm:$0xf0] }
 0x1d7   :  { %3730 = vmatpush.bf16.msra.mxu0 %v6199_v0 }
 0x1d8   :  { %3746 = vmatpush.bf16.msrb.mxu3 %v5787_v41  ;;  %v6075_v41 = vor.u32 %v6762_v6, %v6072_v37  ;;  %v6742_v6 = vld [vmem:[#allocation6 + $0x244] sm:$0xf]  ;;  %v5992_v37 = vld [vmem:[#allocation6 + $0x250] sm:$0xf0] }
 0x1d9   :  { %3762 = vmatpush.bf16.msrb.mxu1 %v5883_v39 }
 0x1da   :  { %3772 = vmatpush.bf16.msrb.mxu2 %v6075_v41  ;;  %v2747_v41 = vpop.f32.mrf.mxu1 }
 0x1db   :  { %3731 = vmatpush.bf16.msra.mxu0 %v6183_v44  ;;  %v2732_v44 = vadd.f32 %v2731_v22, %v2019_v32 }
 0x1dc   :  { %3747 = vmatpush.bf16.msrb.mxu3 %v5771_v51  ;;  %v6758_v51 = vld [vmem:[#allocation6 + $0x2c4] sm:$0xf] }
 0x1dd   :  { %v6059_v16 = vor.u32 %v6758_v51, %v6056_v56  ;;  %3763 = vmatpush.bf16.msrb.mxu1 %v5867_v52  ;;  %v6103_v56 = vor.u32 %v6772_v17, %v6102_v49  ;;  %v6152_v49 = vld [vmem:[#allocation6 + $0x390] sm:$0xf0] }
 0x1df   :  { %3773 = vmatpush.bf16.msrb.mxu2 %v6059_v16  ;;  %v5976_v16 = vld [vmem:[#allocation6 + $0x230] sm:$0xf0] }
 0x1e0   :  { %3748 = vmatpush.bf16.msrb.mxu3 %v5755_v1  ;;  %v6167_v1 = vor.u32 %v6788_v62, %v6166_v60  ;;  %v2746_v60 = vadd.f32 %v2745_v10, %v2732_v44  ;;  %v5979_v62 = vor.u32 %v6738_v57, %v5976_v16 }
 0x1e1   :  { %v2703_v21 = vpop.f32.mrf.mxu2  ;;  %3764 = vmatpush.bf16.msrb.mxu1 %v5851_v7  ;;  %v6734_v7 = vld [vmem:[#allocation6 + $0x204] sm:$0xf] }
 0x1e2   :  { %v2704_v12 = vadd.f32 %v2703_v21, %v2690_v5  ;;  %3732 = vmatpush.bf16.msra.mxu0 %v6167_v1  ;;  %v6780_v21 = vld [vmem:[#allocation6 + $0x36c] sm:$0xf0]  ;;  %v6086_v1 = vld [vmem:[#allocation6 + $0x300] sm:$0xf]  ;;  %v5963_v22 = vor.u32 %v6734_v7, %v5960_v28  ;;  %v2801_v33 = vpop.f32.mrf.mxu1  ;;  %v5710_v28 = vld [vmem:[#allocation6 + $0x8] sm:$0xf] }
 0x1e3   :  { %3774 = vmatpush.bf16.msrb.mxu2 %v6043_v11  ;;  %v6135_v29 = vor.u32 %v6780_v21, %v6134_v53  ;;  %v6768_v5 = vld [vmem:[#allocation6 + $0x30c] sm:$0xf0]  ;;  %v2020_v53 = vperm.slane %v7228_v27, 2 }
 0x1e4   :  { %3749 = vmatpush.bf16.msrb.mxu3 %v5739_v9  ;;  %v2678_v9 = vadd.f32 %v2677_v48, %v2018_v50  ;;  %v5995_v50 = vor.u32 %v6742_v6, %v5992_v37  ;;  %v6087_v11 = vor.u32 %v6768_v5, %v6086_v1  ;;  %v6136_v5 = vld [vmem:[#allocation6 + $0x370] sm:$0xf0] }
 0x1e6   :  { %v2692_v14 = vadd.f32 %v2691_v40, %v2678_v9  ;;  %3733 = vmatpush.bf16.msra.mxu0 %v6151_v13  ;;  %v2733_v40 = vpop.f32.mrf.mxu3  ;;  %v6200_v9 = vld [vmem:[#allocation6 + $0x3f0] sm:$0xf0] }
 0x1e7   :  { %3775 = vmatpush.bf16.msrb.mxu2 %v6027_v26  ;;  %v2734_v2 = vadd.f32 %v2733_v40, %v2019_v32  ;;  %v6203_v10 = vor.u32 %v6794_v8, %v6200_v9  ;;  %v6681_v40 = vld [vmem:[#allocation6 + $0x54] sm:$0xf0] }
 0x1e8   :  { %3750 = vmatpush.bf16.msrb.mxu3 %v5723_v54  ;;  %v5835_v54 = vor.u32 %v6702_v19, %v5832_v20  ;;  %v5774_v19 = vld [vmem:[#allocation6 + $0x88] sm:$0xf] }
 0x1e9   :  { %v2705_v43 = vpop.f32.mrf.mxu2 }
 0x1ea   :  { %v2706_v45 = vadd.f32 %v2705_v43, %v2692_v14  ;;  %3765 = vmatpush.bf16.msrb.mxu1 %v5835_v54  ;;  %3734 = vmatpush.bf16.msra.mxu0 %v6135_v29  ;;  %v6697_v43 = vld [vmem:[#allocation6 + $0xd4] sm:$0xf0]  ;;  %v6184_v54 = vld [vmem:[#allocation6 + $0x3d0] sm:$0xf0]  ;;  %v2803_v17 = vpop.f32.mrf.mxu1 }
 0x1eb   :  { %3776 = vmatpush.bf16.msrb.mxu2 %v6011_v30  ;;  %v5807_v63 = vor.u32 %v6697_v43, %v5806_v47  ;;  %v6685_v29 = vld [vmem:[#allocation6 + $0x74] sm:$0xf0]  ;;  %v6168_v30 = vld [vmem:[#allocation6 + $0x3b0] sm:$0xf0]  ;;  %v6782_v43 = vld [vmem:[#allocation6 + $0x384] sm:$0xf] }
 0x1ec   :  { %3751 = vmatpush.bf16.msrb.mxu3 %v5707_v38  ;;  %v6155_v57 = vor.u32 %v6782_v43, %v6152_v49 }
 0x1ee   :  { %3735 = vmatpush.bf16.msra.mxu0 %v6119_v36  ;;  %v2787_v14 = vpop.f32.mrf.mxu3 }
 0x1ef   :  { %3777 = vmatpush.bf16.msrb.mxu2 %v5995_v50  ;;  %v2788_v6 = vadd.f32 %v2787_v14, %v2020_v53  ;;  %v6699_v14 = vld [vmem:[#allocation6 + $0xec] sm:$0xf] }
 0x1f1   :  { %v2759_v15 = vpop.f32.mrf.mxu2  ;;  %v2802_v44 = vadd.f32 %v2801_v33, %v2788_v6  ;;  %v6062_v6 = vld [vmem:[#allocation6 + $0x2c8] sm:$0xf] }
 0x1f2   :  { %v2760_v3 = vadd.f32 %v2759_v15, %v2746_v60  ;;  %3736 = vmatpush.bf16.msra.mxu0 %v6103_v56  ;;  %v6790_v15 = vld [vmem:[#allocation6 + $0x3c4] sm:$0xf]  ;;  %v5726_v56 = vld [vmem:[#allocation6 + $0x28] sm:$0xf] }
 0x1f3   :  { %3778 = vmatpush.bf16.msrb.mxu2 %v5979_v62  ;;  %v6187_v26 = vor.u32 %v6790_v15, %v6184_v54  ;;  %v6677_v62 = vld [vmem:[#allocation6 + $0x34] sm:$0xf0]  ;;  %v6120_v15 = vld [vmem:[#allocation6 + $0x350] sm:$0xf0] }
 0x1f4   :  { %v5727_v7 = vor.u32 %v6677_v62, %v5726_v56  ;;  %v6709_v56 = vld [vmem:[#allocation6 + $0x134] sm:$0xf0]  ;;  %v5776_v62 = vld [vmem:[#allocation6 + $0x98] sm:$0xf0] }
 0x1f6   :  { %3737 = vmatpush.bf16.msra.mxu0 %v6087_v11  ;;  %v2789_v47 = vpop.f32.mrf.mxu3 }
 0x1f7   :  { %3779 = vmatpush.bf16.msrb.mxu2 %v5963_v22  ;;  %v2790_v16 = vadd.f32 %v2789_v47, %v2020_v53  ;;  %v6721_v22 = vld [vmem:[#allocation6 + $0x194] sm:$0xf0]  ;;  %v6691_v47 = vld [vmem:[#allocation6 + $0xac] sm:$0xf] }
 0x1f9   :  { %v2761_v51 = vpop.f32.mrf.mxu2 }
 0x1fa   :  { %3786 = vmatpush.bf16.msrb.mxu0 %v6203_v10 }
 0x1fe   :  { %3787 = vmatpush.bf16.msrb.mxu0 %v6187_v26  ;;  %v6717_v26 = vld [vmem:[#allocation6 + $0x174] sm:$0xf0]  ;;  %v2843_v49 = vpop.f32.mrf.mxu3 }
 0x201   :  { %v2815_v24 = vpop.f32.mrf.mxu2 }
 0x202   :  { %v2816_v60 = vadd.f32 %v2815_v24, %v2802_v44  ;;  %v6765_v24 = vld [vmem:[#allocation6 + $0x2f4] sm:$0xf0] }
 0x206   :  { %v2717_v55 = vpop.f32.mrf.mxu0 }
 0x207   :  { %v2718_v18 = vadd.f32 %v2717_v55, %v2704_v12  ;;  %v5790_v55 = vld [vmem:[#allocation6 + $0xa8] sm:$0xf]  ;;  %v2748_v12 = vadd.f32 %v2747_v41, %v2734_v2  ;;  %v2804_v2 = vadd.f32 %v2803_v17, %v2790_v16  ;;  %v6757_v16 = vld [vmem:[#allocation6 + $0x2b4] sm:$0xf0] }
 0x208   :  { %v5934_v41 = vld [vmem:[#allocation6 + $0x1c8] sm:$0xf] }
 0x209   :  { %v2890_v25 = vmul.f32 0.2, %v2718_v18  ;;  %v2762_v20 = vadd.f32 %v2761_v51, %v2748_v12  ;;  %v2817_v1 = vpop.f32.mrf.mxu2  ;;  %v6673_v12 = vld [vmem:[#allocation6 + $0x14] sm:$0xf0] }
 0x20a   :  { %v2818_v9 = vadd.f32 %v2817_v1, %v2804_v2  ;;  %v5711_v54 = vor.u32 %v6673_v12, %v5710_v28  ;;  %v6753_v28 = vld [vmem:[#allocation6 + $0x294] sm:$0xf0]  ;;  %v6731_v12 = vld [vmem:[#allocation6 + $0x1ec] sm:$0xf] }
 0x20b   :  { %v2898_v0 = vmax.f32 %v2718_v18, %v2890_v25  ;;  %v5791_v18 = vor.u32 %v6693_v4, %v5790_v55  ;;  %v5775_v25 = vor.u32 %v6689_v61, %v5774_v19  ;;  %v6725_v55 = vld [vmem:[#allocation6 + $0x1b4] sm:$0xf0]  ;;  %v6778_v4 = vld [vmem:[#allocation6 + $0x364] sm:$0xf] }
 0x20c   :  { %v6139_v8 = vor.u32 %v6778_v4, %v6136_v5  ;;  %v6774_v61 = vld [vmem:[#allocation6 + $0x344] sm:$0xf]  ;;  %v5838_v5 = vld [vmem:[#allocation6 + $0x108] sm:$0xf] }
 0x20d   :  { %v6123_v53 = vor.u32 %v6774_v61, %v6120_v15  ;;  %v6679_v61 = vld [vmem:[#allocation6 + $0x4c] sm:$0xf]  ;;  %v5744_v15 = vld [vmem:[#allocation6 + $0x58] sm:$0xf0] }
 0x20e   :  { %v2719_v46 = vpop.f32.mrf.mxu0 }
 0x20f   :  { %v2720_v38 = vadd.f32 %v2719_v46, %v2706_v45 }
 0x211   :  { %v2894_v23 = vmul.f32 0.2, %v2720_v38 }
 0x213   :  { %v2902_v39 = vmax.f32 %v2720_v38, %v2894_v23  ;;  %v5758_v38 = vld [vmem:[#allocation6 + $0x68] sm:$0xf]  ;;  %v6171_v23 = vor.u32 %v6786_v58, %v6168_v30 }
 0x214   :  { %v5759_v36 = vor.u32 %v6685_v29, %v5758_v38  ;;  %v6078_v58 = vld [vmem:[#allocation6 + $0x2e8] sm:$0xf]  ;;  %v5808_v38 = vld [vmem:[#allocation6 + $0xd8] sm:$0xf0]  ;;  %v6770_v29 = vld [vmem:[#allocation6 + $0x324] sm:$0xf] }
 0x215   :  { %v7233_v48 = vpack.c.bf16 %v2902_v39, %v2898_v0  ;;  %v5951_v0 = vor.u32 %v6733_v31, %v5950_v59  ;;  %v5742_v39 = vld [vmem:[#allocation6 + $0x48] sm:$0xf]  ;;  %3788 = vmatpush.bf16.msrb.mxu0 %v6171_v23  ;;  %v6104_v59 = vld [vmem:[#allocation6 + $0x330] sm:$0xf0] }
 0x216   :  { %v2773_v52 = vpop.f32.mrf.mxu0  ;;  %v5743_v51 = vor.u32 %v6681_v40, %v5742_v39  ;;  %v5870_v23 = vld [vmem:[#allocation6 + $0x148] sm:$0xf]  ;;  %v6766_v40 = vld [vmem:[#allocation6 + $0x304] sm:$0xf] }
 0x217   :  { %3696 = vmatmul.bf16.vlgmr.msra.gmra.mxu3 %v7233_v48  ;;  %v2774_v13 = vadd.f32 %v2773_v52, %v2760_v3 }
 0x218   :  { %3800 = vmatpush.bf16.msra.mxu3 %v5823_v42  ;;  %v6729_v42 = vld [vmem:[#allocation6 + $0x1d4] sm:$0xf0] }
 0x219   :  { %v2891_v46 = vmul.f32 0.2, %v2774_v13  ;;  %v5935_v52 = vor.u32 %v6729_v42, %v5934_v41  ;;  %3789 = vmatpush.bf16.msrb.mxu0 %v6155_v57  ;;  %v6088_v41 = vld [vmem:[#allocation6 + $0x310] sm:$0xf0]  ;;  %v6761_v42 = vld [vmem:[#allocation6 + $0x2d4] sm:$0xf0] }
 0x21a   :  { %v6091_v44 = vor.u32 %v6766_v40, %v6088_v41  ;;  %v6063_v17 = vor.u32 %v6761_v42, %v6062_v6  ;;  %v6046_v57 = vld [vmem:[#allocation6 + $0x2a8] sm:$0xf] }
 0x21b   :  { %v2899_v34 = vmax.f32 %v2774_v13, %v2891_v46  ;;  %v5902_v13 = vld [vmem:[#allocation6 + $0x188] sm:$0xf] }
 0x21c   :  { %3801 = vmatpush.bf16.msra.mxu3 %v5807_v63  ;;  %v5918_v63 = vld [vmem:[#allocation6 + $0x1a8] sm:$0xf]  ;;  %v5903_v33 = vor.u32 %v6721_v22, %v5902_v13  ;;  %v5952_v13 = vld [vmem:[#allocation6 + $0x1f8] sm:$0xf0] }
 0x21d   :  { %v5919_v11 = vor.u32 %v6725_v55, %v5918_v63  ;;  %3790 = vmatpush.bf16.msrb.mxu0 %v6139_v8  ;;  %v2857_v63 = vpop.f32.mrf.mxu1  ;;  %v2021_v55 = vperm.slane %v7228_v27, 3  ;;  %v6683_v8 = vld [vmem:[#allocation6 + $0x6c] sm:$0xf]  ;;  %v5982_v40 = vld [vmem:[#allocation6 + $0x228] sm:$0xf] }
 0x21e   :  { %v2775_v45 = vpop.f32.mrf.mxu0 }
 0x21f   :  { %v2776_v21 = vadd.f32 %v2775_v45, %v2762_v20  ;;  %v5886_v45 = vld [vmem:[#allocation6 + $0x168] sm:$0xf] }
 0x220   :  { %3802 = vmatpush.bf16.msra.mxu3 %v5791_v18  ;;  %v5824_v18 = vld [vmem:[#allocation6 + $0xf8] sm:$0xf0]  ;;  %v5887_v31 = vor.u32 %v6717_v26, %v5886_v45  ;;  %v6727_v45 = vld [vmem:[#allocation6 + $0x1cc] sm:$0xf] }
 0x221   :  { %v2895_v32 = vmul.f32 0.2, %v2776_v21  ;;  %3791 = vmatpush.bf16.msrb.mxu0 %v6123_v53  ;;  %v2871_v2 = vpop.f32.mrf.mxu2  ;;  %v5936_v26 = vld [vmem:[#allocation6 + $0x1d8] sm:$0xf0] }
 0x223   :  { %v2903_v35 = vmax.f32 %v2776_v21, %v2895_v32  ;;  %v5827_v21 = vor.u32 %v6699_v14, %v5824_v18  ;;  %v6014_v14 = vld [vmem:[#allocation6 + $0x268] sm:$0xf]  ;;  %v2844_v18 = vadd.f32 %v2843_v49, %v2021_v55  ;;  %v6719_v49 = vld [vmem:[#allocation6 + $0x18c] sm:$0xf] }
 0x224   :  { %3803 = vmatpush.bf16.msra.mxu3 %v5775_v25  ;;  %v6695_v25 = vld [vmem:[#allocation6 + $0xcc] sm:$0xf] }
 0x225   :  { %v7237_v37 = vpack.c.bf16 %v2903_v35, %v2899_v34  ;;  %v6713_v34 = vld [vmem:[#allocation6 + $0x154] sm:$0xf0]  ;;  %v6107_v35 = vor.u32 %v6770_v29, %v6104_v59  ;;  %v5811_v39 = vor.u32 %v6695_v25, %v5808_v38  ;;  %v2858_v53 = vadd.f32 %v2857_v63, %v2844_v18  ;;  %v5728_v59 = vld [vmem:[#allocation6 + $0x38] sm:$0xf0]  ;;  %v6759_v18 = vld [vmem:[#allocation6 + $0x2cc] sm:$0xf] }
 0x226   :  { %v2829_v50 = vpop.f32.mrf.mxu0  ;;  %v5871_v43 = vor.u32 %v6713_v34, %v5870_v23  ;;  %v5939_v29 = vor.u32 %v6727_v45, %v5936_v26  ;;  %v6723_v23 = vld [vmem:[#allocation6 + $0x1ac] sm:$0xf]  ;;  %v5920_v34 = vld [vmem:[#allocation6 + $0x1b8] sm:$0xf0] }
 0x227   :  { %3710 = vmatmul.bf16.vlgmr.msra.gmra.mxu1 %v7237_v37  ;;  %3752 = vmatmul.bf16.vlgmr.msrb.gmra.mxu3 %v7233_v48  ;;  %v2830_v3 = vadd.f32 %v2829_v50, %v2816_v60  ;;  %v5792_v50 = vld [vmem:[#allocation6 + $0xb8] sm:$0xf0]  ;;  %v6687_v60 = vld [vmem:[#allocation6 + $0x8c] sm:$0xf]  ;;  %v2872_v38 = vadd.f32 %v2871_v2, %v2858_v53  ;;  %v5923_v42 = vor.u32 %v6723_v23, %v5920_v34  ;;  %v6142_v34 = vld [vmem:[#allocation6 + $0x368] sm:$0xf] }
 0x228   :  { %3804 = vmatpush.bf16.msra.mxu3 %v5759_v36  ;;  %3814 = vmatpush.bf16.msra.mxu1 %v5951_v0  ;;  %v6079_v0 = vor.u32 %v6765_v24, %v6078_v58  ;;  %v5779_v4 = vor.u32 %v6687_v60, %v5776_v62  ;;  %v5747_v58 = vor.u32 %v6679_v61, %v5744_v15  ;;  %v5998_v24 = vld [vmem:[#allocation6 + $0x248] sm:$0xf]  ;;  %v6737_v60 = vld [vmem:[#allocation6 + $0x214] sm:$0xf0]  ;;  %v6715_v2 = vld [vmem:[#allocation6 + $0x16c] sm:$0xf] }
 0x229   :  { %v2892_v19 = vmul.f32 0.2, %v2830_v3  ;;  %3792 = vmatpush.bf16.msrb.mxu0 %v6107_v35  ;;  %v6206_v62 = vld [vmem:[#allocation6 + $0x3e8] sm:$0xf]  ;;  %v6707_v45 = vld [vmem:[#allocation6 + $0x12c] sm:$0xf] }
 0x22a   :  { %v5856_v26 = vld [vmem:[#allocation6 + $0x138] sm:$0xf0]  ;;  %v6755_v53 = vld [vmem:[#allocation6 + $0x2ac] sm:$0xf] }
 0x22b   :  { %v2900_v30 = vmax.f32 %v2830_v3, %v2892_v19  ;;  %v6047_v3 = vor.u32 %v6757_v16, %v6046_v57  ;;  %v5955_v19 = vor.u32 %v6731_v12, %v5952_v13  ;;  %v5966_v16 = vld [vmem:[#allocation6 + $0x208] sm:$0xf] }
 0x22c   :  { %3805 = vmatpush.bf16.msra.mxu3 %v5743_v51  ;;  %3815 = vmatpush.bf16.msra.mxu1 %v5935_v52  ;;  %v5795_v51 = vor.u32 %v6691_v47, %v5792_v50  ;;  %v5854_v52 = vld [vmem:[#allocation6 + $0x128] sm:$0xf]  ;;  %v6741_v47 = vld [vmem:[#allocation6 + $0x234] sm:$0xf0]  ;;  %v6671_v50 = vld [vmem:[#allocation6 + $0xc] sm:$0xf] }
 0x22d   :  { %3793 = vmatpush.bf16.msrb.mxu0 %v6091_v44  ;;  %v5855_v1 = vor.u32 %v6709_v56, %v5854_v52  ;;  %v5712_v44 = vld [vmem:[#allocation6 + $0x18] sm:$0xf0]  ;;  %v5983_v56 = vor.u32 %v6741_v47, %v5982_v40  ;;  %v6743_v47 = vld [vmem:[#allocation6 + $0x24c] sm:$0xf] }
 0x22e   :  { %v2831_v10 = vpop.f32.mrf.mxu0  ;;  %v5715_v57 = vor.u32 %v6671_v50, %v5712_v44  ;;  %v6000_v50 = vld [vmem:[#allocation6 + $0x258] sm:$0xf0] }
 0x22f   :  { %v2832_v20 = vadd.f32 %v2831_v10, %v2818_v9  ;;  %v5760_v9 = vld [vmem:[#allocation6 + $0x78] sm:$0xf0] }
 0x230   :  { %3806 = vmatpush.bf16.msra.mxu3 %v5727_v7  ;;  %3816 = vmatpush.bf16.msra.mxu1 %v5919_v11  ;;  %v6705_v7 = vld [vmem:[#allocation6 + $0x114] sm:$0xf0]  ;;  %v6030_v11 = vld [vmem:[#allocation6 + $0x288] sm:$0xf]  ;;  %v5763_v10 = vor.u32 %v6683_v8, %v5760_v9 }
 0x231   :  { %v2896_v46 = vmul.f32 0.2, %v2832_v20  ;;  %v5839_v22 = vor.u32 %v6705_v7, %v5838_v5  ;;  %v6031_v27 = vor.u32 %v6753_v28, %v6030_v11  ;;  %v6080_v5 = vld [vmem:[#allocation6 + $0x2f8] sm:$0xf0]  ;;  %v5967_v28 = vor.u32 %v6737_v60, %v5966_v16  ;;  %v6094_v16 = vld [vmem:[#allocation6 + $0x308] sm:$0xf] }
 0x232   :  { %v6769_v60 = vld [vmem:[#allocation6 + $0x314] sm:$0xf0] }
 0x233   :  { %v2904_v32 = vmax.f32 %v2832_v20, %v2896_v46  ;;  %v6749_v20 = vld [vmem:[#allocation6 + $0x274] sm:$0xf0]  ;;  %v2859_v46 = vpop.f32.mrf.mxu1 }
 0x234   :  { %3807 = vmatpush.bf16.msra.mxu3 %v5711_v54  ;;  %3817 = vmatpush.bf16.msra.mxu1 %v5903_v33  ;;  %v2845_v54 = vpop.f32.mrf.mxu3 }
 0x235   :  { %v7241_v36 = vpack.c.bf16 %v2904_v32, %v2900_v30  ;;  %v2846_v25 = vadd.f32 %v2845_v54, %v2021_v55  ;;  %v6745_v30 = vld [vmem:[#allocation6 + $0x254] sm:$0xf0]  ;;  %v6675_v32 = vld [vmem:[#allocation6 + $0x2c] sm:$0xf]  ;;  %v6174_v54 = vld [vmem:[#allocation6 + $0x3a8] sm:$0xf] }
 0x236   :  { %v5731_v6 = vor.u32 %v6675_v32, %v5728_v59  ;;  %v6032_v32 = vld [vmem:[#allocation6 + $0x298] sm:$0xf0] }
 0x237   :  { %3724 = vmatmul.bf16.vlgmr.msra.gmra.mxu2 %v7241_v36  ;;  %3766 = vmatmul.bf16.vlgmr.msrb.gmra.mxu1 %v7237_v37  ;;  %v2860_v35 = vadd.f32 %v2859_v46, %v2846_v25  ;;  %v6048_v46 = vld [vmem:[#allocation6 + $0x2b8] sm:$0xf0]  ;;  %v6785_v25 = vld [vmem:[#allocation6 + $0x394] sm:$0xf0] }
 0x238   :  { %3856 = vmatpush.bf16.msrb.mxu3 %v5827_v21  ;;  %3818 = vmatpush.bf16.msra.mxu1 %v5887_v31  ;;  %v6015_v21 = vor.u32 %v6749_v20, %v6014_v14  ;;  %v2873_v31 = vpop.f32.mrf.mxu2  ;;  %v5872_v14 = vld [vmem:[#allocation6 + $0x158] sm:$0xf0] }
 0x239   :  { %3808 = vmatmul.bf16.vlgmr.msra.gmra.mxu3 %v7233_v48  ;;  %3828 = vmatpush.bf16.msra.mxu2 %v6079_v0  ;;  %v2874_v41 = vadd.f32 %v2873_v31, %v2860_v35  ;;  %v6781_v35 = vld [vmem:[#allocation6 + $0x374] sm:$0xf0] }
 0x23c   :  { %3857 = vmatpush.bf16.msrb.mxu3 %v5811_v39  ;;  %3819 = vmatpush.bf16.msra.mxu1 %v5871_v43  ;;  %v5999_v39 = vor.u32 %v6745_v30, %v5998_v24  ;;  %v6158_v24 = vld [vmem:[#allocation6 + $0x388] sm:$0xf]  ;;  %v6751_v30 = vld [vmem:[#allocation6 + $0x28c] sm:$0xf] }
 0x23d   :  { %3829 = vmatpush.bf16.msra.mxu2 %v6063_v17  ;;  %v5904_v17 = vld [vmem:[#allocation6 + $0x198] sm:$0xf0]  ;;  %v6159_v59 = vor.u32 %v6785_v25, %v6158_v24  ;;  %v6035_v23 = vor.u32 %v6751_v30, %v6032_v32  ;;  %v6800_v24 = vld [vmem:[#allocation7 + $0x10] sm:$0xff]  ;;  %v6811_v30 = vld [vmem:[#allocation7 + $0x68] sm:$0xff] }
 0x23e   :  { %v5907_v55 = vor.u32 %v6719_v49, %v5904_v17  ;;  %v6110_v49 = vld [vmem:[#allocation6 + $0x328] sm:$0xf]  ;;  %v6773_v17 = vld [vmem:[#allocation6 + $0x334] sm:$0xf0]  ;;  %v6812_v25 = vld [vmem:[#allocation7 + $0x70] sm:$0xff] }
 0x23f   :  { %v6798_v32 = vld [vmem:[#allocation7] sm:$0xff] }
 0x240   :  { %3858 = vmatpush.bf16.msrb.mxu3 %v5795_v51  ;;  %3820 = vmatpush.bf16.msra.mxu1 %v5855_v1  ;;  %v6797_v1 = vld [vmem:[#allocation6 + $0x3f4] sm:$0xf0] }
 0x241   :  { %3830 = vmatpush.bf16.msra.mxu2 %v6047_v3  ;;  %v5888_v3 = vld [vmem:[#allocation6 + $0x178] sm:$0xf0]  ;;  %v6207_v8 = vor.u32 %v6797_v1, %v6206_v62  ;;  %v6735_v62 = vld [vmem:[#allocation6 + $0x20c] sm:$0xf] }
 0x242   :  { %v5891_v12 = vor.u32 %v6715_v2, %v5888_v3  ;;  %v6208_v1 = vld [vmem:[#allocation6 + $0x3f8] sm:$0xf0]  ;;  %v6095_v2 = vor.u32 %v6769_v60, %v6094_v16 }
 0x244   :  { %3859 = vmatpush.bf16.msrb.mxu3 %v5779_v4  ;;  %3821 = vmatpush.bf16.msra.mxu1 %v5839_v22  ;;  %v6763_v4 = vld [vmem:[#allocation6 + $0x2ec] sm:$0xf]  ;;  %v6190_v22 = vld [vmem:[#allocation6 + $0x3c8] sm:$0xf] }
 0x245   :  { %3831 = vmatpush.bf16.msra.mxu2 %v6031_v27  ;;  %v6083_v13 = vor.u32 %v6763_v4, %v6080_v5  ;;  %v6793_v27 = vld [vmem:[#allocation6 + $0x3d4] sm:$0xf0]  ;;  %v6791_v4 = vld [vmem:[#allocation6 + $0x3cc] sm:$0xf]  ;;  %v6192_v5 = vld [vmem:[#allocation6 + $0x3d8] sm:$0xf0] }
 0x246   :  { %v2885_v33 = vpop.f32.mrf.mxu0  ;;  %v6191_v20 = vor.u32 %v6793_v27, %v6190_v22  ;;  %v6779_v27 = vld [vmem:[#allocation6 + $0x36c] sm:$0xf] }
 0x247   :  { %3780 = vmatmul.bf16.vlgmr.msrb.gmra.mxu2 %v7241_v36  ;;  %3822 = vmatmul.bf16.vlgmr.msra.gmra.mxu1 %v7237_v37  ;;  %v2886_v0 = vadd.f32 %v2885_v33, %v2872_v38  ;;  %v6789_v33 = vld [vmem:[#allocation6 + $0x3b4] sm:$0xf0]  ;;  %v6703_v38 = vld [vmem:[#allocation6 + $0x10c] sm:$0xf] }
 0x248   :  { %3860 = vmatpush.bf16.msrb.mxu3 %v5763_v10  ;;  %3870 = vmatpush.bf16.msrb.mxu1 %v5955_v19  ;;  %v6711_v10 = vld [vmem:[#allocation6 + $0x14c] sm:$0xf]  ;;  %v6064_v19 = vld [vmem:[#allocation6 + $0x2d8] sm:$0xf0] }
 0x249   :  { %3832 = vmatpush.bf16.msra.mxu2 %v6015_v21  ;;  %v2893_v51 = vmul.f32 0.2, %v2886_v0  ;;  %v5875_v61 = vor.u32 %v6711_v10, %v5872_v14  ;;  %v6067_v15 = vor.u32 %v6759_v18, %v6064_v19  ;;  %v6175_v21 = vor.u32 %v6789_v33, %v6174_v54  ;;  %v6144_v10 = vld [vmem:[#allocation6 + $0x378] sm:$0xf0]  ;;  %v6775_v18 = vld [vmem:[#allocation6 + $0x34c] sm:$0xf] }
 0x24a   :  { %v6147_v14 = vor.u32 %v6779_v27, %v6144_v10  ;;  %v6128_v19 = vld [vmem:[#allocation6 + $0x358] sm:$0xf0]  ;;  %v6767_v33 = vld [vmem:[#allocation6 + $0x30c] sm:$0xf] }
 0x24b   :  { %v2901_v7 = vmax.f32 %v2886_v0, %v2893_v51  ;;  %v6747_v0 = vld [vmem:[#allocation6 + $0x26c] sm:$0xf] }
 0x24c   :  { %3861 = vmatpush.bf16.msrb.mxu3 %v5747_v58  ;;  %3871 = vmatpush.bf16.msrb.mxu1 %v5939_v29  ;;  %v6051_v58 = vor.u32 %v6755_v53, %v6048_v46  ;;  %v5840_v29 = vld [vmem:[#allocation6 + $0x118] sm:$0xf0]  ;;  %v6739_v51 = vld [vmem:[#allocation6 + $0x22c] sm:$0xf]  ;;  %v6804_v53 = vld [vmem:[#allocation7 + $0x30] sm:$0xff] }
 0x24d   :  { %3833 = vmatpush.bf16.msra.mxu2 %v5999_v39  ;;  %v5843_v31 = vor.u32 %v6703_v38, %v5840_v29  ;;  %v6016_v39 = vld [vmem:[#allocation6 + $0x278] sm:$0xf0]  ;;  %v6803_v46 = vld [vmem:[#allocation7 + $0x28] sm:$0xff] }
 0x24e   :  { %v2887_v43 = vpop.f32.mrf.mxu0  ;;  %v6019_v40 = vor.u32 %v6747_v0, %v6016_v39  ;;  %v6799_v29 = vld [vmem:[#allocation7 + $0x8] sm:$0xff]  ;;  %v7262_v0 = vld [vmem:[%s7282_s8] sm:$0xf] }
 0x24f   :  { %v2888_v52 = vadd.f32 %v2887_v43, %v2874_v41  ;;  %v6126_v41 = vld [vmem:[#allocation6 + $0x348] sm:$0xf]  ;;  %v6003_v43 = vor.u32 %v6743_v47, %v6000_v50 }
 0x250   :  { %3862 = vmatpush.bf16.msrb.mxu3 %v5731_v6  ;;  %3872 = vmatpush.bf16.msrb.mxu1 %v5923_v42  ;;  %v6143_v6 = vor.u32 %v6781_v35, %v6142_v34  ;;  %v6777_v42 = vld [vmem:[#allocation6 + $0x354] sm:$0xf0]  ;;  %v6820_v35 = vld [vmem:[#allocation7 + $0xb0] sm:$0xff]  ;;  %v6807_v50 = vld [vmem:[#allocation7 + $0x48] sm:$0xff] }
 0x251   :  { %v2897_v63 = vmul.f32 0.2, %v2888_v52  ;;  %3834 = vmatpush.bf16.msra.mxu2 %v5983_v56  ;;  %v6127_v44 = vor.u32 %v6777_v42, %v6126_v41  ;;  %v6111_v56 = vor.u32 %v6773_v17, %v6110_v49  ;;  %v6821_v34 = vld [vmem:[#allocation7 + $0xb8] sm:$0xff]  ;;  %v3040_v41 = vperm.slane %v7262_v0, 0  ;;  %v6806_v17 = vld [vmem:[#allocation7 + $0x40] sm:$0xff]  ;;  %v6815_v27 = vld [vmem:[#allocation7 + $0x88] sm:$0xff] }
 0x253   :  { %v2905_v11 = vmax.f32 %v2888_v52, %v2897_v63  ;;  %v5984_v52 = vld [vmem:[#allocation6 + $0x238] sm:$0xf0] }
 0x254   :  { %3863 = vmatpush.bf16.msrb.mxu3 %v5715_v57  ;;  %3873 = vmatpush.bf16.msrb.mxu1 %v5907_v55  ;;  %v5987_v57 = vor.u32 %v6739_v51, %v5984_v52  ;;  %v5968_v63 = vld [vmem:[#allocation6 + $0x218] sm:$0xf0]  ;;  %v6795_v55 = vld [vmem:[#allocation6 + $0x3ec] sm:$0xf]  ;;  %v6818_v51 = vld [vmem:[#allocation7 + $0xa0] sm:$0xff] }
 0x255   :  { %v7249_v9 = vpack.c.bf16 %v2905_v11, %v2901_v7  ;;  %3835 = vmatpush.bf16.msra.mxu2 %v5967_v28  ;;  %v6211_v3 = vor.u32 %v6795_v55, %v6208_v1  ;;  %v6195_v7 = vor.u32 %v6791_v4, %v6192_v5  ;;  %v6787_v11 = vld [vmem:[#allocation6 + $0x3ac] sm:$0xf]  ;;  %v6176_v28 = vld [vmem:[#allocation6 + $0x3b8] sm:$0xf0]  ;;  %v6816_v4 = vld [vmem:[#allocation7 + $0x90] sm:$0xff]  ;;  %v3041_v5 = vperm.slane %v7262_v0, 1 }
 0x257   :  { %3738 = vmatmul.bf16.vlgmr.msra.gmra.mxu0 %v7249_v9  ;;  %3864 = vmatmul.bf16.vlgmr.msrb.gmra.mxu3 %v7233_v48  ;;  %v5859_v48 = vor.u32 %v6707_v45, %v5856_v26  ;;  %v6805_v26 = vld [vmem:[#allocation7 + $0x38] sm:$0xff] }
 0x258   :  { %3842 = vmatpush.bf16.msra.mxu0 %v6207_v8  ;;  %3874 = vmatpush.bf16.msrb.mxu1 %v5891_v12  ;;  %v6179_v8 = vor.u32 %v6787_v11, %v6176_v28  ;;  %v6783_v12 = vld [vmem:[#allocation6 + $0x38c] sm:$0xf] }
 0x259   :  { %3884 = vmatpush.bf16.msrb.mxu2 %v6083_v13  ;;  %v6160_v13 = vld [vmem:[#allocation6 + $0x398] sm:$0xf0]  ;;  %4192 = vmatpush.bf16.msra.mxu3 %v6805_v26  ;;  %v6827_v26 = vld [vmem:[#allocation7 + $0xe8] sm:$0xff] }
 0x25a   :  { %3836 = vmatmul.bf16.vlgmr.msra.gmra.mxu2 %v7241_v36  ;;  %v6163_v22 = vor.u32 %v6783_v12, %v6160_v13 }
 0x25c   :  { %3843 = vmatpush.bf16.msra.mxu0 %v6191_v20  ;;  %3875 = vmatpush.bf16.msrb.mxu1 %v5875_v61  ;;  %v6131_v20 = vor.u32 %v6775_v18, %v6128_v19  ;;  %v6771_v61 = vld [vmem:[#allocation6 + $0x32c] sm:$0xf]  ;;  %v6829_v18 = vld [vmem:[#allocation7 + $0xf8] sm:$0xff] }
 0x25d   :  { %3885 = vmatpush.bf16.msrb.mxu2 %v6067_v15  ;;  %v6112_v15 = vld [vmem:[#allocation6 + $0x338] sm:$0xf0]  ;;  %4193 = vmatpush.bf16.msra.mxu3 %v6804_v53 }
 0x25e   :  { %v6115_v54 = vor.u32 %v6771_v61, %v6112_v15  ;;  %v6828_v61 = vld [vmem:[#allocation7 + $0xf0] sm:$0xff] }
 0x260   :  { %3844 = vmatpush.bf16.msra.mxu0 %v6175_v21  ;;  %3876 = vmatpush.bf16.msrb.mxu1 %v5859_v48  ;;  %v6802_v21 = vld [vmem:[#allocation7 + $0x20] sm:$0xff]  ;;  %v6801_v48 = vld [vmem:[#allocation7 + $0x18] sm:$0xff] }
 0x261   :  { %3886 = vmatpush.bf16.msrb.mxu2 %v6051_v58  ;;  %4194 = vmatpush.bf16.msra.mxu3 %v6803_v46  ;;  %v6813_v58 = vld [vmem:[#allocation7 + $0x78] sm:$0xff] }
 0x264   :  { %3845 = vmatpush.bf16.msra.mxu0 %v6159_v59  ;;  %3877 = vmatpush.bf16.msrb.mxu1 %v5843_v31  ;;  %v6810_v59 = vld [vmem:[#allocation7 + $0x60] sm:$0xff] }
 0x265   :  { %3887 = vmatpush.bf16.msrb.mxu2 %v6035_v23  ;;  %4195 = vmatpush.bf16.msra.mxu3 %v6802_v21  ;;  %v6809_v23 = vld [vmem:[#allocation7 + $0x58] sm:$0xff] }
 0x267   :  { %3794 = vmatmul.bf16.vlgmr.msrb.gmra.mxu0 %v7249_v9  ;;  %3878 = vmatmul.bf16.vlgmr.msrb.gmra.mxu1 %v7237_v37  ;;  %v5971_v37 = vor.u32 %v6735_v62, %v5968_v63  ;;  %v6817_v63 = vld [vmem:[#allocation7 + $0x98] sm:$0xff] }
 0x268   :  { %3846 = vmatpush.bf16.msra.mxu0 %v6143_v6  ;;  %4206 = vmatpush.bf16.msra.mxu1 %v6813_v58  ;;  %v6808_v6 = vld [vmem:[#allocation7 + $0x50] sm:$0xff] }
 0x269   :  { %3888 = vmatpush.bf16.msrb.mxu2 %v6019_v40  ;;  %4196 = vmatpush.bf16.msra.mxu3 %v6801_v48 }
 0x26c   :  { %3847 = vmatpush.bf16.msra.mxu0 %v6127_v44  ;;  %4207 = vmatpush.bf16.msra.mxu1 %v6812_v25  ;;  %v6819_v44 = vld [vmem:[#allocation7 + $0xa8] sm:$0xff]  ;;  %v6826_v25 = vld [vmem:[#allocation7 + $0xe0] sm:$0xff] }
 0x26d   :  { %3889 = vmatpush.bf16.msrb.mxu2 %v6003_v43  ;;  %4197 = vmatpush.bf16.msra.mxu3 %v6800_v24 }
 0x270   :  { %3848 = vmatpush.bf16.msra.mxu0 %v6111_v56  ;;  %4208 = vmatpush.bf16.msra.mxu1 %v6811_v30 }
 0x271   :  { %3890 = vmatpush.bf16.msrb.mxu2 %v5987_v57  ;;  %4198 = vmatpush.bf16.msra.mxu3 %v6799_v29 }
 0x274   :  { %3849 = vmatpush.bf16.msra.mxu0 %v6095_v2  ;;  %4209 = vmatpush.bf16.msra.mxu1 %v6810_v59 }
 0x275   :  { %3891 = vmatpush.bf16.msrb.mxu2 %v5971_v37  ;;  %4199 = vmatpush.bf16.msra.mxu3 %v6798_v32 }
 0x277   :  { %3850 = vmatmul.bf16.vlgmr.msra.gmra.mxu0 %v7249_v9 }
 0x278   :  { %3898 = vmatpush.bf16.msrb.mxu0 %v6211_v3  ;;  %3892 = vmatmul.bf16.vlgmr.msrb.gmra.mxu2 %v7241_v36  ;;  %v6096_v36 = vld [vmem:[#allocation6 + $0x318] sm:$0xf0] }
 0x279   :  { %v6099_v45 = vor.u32 %v6767_v33, %v6096_v36  ;;  %4220 = vmatpush.bf16.msra.mxu2 %v6821_v34  ;;  %4210 = vmatpush.bf16.msra.mxu1 %v6809_v23 }
 0x27c   :  { %3899 = vmatpush.bf16.msrb.mxu0 %v6195_v7 }
 0x27d   :  { %4221 = vmatpush.bf16.msra.mxu2 %v6820_v35  ;;  %4211 = vmatpush.bf16.msra.mxu1 %v6808_v6 }
 0x280   :  { %3900 = vmatpush.bf16.msrb.mxu0 %v6179_v8 }
 0x281   :  { %4212 = vmatpush.bf16.msra.mxu1 %v6807_v50  ;;  %4222 = vmatpush.bf16.msra.mxu2 %v6819_v44 }
 0x284   :  { %3901 = vmatpush.bf16.msrb.mxu0 %v6163_v22 }
 0x285   :  { %4213 = vmatpush.bf16.msra.mxu1 %v6806_v17  ;;  %4223 = vmatpush.bf16.msra.mxu2 %v6818_v51 }
 0x288   :  { %3902 = vmatpush.bf16.msrb.mxu0 %v6147_v14 }
 0x289   :  { %4224 = vmatpush.bf16.msra.mxu2 %v6817_v63 }
 0x28c   :  { %3903 = vmatpush.bf16.msrb.mxu0 %v6131_v20  ;;  %v6814_v20 = vld [vmem:[#allocation7 + $0x80] sm:$0xff] }
 0x28d   :  { %4225 = vmatpush.bf16.msra.mxu2 %v6816_v4 }
 0x290   :  { %3904 = vmatpush.bf16.msrb.mxu0 %v6115_v54 }
 0x291   :  { %4226 = vmatpush.bf16.msra.mxu2 %v6815_v27 }
 0x294   :  { %3905 = vmatpush.bf16.msrb.mxu0 %v6099_v45 }
 0x295   :  { %4227 = vmatpush.bf16.msra.mxu2 %v6814_v20 }
 0x297   :  { %3906 = vmatmul.bf16.vlgmr.msrb.gmra.mxu0 %v7249_v9 }
 0x298   :  { %4234 = vmatpush.bf16.msra.mxu0 %v6829_v18 }
 0x29a   :  { %v3697_v38 = vpop.f32.mrf.mxu3 }
 0x29b   :  { %v3698_v47 = vadd.f32 %v3697_v38, %v3040_v41  ;;  %v3042_v38 = vperm.slane %v7262_v0, 2 }
 0x29c   :  { %4235 = vmatpush.bf16.msra.mxu0 %v6828_v61  ;;  %v6838_v61 = vld [vmem:[%s7284_s10] ss:$0 sm:$0xff] }
 0x2a0   :  { %4236 = vmatpush.bf16.msra.mxu0 %v6827_v26 }
 0x2a2   :  { %v3699_v39 = vpop.f32.mrf.mxu3 }
 0x2a3   :  { %v3700_v56 = vadd.f32 %v3699_v39, %v3040_v41  ;;  %v6825_v39 = vld [vmem:[#allocation7 + $0xd8] sm:$0xff] }
 0x2a4   :  { %v3711_v9 = vpop.f32.mrf.mxu1  ;;  %4237 = vmatpush.bf16.msra.mxu0 %v6826_v25 }
 0x2a5   :  { %v3712_v49 = vadd.f32 %v3711_v9, %v3698_v47 }
 0x2a8   :  { %4238 = vmatpush.bf16.msra.mxu0 %v6825_v39 }
 0x2aa   :  { %v3753_v52 = vpop.f32.mrf.mxu3 }
 0x2ab   :  { %v3754_v13 = vadd.f32 %v3753_v52, %v3041_v5  ;;  %v6823_v52 = vld [vmem:[#allocation7 + $0xc8] sm:$0xff] }
 0x2ac   :  { %v3713_v40 = vpop.f32.mrf.mxu1 }
 0x2ad   :  { %v3714_v60 = vadd.f32 %v3713_v40, %v3700_v56 }
 0x2b2   :  { %v3755_v11 = vpop.f32.mrf.mxu3 }
 0x2b3   :  { %v3756_v15 = vadd.f32 %v3755_v11, %v3041_v5 }
 0x2b4   :  { %v3767_v16 = vpop.f32.mrf.mxu1 }
 0x2b5   :  { %v3768_v19 = vadd.f32 %v3767_v16, %v3754_v13  ;;  %v6822_v16 = vld [vmem:[#allocation7 + $0xc0] sm:$0xff] }
 0x2ba   :  { %v3725_v31 = vpop.f32.mrf.mxu2 }
 0x2bb   :  { %v3726_v57 = vadd.f32 %v3725_v31, %v3712_v49 }
 0x2bc   :  { %v3769_v12 = vpop.f32.mrf.mxu1  ;;  %v3809_v45 = vpop.f32.mrf.mxu3 }
 0x2bd   :  { %v3770_v33 = vadd.f32 %v3769_v12, %v3756_v15  ;;  %v3810_v32 = vadd.f32 %v3809_v45, %v3042_v38 }
 0x2c2   :  { %v3727_v42 = vpop.f32.mrf.mxu2 }
 0x2c3   :  { %v3728_v1 = vadd.f32 %v3727_v42, %v3714_v60  ;;  %v6824_v42 = vld [vmem:[#allocation7 + $0xd0] sm:$0xff] }
 0x2c4   :  { %v3823_v46 = vpop.f32.mrf.mxu1  ;;  %v3811_v31 = vpop.f32.mrf.mxu3  ;;  %4239 = vmatpush.bf16.msra.mxu0 %v6824_v42 }
 0x2c5   :  { %v3824_v34 = vadd.f32 %v3823_v46, %v3810_v32  ;;  %v3812_v6 = vadd.f32 %v3811_v31, %v3042_v38 }
 0x2c8   :  { %4240 = vmatpush.bf16.msra.mxu0 %v6823_v52 }
 0x2ca   :  { %v3781_v55 = vpop.f32.mrf.mxu2 }
 0x2cb   :  { %v3782_v54 = vadd.f32 %v3781_v55, %v3768_v19 }
 0x2cc   :  { %v3825_v35 = vpop.f32.mrf.mxu1  ;;  %4241 = vmatpush.bf16.msra.mxu0 %v6822_v16 }
 0x2cd   :  { %v3826_v47 = vadd.f32 %v3825_v35, %v3812_v6 }
 0x2d2   :  { %v3783_v10 = vpop.f32.mrf.mxu2 }
 0x2d3   :  { %v3784_v53 = vadd.f32 %v3783_v10, %v3770_v33 }
 0x2d4   :  { %v3739_v43 = vpop.f32.mrf.mxu0 }
 0x2d5   :  { %v3740_v62 = vadd.f32 %v3739_v43, %v3726_v57 }
 0x2d7   :  { %v3912_v37 = vmul.f32 0.2, %v3740_v62 }
 0x2d9   :  { %v3920_v28 = vmax.f32 %v3740_v62, %v3912_v37 }
 0x2da   :  { %v3865_v62 = vpop.f32.mrf.mxu3 }
 0x2dc   :  { %v3741_v2 = vpop.f32.mrf.mxu0 }
 0x2dd   :  { %v3742_v3 = vadd.f32 %v3741_v2, %v3728_v1  ;;  %v3837_v24 = vpop.f32.mrf.mxu2  ;;  %v3043_v1 = vperm.slane %v7262_v0, 3 }
 0x2de   :  { %v3838_v40 = vadd.f32 %v3837_v24, %v3824_v34 }
 0x2df   :  { %v3916_v7 = vmul.f32 0.2, %v3742_v3  ;;  %v3866_v2 = vadd.f32 %v3865_v62, %v3043_v1 }
 0x2e1   :  { %v3924_v8 = vmax.f32 %v3742_v3, %v3916_v7 }
 0x2e2   :  { %v3867_v37 = vpop.f32.mrf.mxu3 }
 0x2e3   :  { %v3928_v22 = vpack.c.bf16 %v3924_v8, %v3920_v28  ;;  %v3868_v7 = vadd.f32 %v3867_v37, %v3043_v1 }
 0x2e4   :  { %v3795_v14 = vpop.f32.mrf.mxu0  ;;  %v3879_v63 = vpop.f32.mrf.mxu1 }
 0x2e5   :  { %4200 = vmatmul.bf16.vlgmr.msra.gmra.mxu3 %v3928_v22  ;;  %v3796_v36 = vadd.f32 %v3795_v14, %v3782_v54  ;;  %v3839_v41 = vpop.f32.mrf.mxu2  ;;  %v3880_v4 = vadd.f32 %v3879_v63, %v3866_v2 }
 0x2e6   :  { %v3840_v44 = vadd.f32 %v3839_v41, %v3826_v47 }
 0x2e7   :  { %v3913_v48 = vmul.f32 0.2, %v3796_v36 }
 0x2e9   :  { %v3921_v30 = vmax.f32 %v3796_v36, %v3913_v48 }
 0x2ec   :  { %v3797_v21 = vpop.f32.mrf.mxu0  ;;  %v3881_v5 = vpop.f32.mrf.mxu1 }
 0x2ed   :  { %v3798_v58 = vadd.f32 %v3797_v21, %v3784_v53  ;;  %v3882_v8 = vadd.f32 %v3881_v5, %v3868_v7 }
 0x2ef   :  { %v3917_v29 = vmul.f32 0.2, %v3798_v58 }
 0x2f1   :  { %v3925_v9 = vmax.f32 %v3798_v58, %v3917_v29 }
 0x2f3   :  { %v3929_v59 = vpack.c.bf16 %v3925_v9, %v3921_v30 }
 0x2f4   :  { %v3851_v23 = vpop.f32.mrf.mxu0 }
 0x2f5   :  { %4214 = vmatmul.bf16.vlgmr.msra.gmra.mxu1 %v3929_v59  ;;  %v3852_v50 = vadd.f32 %v3851_v23, %v3838_v40 }
 0x2f7   :  { %v3914_v49 = vmul.f32 0.2, %v3852_v50 }
 0x2f9   :  { %v3922_v56 = vmax.f32 %v3852_v50, %v3914_v49 }
 0x2fb   :  { %v3893_v55 = vpop.f32.mrf.mxu2 }
 0x2fc   :  { %v3853_v43 = vpop.f32.mrf.mxu0  ;;  %v3894_v11 = vadd.f32 %v3893_v55, %v3880_v4 }
 0x2fd   :  { %v3854_v17 = vadd.f32 %v3853_v43, %v3840_v44 }
 0x2ff   :  { %v3918_v51 = vmul.f32 0.2, %v3854_v17 }
 0x301   :  { %v3926_v57 = vmax.f32 %v3854_v17, %v3918_v51 }
 0x303   :  { %v3930_v60 = vpack.c.bf16 %v3926_v57, %v3922_v56  ;;  %v3895_v28 = vpop.f32.mrf.mxu2 }
 0x304   :  { %v3896_v13 = vadd.f32 %v3895_v28, %v3882_v8 }
 0x305   :  { %4228 = vmatmul.bf16.vlgmr.msra.gmra.mxu2 %v3930_v60 }
 0x314   :  { %v3907_v3 = vpop.f32.mrf.mxu0 }
 0x315   :  { %v3908_v12 = vadd.f32 %v3907_v3, %v3894_v11 }
 0x317   :  { %v3915_v27 = vmul.f32 0.2, %v3908_v12 }
 0x319   :  { %v3923_v18 = vmax.f32 %v3908_v12, %v3915_v27 }
 0x31c   :  { %v3909_v22 = vpop.f32.mrf.mxu0 }
 0x31d   :  { %v3910_v10 = vadd.f32 %v3909_v22, %v3896_v13 }
 0x31f   :  { %v3919_v14 = vmul.f32 0.2, %v3910_v10 }
 0x321   :  { %v3927_v19 = vmax.f32 %v3910_v10, %v3919_v14 }
 0x323   :  { %v3931_v20 = vpack.c.bf16 %v3927_v19, %v3923_v18 }
 0x325   :  { %4242 = vmatmul.bf16.vlgmr.msra.gmra.mxu0 %v3931_v20 }
 0x368   :  { %v4201_v0 = vpop.f32.mrf.mxu3 }
 0x369   :  { %v4202_v33 = vadd.f32 %v6838_v61, %v4201_v0 }
 0x370   :  { %v4203_v26 = vpop.f32.mrf.mxu3 }
 0x371   :  { %v4204_v48 = vadd.f32 %v6838_v61, %v4203_v26 }
 0x372   :  { %v4215_v15 = vpop.f32.mrf.mxu1 }
 0x373   :  { %v4216_v36 = vadd.f32 %v4215_v15, %v4202_v33 }
 0x37a   :  { %v4217_v21 = vpop.f32.mrf.mxu1 }
 0x37b   :  { %v4218_v25 = vadd.f32 %v4217_v21, %v4204_v48 }
 0x388   :  { %v4229_v54 = vpop.f32.mrf.mxu2 }
 0x389   :  { %v4230_v45 = vadd.f32 %v4229_v54, %v4216_v36 }
 0x390   :  { %v4231_v24 = vpop.f32.mrf.mxu2 }
 0x391   :  { %v4232_v38 = vadd.f32 %v4231_v24, %v4218_v25 }
 0x3a2   :  { %v4243_v53 = vpop.f32.mrf.mxu0 }
 0x3a3   :  { %v4244_v46 = vadd.f32 %v4243_v53, %v4230_v45 }
 0x3a5   :  { %v6340_v58 = vmul.f32 -1.442695, %v4244_v46 }
 0x3a7   :  { %6839 = vpow2.f32 %v6340_v58 }
 0x3aa   :  { %v4245_v29 = vpop.f32.mrf.mxu0 }
 0x3ab   :  { %v4246_v30 = vadd.f32 %v4245_v29, %v4232_v38 }
 0x3ad   :  { %v6840_v9 = vpop.eup %6839  ;;  %v6341_v32 = vmul.f32 -1.442695, %v4246_v30 }
 0x3ae   :  { %v4254_v59 = vadd.f32 1.0, %v6840_v9 }
 0x3af   :  { %6841 = vpow2.f32 %v6341_v32 }
 0x3b0   :  { %6843 = vrcp.f32 %v4254_v59  ;;  %v4267_v6 = vand.u32 2147483648, %v4254_v59  ;;  %v4265_v41 = vand.u32 2147483647, %v4254_v59  ;;  %vm4261_vm2 = vweird.f32 %v4254_v59 }
 0x3b2   :  { %v4268_v50 = vor.u32 1.1754944e-38, %v4267_v6  ;;  %vm4266_vm4 = vcmp.eq.f32.partialorder %v4265_v41, 8.507059e+37 }
 0x3b5   :  { %v6842_v31 = vpop.eup %6841 }
 0x3b6   :  { %v6844_v23 = vpop.eup %6843  ;;  %v4255_v34 = vadd.f32 1.0, %v6842_v31 }
 0x3b7   :  { %v4257_v35 = vmul.f32 %v6844_v23, %v4254_v59  ;;  %vm4262_vm1 = vweird.f32 %v6844_v23 }
 0x3b8   :  { %6845 = vrcp.f32 %v4255_v34  ;;  %vm4263_vm3 = vmor %vm4261_vm2, %vm4262_vm1 }
 0x3b9   :  { %v4258_v39 = vsub.f32 1.0, %v4257_v35 }
 0x3bb   :  { %v4259_v40 = vmul.f32 %v6844_v23, %v4258_v39 }
 0x3bd   :  { %v4260_v42 = vadd.f32 %v6844_v23, %v4259_v40 }
 0x3be   :  { %v6846_v47 = vpop.eup %6845 }
 0x3bf   :  { %v4264_v44 = vsel %vm4263_vm3, %v6844_v23, %v4260_v42 }
 0x3c0   :  { %v4269_v43 = vsel %vm4266_vm4, %v4268_v50, %v4264_v44 }
 0x3c1   :  { %v4286_v49 = vpack.c.bf16 %v4269_v43, %v4269_v43 }
 0x3c3   :  { %v4290_v17 = vrot.slane %v4286_v49, 3 }
 0x3c5   :  { %v4295_v51 = vsel %vm4292_vm5, %v4286_v49, %v4290_v17 }
 0x3c6   :  { %4328 = vst [vmem:[#allocation9] sm:$0x1] %v4295_v51 }
 0x3cd   :  { %v4354_v52 = vld [vmem:[#allocation9] sm:$0x1] }
 0x3ce   :  { %4355 = vst [vmem:[%s7285_s11] sm:$0x1] %v4354_v52 }
 0x3cf   :  { %4373 = vsyncpa [#allocation3], 1 }
 0x3d0   :  { %4374 = vsyncpa [#allocation5], 1 }
 0x3d1   :  { %4375 = vsyncpa [#allocation8], 1 }

</bundles_post_ra>
